<compile_context>
chip_gen: v7x
topology: tpu7x:2x2x1
jax: 0.10.0
libtpu: 0.0.40
codegen_flags: <defaults>
</compile_context>

<pallas_src>
import jax
import jax.numpy as jnp
from jax import lax
from jax.experimental import pallas as pl
from jax.experimental.pallas import tpu as pltpu

EPS = 1e-5      # BatchNorm1d eps
LANE = 128      # TPU lane width


def timnet_kernel(x_ref, w1f_ref, b1f_ref, w1b_ref, b1b_ref,
                  wf_ref, bf_ref, wb_ref, bb_ref,
                  wl_ref, wcls_ref, bcls_ref, out_ref):
    T, Cp = x_ref.shape              # one batch row: (T, Cp) channels-last slab
    NB = wf_ref.shape[0]             # number of Temporal_Aware_Blocks

    def mm(a, w):
        return jnp.dot(a, w, preferred_element_type=jnp.float32)

    t_idx = lax.broadcasted_iota(jnp.int32, (T, 1), 0)

    def shifted(x, d, causal):
        # causal (forward branch):  out[t] = x[t-d], zero for t <  d
        # anti   (backward branch): out[t] = x[t+d], zero for t >= T-d
        if d >= T:
            return jnp.zeros_like(x)
        if causal:
            rolled = pltpu.roll(x, shift=d, axis=0)
            mask = t_idx >= d
        else:
            rolled = pltpu.roll(x, shift=T - d, axis=0)
            mask = t_idx < (T - d)
        return jnp.where(mask, rolled, 0.0)

    def conv_bn_relu(x, w_fused, bias, d, causal):
        # Fused k=2 dilated conv: single K=2*Cp matmul; BN folded into w/bias.
        cat = jnp.concatenate([shifted(x, d, causal), x], axis=-1)   # (T, 2*Cp)
        return jnp.maximum(mm(cat, w_fused) + bias, 0.0)

    def temporal_block(x, Wref, Bref, i, d, causal):
        # == Temporal_Aware_Block.forward: conv_1 -> conv_2 -> gated residual.
        h = conv_bn_relu(x, Wref[i, 0], Bref[i, 0], d, causal)
        # TODO(synk): SpatialDropout1D is identity in eval/inference mode.
        g = conv_bn_relu(h, Wref[i, 1], Bref[i, 1], d, causal)
        g = jax.nn.sigmoid(g)
        return x * g

    x = x_ref[...]                                         # (T, Cp)
    skip_f = mm(x, w1f_ref[...]) + b1f_ref[...]            # forward 1x1 conv
    skip_b = mm(x, w1b_ref[...]) + b1b_ref[...]            # backward 1x1 conv

    acc = jnp.zeros((1, Cp), jnp.float32)
    for i in range(NB):
        d = 2 ** i
        skip_f = temporal_block(skip_f, wf_ref, bf_ref, i, d, True)
        skip_b = temporal_block(skip_b, wb_ref, bb_ref, i, d, False)
        m = jnp.mean(skip_f + skip_b, axis=0, keepdims=True)   # (1, Cp) time-mean
        acc = acc + m * wl_ref[i]                              # weight_layer scale
    out = mm(acc, wcls_ref[...]) + bcls_ref[...]               # cls head (lane-padded)
    out_ref[...] = out.astype(out_ref.dtype)


def timnet_forward(x, params, n_label):
    """x: (B, C, T) float32, PyTorch NCT convention. Returns (None, logits)."""
    B, C, T = x.shape
    (w1f, b1f, w1b, b1b, Wf, Bf, Wb, Bb, wl, Wcls, bcls) = params
    Cp = w1f.shape[0]
    Np = Wcls.shape[1]

    xf = jnp.transpose(x, (0, 2, 1))                       # (B, T, C) channels-last
    xp = jnp.pad(xf, ((0, 0), (0, 0), (0, Cp - C)))        # lane-dense channel axis
    # Backward branch is derived in-kernel via anti-causal shifts -> no flipped
    # copy of x is materialized or DMA'd.

    def const_spec(a):
        nd = a.ndim
        return pl.BlockSpec(a.shape, lambda b, nd=nd: (0,) * nd)

    weights = (w1f, b1f, w1b, b1b, Wf, Bf, Wb, Bb, wl, Wcls, bcls)

    out = pl.pallas_call(
        timnet_kernel,
        out_shape=jax.ShapeDtypeStruct((B, 1, Np), jnp.float32),
        grid=(B,),
        in_specs=[pl.BlockSpec((None, T, Cp), lambda b: (b, 0, 0))]
                 + [const_spec(a) for a in weights],
        out_specs=pl.BlockSpec((None, 1, Np), lambda b: (b, 0, 0)),
        compiler_params=pltpu.CompilerParams(
            dimension_semantics=("parallel",)),     # v7x: batch across both TCs
    )(xp, *weights)

    logits = out.reshape(B, Np)[:, :n_label]
    return None, logits


def init_params(key, C, NB, n_label, lanes=LANE):
    ks = jax.random.split(key, 11)
    s = 0.1
    Cp = ((C + lanes - 1) // lanes) * lanes
    Np = ((n_label + lanes - 1) // lanes) * lanes

    # --- PyTorch-shaped parameters (deterministic) ---------------------------
    w1f_t = jax.random.normal(ks[0], (C, C, 1), jnp.float32) * s        # Conv1d (out,in,1)
    b1f_t = jax.random.normal(ks[1], (C,), jnp.float32) * s
    w1b_t = jax.random.normal(ks[2], (C, C, 1), jnp.float32) * s
    b1b_t = jax.random.normal(ks[3], (C,), jnp.float32) * s
    Wf_t = jax.random.normal(ks[4], (NB, 2, C, C, 2), jnp.float32) * s  # (blk,conv,out,in,K)
    Bf_t = jax.random.normal(ks[5], (NB, 2, C), jnp.float32) * s
    Wb_t = jax.random.normal(ks[6], (NB, 2, C, C, 2), jnp.float32) * s
    Bb_t = jax.random.normal(ks[7], (NB, 2, C), jnp.float32) * s
    wl_t = jax.random.normal(ks[8], (NB, 1), jnp.float32)               # weight_layer
    Wcls_t = jax.random.normal(ks[9], (n_label, C), jnp.float32) * s    # Linear (out,in)
    bcls_t = jax.random.normal(ks[10], (n_label,), jnp.float32) * s

    # BatchNorm1d eval-mode stats (fresh-module defaults; thread real trained
    # running stats here — the fold below is fully general).
    gamma = jnp.ones((NB, 2, C), jnp.float32)
    beta = jnp.zeros((NB, 2, C), jnp.float32)
    rmean = jnp.zeros((NB, 2, C), jnp.float32)
    rvar = jnp.ones((NB, 2, C), jnp.float32)

    def pad2(m, rows, cols):
        out = jnp.zeros((rows, cols), jnp.float32)
        return out.at[:m.shape[0], :m.shape[1]].set(m)

    def fold_and_fuse(Wt, bt, g, b, mu, var):
        # Wt: (C_out, C_in, 2) torch conv weight.  Returns the lane-padded fused
        # right-multiply weight (2*Cp, Cp) and bias (1, Cp) with BN folded in.
        scale = g * lax.rsqrt(var + EPS)                  # (C_out,)
        w0 = Wt[:, :, 0].T * scale[None, :]               # tap x[t-d]  (C_in, C_out)
        w1 = Wt[:, :, 1].T * scale[None, :]               # tap x[t]
        bias = (bt - mu) * scale + b
        W = jnp.zeros((2 * Cp, Cp), jnp.float32)
        W = W.at[:C, :C].set(w0)                          # rows [0:Cp)  <- shifted input
        W = W.at[Cp:Cp + C, :C].set(w1)                   # rows [Cp:2Cp) <- current input
        return W, pad2(bias[None, :], 1, Cp)

    def pack_branch(Wt, Bt):
        Ws, Bs = [], []
        for i in range(NB):
            Wi, Bi = [], []
            for j in range(2):
                W, bb = fold_and_fuse(Wt[i, j], Bt[i, j],
                                      gamma[i, j], beta[i, j], rmean[i, j], rvar[i, j])
                Wi.append(W)
                Bi.append(bb)
            Ws.append(jnp.stack(Wi))
            Bs.append(jnp.stack(Bi))
        return jnp.stack(Ws), jnp.stack(Bs)   # (NB,2,2Cp,Cp), (NB,2,1,Cp)

    Wf, Bf = pack_branch(Wf_t, Bf_t)
    Wb, Bb = pack_branch(Wb_t, Bb_t)

    w1f = pad2(w1f_t[:, :, 0].T, Cp, Cp)      # 1x1 convs as right-multiply matrices
    w1b = pad2(w1b_t[:, :, 0].T, Cp, Cp)
    b1f = pad2(b1f_t[None, :], 1, Cp)
    b1b = pad2(b1b_t[None, :], 1, Cp)

    # weight_layer scalars broadcast to lane-dense (NB, 1, Cp) (avoids SMEM scalar reads)
    wl = wl_t.reshape(NB, 1, 1) * jnp.ones((NB, 1, Cp), jnp.float32)

    Wcls = pad2(Wcls_t.T, Cp, Np)             # cls head padded to lane-dense output
    bcls = pad2(bcls_t[None, :], 1, Np)

    return (w1f, b1f, w1b, b1b, Wf, Bf, Wb, Bb, wl, Wcls, bcls)


if __name__ == "__main__":
    B, C, T = 2, 16, 32      # batch, n_filters, sequence length
    NB = 4                   # dilation rates 1, 2, 4, 8
    n_label = 8
    key = jax.random.PRNGKey(0)
    kx, kp = jax.random.split(key)
    x = jax.random.normal(kx, (B, C, T), jnp.float32)    # PyTorch NCT input
    params = init_params(kp, C, NB, n_label)

    _, logits = timnet_forward(x, params, n_label)
    logits = jax.block_until_ready(logits)

    assert logits.shape == (B, n_label)
    assert bool(jnp.all(jnp.isfinite(logits)))
    print("KERNEL_OK")
</pallas_src>

<mosaic_0001>
module attributes {stable_mosaic.version = 11 : i64} {
  func.func @timnet_kernel(%arg0: i32, %arg1: memref<1x32x128xf32, #tpu.memory_space<vmem>>, %arg2: memref<128x128xf32, #tpu.memory_space<vmem>>, %arg3: memref<1x128xf32, #tpu.memory_space<vmem>>, %arg4: memref<128x128xf32, #tpu.memory_space<vmem>>, %arg5: memref<1x128xf32, #tpu.memory_space<vmem>>, %arg6: memref<4x2x256x128xf32, #tpu.memory_space<vmem>>, %arg7: memref<4x2x1x128xf32, #tpu.memory_space<vmem>>, %arg8: memref<4x2x256x128xf32, #tpu.memory_space<vmem>>, %arg9: memref<4x2x1x128xf32, #tpu.memory_space<vmem>>, %arg10: memref<4x1x128xf32, #tpu.memory_space<vmem>>, %arg11: memref<128x128xf32, #tpu.memory_space<vmem>>, %arg12: memref<1x128xf32, #tpu.memory_space<vmem>>, %arg13: memref<1x1x128xf32, #tpu.memory_space<vmem>>) attributes {dimension_semantics = [#tpu.dimension_semantics<parallel>], iteration_bounds = array<i64: 2>, scalar_prefetch = 0 : i64, scratch_operands = 0 : i64, tpu.core_type = #tpu.core_type<tc>, window_params = [{transform_indices = @transform_0, window_bounds = array<i64: 1, 32, 128>}, {pipeline_mode = #tpu.pipeline_mode<synchronous>, transform_indices = @transform_1, window_bounds = array<i64: 128, 128>}, {pipeline_mode = #tpu.pipeline_mode<synchronous>, transform_indices = @transform_2, window_bounds = array<i64: 1, 128>}, {pipeline_mode = #tpu.pipeline_mode<synchronous>, transform_indices = @transform_3, window_bounds = array<i64: 128, 128>}, {pipeline_mode = #tpu.pipeline_mode<synchronous>, transform_indices = @transform_4, window_bounds = array<i64: 1, 128>}, {pipeline_mode = #tpu.pipeline_mode<synchronous>, transform_indices = @transform_5, window_bounds = array<i64: 4, 2, 256, 128>}, {pipeline_mode = #tpu.pipeline_mode<synchronous>, transform_indices = @transform_6, window_bounds = array<i64: 4, 2, 1, 128>}, {pipeline_mode = #tpu.pipeline_mode<synchronous>, transform_indices = @transform_7, window_bounds = array<i64: 4, 2, 256, 128>}, {pipeline_mode = #tpu.pipeline_mode<synchronous>, transform_indices = @transform_8, window_bounds = array<i64: 4, 2, 1, 128>}, {pipeline_mode = #tpu.pipeline_mode<synchronous>, transform_indices = @transform_9, window_bounds = array<i64: 4, 1, 128>}, {pipeline_mode = #tpu.pipeline_mode<synchronous>, transform_indices = @transform_10, window_bounds = array<i64: 128, 128>}, {pipeline_mode = #tpu.pipeline_mode<synchronous>, transform_indices = @transform_11, window_bounds = array<i64: 1, 128>}, {transform_indices = @transform_12, window_bounds = array<i64: 1, 1, 128>}]} {
    %0 = tpu.iota {dimensions = array<i32: 0>} : vector<32x1xi32>
    %c0 = arith.constant 0 : index
    %c0_0 = arith.constant 0 : index
    %c0_1 = arith.constant 0 : index
    %1 = vector.load %arg1[%c0, %c0_0, %c0_1] : memref<1x32x128xf32, #tpu.memory_space<vmem>>, vector<1x32x128xf32>
    %2 = vector.shape_cast %1 : vector<1x32x128xf32> to vector<32x128xf32>
    %c0_2 = arith.constant 0 : index
    %c0_3 = arith.constant 0 : index
    %3 = vector.load %arg2[%c0_2, %c0_3] : memref<128x128xf32, #tpu.memory_space<vmem>>, vector<128x128xf32>
    %cst = arith.constant dense<0.000000e+00> : vector<32x128xf32>
    %4 = tpu.matmul %2, %3, %cst {dimension_numbers = #tpu.dot_dimension_numbers<[1], [0], [0], [1], [0, 0, 1, 1], [], []>} : vector<32x128xf32>, vector<128x128xf32>, vector<32x128xf32> -> vector<32x128xf32>
    %c0_4 = arith.constant 0 : index
    %c0_5 = arith.constant 0 : index
    %5 = vector.load %arg3[%c0_4, %c0_5] : memref<1x128xf32, #tpu.memory_space<vmem>>, vector<1x128xf32>
    %6 = vector.broadcast %5 : vector<1x128xf32> to vector<32x128xf32>
    %7 = arith.addf %4, %6 : vector<32x128xf32>
    %c0_6 = arith.constant 0 : index
    %c0_7 = arith.constant 0 : index
    %8 = vector.load %arg4[%c0_6, %c0_7] : memref<128x128xf32, #tpu.memory_space<vmem>>, vector<128x128xf32>
    %cst_8 = arith.constant dense<0.000000e+00> : vector<32x128xf32>
    %9 = tpu.matmul %2, %8, %cst_8 {dimension_numbers = #tpu.dot_dimension_numbers<[1], [0], [0], [1], [0, 0, 1, 1], [], []>} : vector<32x128xf32>, vector<128x128xf32>, vector<32x128xf32> -> vector<32x128xf32>
    %c0_9 = arith.constant 0 : index
    %c0_10 = arith.constant 0 : index
    %10 = vector.load %arg5[%c0_9, %c0_10] : memref<1x128xf32, #tpu.memory_space<vmem>>, vector<1x128xf32>
    %11 = vector.broadcast %10 : vector<1x128xf32> to vector<32x128xf32>
    %12 = arith.addf %9, %11 : vector<32x128xf32>
    %cst_11 = arith.constant 0.000000e+00 : f32
    %13 = vector.broadcast %cst_11 : f32 to vector<1x128xf32>
    %c0_12 = arith.constant 0 : index
    %c0_13 = arith.constant 0 : index
    %c0_14 = arith.constant 0 : index
    %c0_15 = arith.constant 0 : index
    %14 = vector.load %arg6[%c0_12, %c0_13, %c0_14, %c0_15] : memref<4x2x256x128xf32, #tpu.memory_space<vmem>>, vector<1x1x256x128xf32>
    %15 = vector.shape_cast %14 : vector<1x1x256x128xf32> to vector<256x128xf32>
    %c0_16 = arith.constant 0 : index
    %c0_17 = arith.constant 0 : index
    %c0_18 = arith.constant 0 : index
    %c0_19 = arith.constant 0 : index
    %16 = vector.load %arg7[%c0_16, %c0_17, %c0_18, %c0_19] : memref<4x2x1x128xf32, #tpu.memory_space<vmem>>, vector<1x1x1x128xf32>
    %17 = vector.shape_cast %16 : vector<1x1x1x128xf32> to vector<1x128xf32>
    %c1_i32 = arith.constant 1 : i32
    %18 = tpu.dynamic_rotate %7 by %c1_i32 dim 0 : vector<32x128xf32>, i32 -> vector<32x128xf32>
    %c1_i32_20 = arith.constant 1 : i32
    %19 = vector.broadcast %c1_i32_20 : i32 to vector<32x1xi32>
    %20 = arith.cmpi sge, %0, %19 : vector<32x1xi32>
    %cst_21 = arith.constant 0.000000e+00 : f32
    %21 = vector.shape_cast %20 : vector<32x1xi1> to vector<32x1xi1>
    %22 = vector.broadcast %21 : vector<32x1xi1> to vector<32x128xi1>
    %23 = vector.broadcast %cst_21 : f32 to vector<32x128xf32>
    %24 = arith.select %22, %18, %23 : vector<32x128xi1>, vector<32x128xf32>
    %25 = tpu.concatenate %24, %7 in 1 : vector<32x128xf32>, vector<32x128xf32> -> vector<32x256xf32>
    %cst_22 = arith.constant dense<0.000000e+00> : vector<32x128xf32>
    %26 = tpu.matmul %25, %15, %cst_22 {dimension_numbers = #tpu.dot_dimension_numbers<[1], [0], [0], [1], [0, 0, 1, 1], [], []>} : vector<32x256xf32>, vector<256x128xf32>, vector<32x128xf32> -> vector<32x128xf32>
    %27 = vector.broadcast %17 : vector<1x128xf32> to vector<32x128xf32>
    %28 = arith.addf %26, %27 : vector<32x128xf32>
    %cst_23 = arith.constant 0.000000e+00 : f32
    %29 = vector.broadcast %cst_23 : f32 to vector<32x128xf32>
    %30 = arith.maximumf %28, %29 : vector<32x128xf32>
    %c0_24 = arith.constant 0 : index
    %c1 = arith.constant 1 : index
    %c0_25 = arith.constant 0 : index
    %c0_26 = arith.constant 0 : index
    %31 = vector.load %arg6[%c0_24, %c1, %c0_25, %c0_26] : memref<4x2x256x128xf32, #tpu.memory_space<vmem>>, vector<1x1x256x128xf32>
    %32 = vector.shape_cast %31 : vector<1x1x256x128xf32> to vector<256x128xf32>
    %c0_27 = arith.constant 0 : index
    %c1_28 = arith.constant 1 : index
    %c0_29 = arith.constant 0 : index
    %c0_30 = arith.constant 0 : index
    %33 = vector.load %arg7[%c0_27, %c1_28, %c0_29, %c0_30] : memref<4x2x1x128xf32, #tpu.memory_space<vmem>>, vector<1x1x1x128xf32>
    %34 = vector.shape_cast %33 : vector<1x1x1x128xf32> to vector<1x128xf32>
    %c1_i32_31 = arith.constant 1 : i32
    %35 = tpu.dynamic_rotate %30 by %c1_i32_31 dim 0 : vector<32x128xf32>, i32 -> vector<32x128xf32>
    %c1_i32_32 = arith.constant 1 : i32
    %36 = vector.broadcast %c1_i32_32 : i32 to vector<32x1xi32>
    %37 = arith.cmpi sge, %0, %36 : vector<32x1xi32>
    %cst_33 = arith.constant 0.000000e+00 : f32
    %38 = vector.shape_cast %37 : vector<32x1xi1> to vector<32x1xi1>
    %39 = vector.broadcast %38 : vector<32x1xi1> to vector<32x128xi1>
    %40 = vector.broadcast %cst_33 : f32 to vector<32x128xf32>
    %41 = arith.select %39, %35, %40 : vector<32x128xi1>, vector<32x128xf32>
    %42 = tpu.concatenate %41, %30 in 1 : vector<32x128xf32>, vector<32x128xf32> -> vector<32x256xf32>
    %cst_34 = arith.constant dense<0.000000e+00> : vector<32x128xf32>
    %43 = tpu.matmul %42, %32, %cst_34 {dimension_numbers = #tpu.dot_dimension_numbers<[1], [0], [0], [1], [0, 0, 1, 1], [], []>} : vector<32x256xf32>, vector<256x128xf32>, vector<32x128xf32> -> vector<32x128xf32>
    %44 = vector.broadcast %34 : vector<1x128xf32> to vector<32x128xf32>
    %45 = arith.addf %43, %44 : vector<32x128xf32>
    %cst_35 = arith.constant 0.000000e+00 : f32
    %46 = vector.broadcast %cst_35 : f32 to vector<32x128xf32>
    %47 = arith.maximumf %45, %46 : vector<32x128xf32>
    %48 = arith.negf %47 : vector<32x128xf32>
    %49 = math.exp %48 : vector<32x128xf32>
    %cst_36 = arith.constant 1.000000e+00 : f32
    %50 = vector.broadcast %cst_36 : f32 to vector<32x128xf32>
    %51 = arith.addf %50, %49 : vector<32x128xf32>
    %52 = arith.divf %50, %51 : vector<32x128xf32>
    %53 = arith.mulf %7, %52 : vector<32x128xf32>
    %c0_37 = arith.constant 0 : index
    %c0_38 = arith.constant 0 : index
    %c0_39 = arith.constant 0 : index
    %c0_40 = arith.constant 0 : index
    %54 = vector.load %arg8[%c0_37, %c0_38, %c0_39, %c0_40] : memref<4x2x256x128xf32, #tpu.memory_space<vmem>>, vector<1x1x256x128xf32>
    %55 = vector.shape_cast %54 : vector<1x1x256x128xf32> to vector<256x128xf32>
    %c0_41 = arith.constant 0 : index
    %c0_42 = arith.constant 0 : index
    %c0_43 = arith.constant 0 : index
    %c0_44 = arith.constant 0 : index
    %56 = vector.load %arg9[%c0_41, %c0_42, %c0_43, %c0_44] : memref<4x2x1x128xf32, #tpu.memory_space<vmem>>, vector<1x1x1x128xf32>
    %57 = vector.shape_cast %56 : vector<1x1x1x128xf32> to vector<1x128xf32>
    %c31_i32 = arith.constant 31 : i32
    %58 = tpu.dynamic_rotate %12 by %c31_i32 dim 0 : vector<32x128xf32>, i32 -> vector<32x128xf32>
    %c31_i32_45 = arith.constant 31 : i32
    %59 = vector.broadcast %c31_i32_45 : i32 to vector<32x1xi32>
    %60 = arith.cmpi slt, %0, %59 : vector<32x1xi32>
    %cst_46 = arith.constant 0.000000e+00 : f32
    %61 = vector.shape_cast %60 : vector<32x1xi1> to vector<32x1xi1>
    %62 = vector.broadcast %61 : vector<32x1xi1> to vector<32x128xi1>
    %63 = vector.broadcast %cst_46 : f32 to vector<32x128xf32>
    %64 = arith.select %62, %58, %63 : vector<32x128xi1>, vector<32x128xf32>
    %65 = tpu.concatenate %64, %12 in 1 : vector<32x128xf32>, vector<32x128xf32> -> vector<32x256xf32>
    %cst_47 = arith.constant dense<0.000000e+00> : vector<32x128xf32>
    %66 = tpu.matmul %65, %55, %cst_47 {dimension_numbers = #tpu.dot_dimension_numbers<[1], [0], [0], [1], [0, 0, 1, 1], [], []>} : vector<32x256xf32>, vector<256x128xf32>, vector<32x128xf32> -> vector<32x128xf32>
    %67 = vector.broadcast %57 : vector<1x128xf32> to vector<32x128xf32>
    %68 = arith.addf %66, %67 : vector<32x128xf32>
    %cst_48 = arith.constant 0.000000e+00 : f32
    %69 = vector.broadcast %cst_48 : f32 to vector<32x128xf32>
    %70 = arith.maximumf %68, %69 : vector<32x128xf32>
    %c0_49 = arith.constant 0 : index
    %c1_50 = arith.constant 1 : index
    %c0_51 = arith.constant 0 : index
    %c0_52 = arith.constant 0 : index
    %71 = vector.load %arg8[%c0_49, %c1_50, %c0_51, %c0_52] : memref<4x2x256x128xf32, #tpu.memory_space<vmem>>, vector<1x1x256x128xf32>
    %72 = vector.shape_cast %71 : vector<1x1x256x128xf32> to vector<256x128xf32>
    %c0_53 = arith.constant 0 : index
    %c1_54 = arith.constant 1 : index
    %c0_55 = arith.constant 0 : index
    %c0_56 = arith.constant 0 : index
    %73 = vector.load %arg9[%c0_53, %c1_54, %c0_55, %c0_56] : memref<4x2x1x128xf32, #tpu.memory_space<vmem>>, vector<1x1x1x128xf32>
    %74 = vector.shape_cast %73 : vector<1x1x1x128xf32> to vector<1x128xf32>
    %c31_i32_57 = arith.constant 31 : i32
    %75 = tpu.dynamic_rotate %70 by %c31_i32_57 dim 0 : vector<32x128xf32>, i32 -> vector<32x128xf32>
    %c31_i32_58 = arith.constant 31 : i32
    %76 = vector.broadcast %c31_i32_58 : i32 to vector<32x1xi32>
    %77 = arith.cmpi slt, %0, %76 : vector<32x1xi32>
    %cst_59 = arith.constant 0.000000e+00 : f32
    %78 = vector.shape_cast %77 : vector<32x1xi1> to vector<32x1xi1>
    %79 = vector.broadcast %78 : vector<32x1xi1> to vector<32x128xi1>
    %80 = vector.broadcast %cst_59 : f32 to vector<32x128xf32>
    %81 = arith.select %79, %75, %80 : vector<32x128xi1>, vector<32x128xf32>
    %82 = tpu.concatenate %81, %70 in 1 : vector<32x128xf32>, vector<32x128xf32> -> vector<32x256xf32>
    %cst_60 = arith.constant dense<0.000000e+00> : vector<32x128xf32>
    %83 = tpu.matmul %82, %72, %cst_60 {dimension_numbers = #tpu.dot_dimension_numbers<[1], [0], [0], [1], [0, 0, 1, 1], [], []>} : vector<32x256xf32>, vector<256x128xf32>, vector<32x128xf32> -> vector<32x128xf32>
    %84 = vector.broadcast %74 : vector<1x128xf32> to vector<32x128xf32>
    %85 = arith.addf %83, %84 : vector<32x128xf32>
    %cst_61 = arith.constant 0.000000e+00 : f32
    %86 = vector.broadcast %cst_61 : f32 to vector<32x128xf32>
    %87 = arith.maximumf %85, %86 : vector<32x128xf32>
    %88 = arith.negf %87 : vector<32x128xf32>
    %89 = math.exp %88 : vector<32x128xf32>
    %cst_62 = arith.constant 1.000000e+00 : f32
    %90 = vector.broadcast %cst_62 : f32 to vector<32x128xf32>
    %91 = arith.addf %90, %89 : vector<32x128xf32>
    %92 = arith.divf %90, %91 : vector<32x128xf32>
    %93 = arith.mulf %12, %92 : vector<32x128xf32>
    %94 = arith.addf %53, %93 : vector<32x128xf32>
    %cst_63 = arith.constant dense<0.000000e+00> : vector<128xf32>
    %95 = vector.multi_reduction <add>, %94, %cst_63 [0] : vector<32x128xf32> to vector<128xf32>
    %96 = vector.shape_cast %95 : vector<128xf32> to vector<1x128xf32>
    %cst_64 = arith.constant 3.200000e+01 : f32
    %97 = vector.broadcast %cst_64 : f32 to vector<1x128xf32>
    %98 = arith.divf %96, %97 : vector<1x128xf32>
    %c0_65 = arith.constant 0 : index
    %c0_66 = arith.constant 0 : index
    %c0_67 = arith.constant 0 : index
    %99 = vector.load %arg10[%c0_65, %c0_66, %c0_67] : memref<4x1x128xf32, #tpu.memory_space<vmem>>, vector<1x1x128xf32>
    %100 = vector.shape_cast %99 : vector<1x1x128xf32> to vector<1x128xf32>
    %101 = arith.mulf %98, %100 : vector<1x128xf32>
    %102 = arith.addf %13, %101 : vector<1x128xf32>
    %c1_68 = arith.constant 1 : index
    %c0_69 = arith.constant 0 : index
    %c0_70 = arith.constant 0 : index
    %c0_71 = arith.constant 0 : index
    %103 = vector.load %arg6[%c1_68, %c0_69, %c0_70, %c0_71] : memref<4x2x256x128xf32, #tpu.memory_space<vmem>>, vector<1x1x256x128xf32>
    %104 = vector.shape_cast %103 : vector<1x1x256x128xf32> to vector<256x128xf32>
    %c1_72 = arith.constant 1 : index
    %c0_73 = arith.constant 0 : index
    %c0_74 = arith.constant 0 : index
    %c0_75 = arith.constant 0 : index
    %105 = vector.load %arg7[%c1_72, %c0_73, %c0_74, %c0_75] : memref<4x2x1x128xf32, #tpu.memory_space<vmem>>, vector<1x1x1x128xf32>
    %106 = vector.shape_cast %105 : vector<1x1x1x128xf32> to vector<1x128xf32>
    %c2_i32 = arith.constant 2 : i32
    %107 = tpu.dynamic_rotate %53 by %c2_i32 dim 0 : vector<32x128xf32>, i32 -> vector<32x128xf32>
    %c2_i32_76 = arith.constant 2 : i32
    %108 = vector.broadcast %c2_i32_76 : i32 to vector<32x1xi32>
    %109 = arith.cmpi sge, %0, %108 : vector<32x1xi32>
    %cst_77 = arith.constant 0.000000e+00 : f32
    %110 = vector.shape_cast %109 : vector<32x1xi1> to vector<32x1xi1>
    %111 = vector.broadcast %110 : vector<32x1xi1> to vector<32x128xi1>
    %112 = vector.broadcast %cst_77 : f32 to vector<32x128xf32>
    %113 = arith.select %111, %107, %112 : vector<32x128xi1>, vector<32x128xf32>
    %114 = tpu.concatenate %113, %53 in 1 : vector<32x128xf32>, vector<32x128xf32> -> vector<32x256xf32>
    %cst_78 = arith.constant dense<0.000000e+00> : vector<32x128xf32>
    %115 = tpu.matmul %114, %104, %cst_78 {dimension_numbers = #tpu.dot_dimension_numbers<[1], [0], [0], [1], [0, 0, 1, 1], [], []>} : vector<32x256xf32>, vector<256x128xf32>, vector<32x128xf32> -> vector<32x128xf32>
    %116 = vector.broadcast %106 : vector<1x128xf32> to vector<32x128xf32>
    %117 = arith.addf %115, %116 : vector<32x128xf32>
    %cst_79 = arith.constant 0.000000e+00 : f32
    %118 = vector.broadcast %cst_79 : f32 to vector<32x128xf32>
    %119 = arith.maximumf %117, %118 : vector<32x128xf32>
    %c1_80 = arith.constant 1 : index
    %c1_81 = arith.constant 1 : index
    %c0_82 = arith.constant 0 : index
    %c0_83 = arith.constant 0 : index
    %120 = vector.load %arg6[%c1_80, %c1_81, %c0_82, %c0_83] : memref<4x2x256x128xf32, #tpu.memory_space<vmem>>, vector<1x1x256x128xf32>
    %121 = vector.shape_cast %120 : vector<1x1x256x128xf32> to vector<256x128xf32>
    %c1_84 = arith.constant 1 : index
    %c1_85 = arith.constant 1 : index
    %c0_86 = arith.constant 0 : index
    %c0_87 = arith.constant 0 : index
    %122 = vector.load %arg7[%c1_84, %c1_85, %c0_86, %c0_87] : memref<4x2x1x128xf32, #tpu.memory_space<vmem>>, vector<1x1x1x128xf32>
    %123 = vector.shape_cast %122 : vector<1x1x1x128xf32> to vector<1x128xf32>
    %c2_i32_88 = arith.constant 2 : i32
    %124 = tpu.dynamic_rotate %119 by %c2_i32_88 dim 0 : vector<32x128xf32>, i32 -> vector<32x128xf32>
    %c2_i32_89 = arith.constant 2 : i32
    %125 = vector.broadcast %c2_i32_89 : i32 to vector<32x1xi32>
    %126 = arith.cmpi sge, %0, %125 : vector<32x1xi32>
    %cst_90 = arith.constant 0.000000e+00 : f32
    %127 = vector.shape_cast %126 : vector<32x1xi1> to vector<32x1xi1>
    %128 = vector.broadcast %127 : vector<32x1xi1> to vector<32x128xi1>
    %129 = vector.broadcast %cst_90 : f32 to vector<32x128xf32>
    %130 = arith.select %128, %124, %129 : vector<32x128xi1>, vector<32x128xf32>
    %131 = tpu.concatenate %130, %119 in 1 : vector<32x128xf32>, vector<32x128xf32> -> vector<32x256xf32>
    %cst_91 = arith.constant dense<0.000000e+00> : vector<32x128xf32>
    %132 = tpu.matmul %131, %121, %cst_91 {dimension_numbers = #tpu.dot_dimension_numbers<[1], [0], [0], [1], [0, 0, 1, 1], [], []>} : vector<32x256xf32>, vector<256x128xf32>, vector<32x128xf32> -> vector<32x128xf32>
    %133 = vector.broadcast %123 : vector<1x128xf32> to vector<32x128xf32>
    %134 = arith.addf %132, %133 : vector<32x128xf32>
    %cst_92 = arith.constant 0.000000e+00 : f32
    %135 = vector.broadcast %cst_92 : f32 to vector<32x128xf32>
    %136 = arith.maximumf %134, %135 : vector<32x128xf32>
    %137 = arith.negf %136 : vector<32x128xf32>
    %138 = math.exp %137 : vector<32x128xf32>
    %cst_93 = arith.constant 1.000000e+00 : f32
    %139 = vector.broadcast %cst_93 : f32 to vector<32x128xf32>
    %140 = arith.addf %139, %138 : vector<32x128xf32>
    %141 = arith.divf %139, %140 : vector<32x128xf32>
    %142 = arith.mulf %53, %141 : vector<32x128xf32>
    %c1_94 = arith.constant 1 : index
    %c0_95 = arith.constant 0 : index
    %c0_96 = arith.constant 0 : index
    %c0_97 = arith.constant 0 : index
    %143 = vector.load %arg8[%c1_94, %c0_95, %c0_96, %c0_97] : memref<4x2x256x128xf32, #tpu.memory_space<vmem>>, vector<1x1x256x128xf32>
    %144 = vector.shape_cast %143 : vector<1x1x256x128xf32> to vector<256x128xf32>
    %c1_98 = arith.constant 1 : index
    %c0_99 = arith.constant 0 : index
    %c0_100 = arith.constant 0 : index
    %c0_101 = arith.constant 0 : index
    %145 = vector.load %arg9[%c1_98, %c0_99, %c0_100, %c0_101] : memref<4x2x1x128xf32, #tpu.memory_space<vmem>>, vector<1x1x1x128xf32>
    %146 = vector.shape_cast %145 : vector<1x1x1x128xf32> to vector<1x128xf32>
    %c30_i32 = arith.constant 30 : i32
    %147 = tpu.dynamic_rotate %93 by %c30_i32 dim 0 : vector<32x128xf32>, i32 -> vector<32x128xf32>
    %c30_i32_102 = arith.constant 30 : i32
    %148 = vector.broadcast %c30_i32_102 : i32 to vector<32x1xi32>
    %149 = arith.cmpi slt, %0, %148 : vector<32x1xi32>
    %cst_103 = arith.constant 0.000000e+00 : f32
    %150 = vector.shape_cast %149 : vector<32x1xi1> to vector<32x1xi1>
    %151 = vector.broadcast %150 : vector<32x1xi1> to vector<32x128xi1>
    %152 = vector.broadcast %cst_103 : f32 to vector<32x128xf32>
    %153 = arith.select %151, %147, %152 : vector<32x128xi1>, vector<32x128xf32>
    %154 = tpu.concatenate %153, %93 in 1 : vector<32x128xf32>, vector<32x128xf32> -> vector<32x256xf32>
    %cst_104 = arith.constant dense<0.000000e+00> : vector<32x128xf32>
    %155 = tpu.matmul %154, %144, %cst_104 {dimension_numbers = #tpu.dot_dimension_numbers<[1], [0], [0], [1], [0, 0, 1, 1], [], []>} : vector<32x256xf32>, vector<256x128xf32>, vector<32x128xf32> -> vector<32x128xf32>
    %156 = vector.broadcast %146 : vector<1x128xf32> to vector<32x128xf32>
    %157 = arith.addf %155, %156 : vector<32x128xf32>
    %cst_105 = arith.constant 0.000000e+00 : f32
    %158 = vector.broadcast %cst_105 : f32 to vector<32x128xf32>
    %159 = arith.maximumf %157, %158 : vector<32x128xf32>
    %c1_106 = arith.constant 1 : index
    %c1_107 = arith.constant 1 : index
    %c0_108 = arith.constant 0 : index
    %c0_109 = arith.constant 0 : index
    %160 = vector.load %arg8[%c1_106, %c1_107, %c0_108, %c0_109] : memref<4x2x256x128xf32, #tpu.memory_space<vmem>>, vector<1x1x256x128xf32>
    %161 = vector.shape_cast %160 : vector<1x1x256x128xf32> to vector<256x128xf32>
    %c1_110 = arith.constant 1 : index
    %c1_111 = arith.constant 1 : index
    %c0_112 = arith.constant 0 : index
    %c0_113 = arith.constant 0 : index
    %162 = vector.load %arg9[%c1_110, %c1_111, %c0_112, %c0_113] : memref<4x2x1x128xf32, #tpu.memory_space<vmem>>, vector<1x1x1x128xf32>
    %163 = vector.shape_cast %162 : vector<1x1x1x128xf32> to vector<1x128xf32>
    %c30_i32_114 = arith.constant 30 : i32
    %164 = tpu.dynamic_rotate %159 by %c30_i32_114 dim 0 : vector<32x128xf32>, i32 -> vector<32x128xf32>
    %c30_i32_115 = arith.constant 30 : i32
    %165 = vector.broadcast %c30_i32_115 : i32 to vector<32x1xi32>
    %166 = arith.cmpi slt, %0, %165 : vector<32x1xi32>
    %cst_116 = arith.constant 0.000000e+00 : f32
    %167 = vector.shape_cast %166 : vector<32x1xi1> to vector<32x1xi1>
    %168 = vector.broadcast %167 : vector<32x1xi1> to vector<32x128xi1>
    %169 = vector.broadcast %cst_116 : f32 to vector<32x128xf32>
    %170 = arith.select %168, %164, %169 : vector<32x128xi1>, vector<32x128xf32>
    %171 = tpu.concatenate %170, %159 in 1 : vector<32x128xf32>, vector<32x128xf32> -> vector<32x256xf32>
    %cst_117 = arith.constant dense<0.000000e+00> : vector<32x128xf32>
    %172 = tpu.matmul %171, %161, %cst_117 {dimension_numbers = #tpu.dot_dimension_numbers<[1], [0], [0], [1], [0, 0, 1, 1], [], []>} : vector<32x256xf32>, vector<256x128xf32>, vector<32x128xf32> -> vector<32x128xf32>
    %173 = vector.broadcast %163 : vector<1x128xf32> to vector<32x128xf32>
    %174 = arith.addf %172, %173 : vector<32x128xf32>
    %cst_118 = arith.constant 0.000000e+00 : f32
    %175 = vector.broadcast %cst_118 : f32 to vector<32x128xf32>
    %176 = arith.maximumf %174, %175 : vector<32x128xf32>
    %177 = arith.negf %176 : vector<32x128xf32>
    %178 = math.exp %177 : vector<32x128xf32>
    %cst_119 = arith.constant 1.000000e+00 : f32
    %179 = vector.broadcast %cst_119 : f32 to vector<32x128xf32>
    %180 = arith.addf %179, %178 : vector<32x128xf32>
    %181 = arith.divf %179, %180 : vector<32x128xf32>
    %182 = arith.mulf %93, %181 : vector<32x128xf32>
    %183 = arith.addf %142, %182 : vector<32x128xf32>
    %cst_120 = arith.constant dense<0.000000e+00> : vector<128xf32>
    %184 = vector.multi_reduction <add>, %183, %cst_120 [0] : vector<32x128xf32> to vector<128xf32>
    %185 = vector.shape_cast %184 : vector<128xf32> to vector<1x128xf32>
    %cst_121 = arith.constant 3.200000e+01 : f32
    %186 = vector.broadcast %cst_121 : f32 to vector<1x128xf32>
    %187 = arith.divf %185, %186 : vector<1x128xf32>
    %c1_122 = arith.constant 1 : index
    %c0_123 = arith.constant 0 : index
    %c0_124 = arith.constant 0 : index
    %188 = vector.load %arg10[%c1_122, %c0_123, %c0_124] : memref<4x1x128xf32, #tpu.memory_space<vmem>>, vector<1x1x128xf32>
    %189 = vector.shape_cast %188 : vector<1x1x128xf32> to vector<1x128xf32>
    %190 = arith.mulf %187, %189 : vector<1x128xf32>
    %191 = arith.addf %102, %190 : vector<1x128xf32>
    %c2 = arith.constant 2 : index
    %c0_125 = arith.constant 0 : index
    %c0_126 = arith.constant 0 : index
    %c0_127 = arith.constant 0 : index
    %192 = vector.load %arg6[%c2, %c0_125, %c0_126, %c0_127] : memref<4x2x256x128xf32, #tpu.memory_space<vmem>>, vector<1x1x256x128xf32>
    %193 = vector.shape_cast %192 : vector<1x1x256x128xf32> to vector<256x128xf32>
    %c2_128 = arith.constant 2 : index
    %c0_129 = arith.constant 0 : index
    %c0_130 = arith.constant 0 : index
    %c0_131 = arith.constant 0 : index
    %194 = vector.load %arg7[%c2_128, %c0_129, %c0_130, %c0_131] : memref<4x2x1x128xf32, #tpu.memory_space<vmem>>, vector<1x1x1x128xf32>
    %195 = vector.shape_cast %194 : vector<1x1x1x128xf32> to vector<1x128xf32>
    %c4_i32 = arith.constant 4 : i32
    %196 = tpu.dynamic_rotate %142 by %c4_i32 dim 0 : vector<32x128xf32>, i32 -> vector<32x128xf32>
    %c4_i32_132 = arith.constant 4 : i32
    %197 = vector.broadcast %c4_i32_132 : i32 to vector<32x1xi32>
    %198 = arith.cmpi sge, %0, %197 : vector<32x1xi32>
    %cst_133 = arith.constant 0.000000e+00 : f32
    %199 = vector.shape_cast %198 : vector<32x1xi1> to vector<32x1xi1>
    %200 = vector.broadcast %199 : vector<32x1xi1> to vector<32x128xi1>
    %201 = vector.broadcast %cst_133 : f32 to vector<32x128xf32>
    %202 = arith.select %200, %196, %201 : vector<32x128xi1>, vector<32x128xf32>
    %203 = tpu.concatenate %202, %142 in 1 : vector<32x128xf32>, vector<32x128xf32> -> vector<32x256xf32>
    %cst_134 = arith.constant dense<0.000000e+00> : vector<32x128xf32>
    %204 = tpu.matmul %203, %193, %cst_134 {dimension_numbers = #tpu.dot_dimension_numbers<[1], [0], [0], [1], [0, 0, 1, 1], [], []>} : vector<32x256xf32>, vector<256x128xf32>, vector<32x128xf32> -> vector<32x128xf32>
    %205 = vector.broadcast %195 : vector<1x128xf32> to vector<32x128xf32>
    %206 = arith.addf %204, %205 : vector<32x128xf32>
    %cst_135 = arith.constant 0.000000e+00 : f32
    %207 = vector.broadcast %cst_135 : f32 to vector<32x128xf32>
    %208 = arith.maximumf %206, %207 : vector<32x128xf32>
    %c2_136 = arith.constant 2 : index
    %c1_137 = arith.constant 1 : index
    %c0_138 = arith.constant 0 : index
    %c0_139 = arith.constant 0 : index
    %209 = vector.load %arg6[%c2_136, %c1_137, %c0_138, %c0_139] : memref<4x2x256x128xf32, #tpu.memory_space<vmem>>, vector<1x1x256x128xf32>
    %210 = vector.shape_cast %209 : vector<1x1x256x128xf32> to vector<256x128xf32>
    %c2_140 = arith.constant 2 : index
    %c1_141 = arith.constant 1 : index
    %c0_142 = arith.constant 0 : index
    %c0_143 = arith.constant 0 : index
    %211 = vector.load %arg7[%c2_140, %c1_141, %c0_142, %c0_143] : memref<4x2x1x128xf32, #tpu.memory_space<vmem>>, vector<1x1x1x128xf32>
    %212 = vector.shape_cast %211 : vector<1x1x1x128xf32> to vector<1x128xf32>
    %c4_i32_144 = arith.constant 4 : i32
    %213 = tpu.dynamic_rotate %208 by %c4_i32_144 dim 0 : vector<32x128xf32>, i32 -> vector<32x128xf32>
    %c4_i32_145 = arith.constant 4 : i32
    %214 = vector.broadcast %c4_i32_145 : i32 to vector<32x1xi32>
    %215 = arith.cmpi sge, %0, %214 : vector<32x1xi32>
    %cst_146 = arith.constant 0.000000e+00 : f32
    %216 = vector.shape_cast %215 : vector<32x1xi1> to vector<32x1xi1>
    %217 = vector.broadcast %216 : vector<32x1xi1> to vector<32x128xi1>
    %218 = vector.broadcast %cst_146 : f32 to vector<32x128xf32>
    %219 = arith.select %217, %213, %218 : vector<32x128xi1>, vector<32x128xf32>
    %220 = tpu.concatenate %219, %208 in 1 : vector<32x128xf32>, vector<32x128xf32> -> vector<32x256xf32>
    %cst_147 = arith.constant dense<0.000000e+00> : vector<32x128xf32>
    %221 = tpu.matmul %220, %210, %cst_147 {dimension_numbers = #tpu.dot_dimension_numbers<[1], [0], [0], [1], [0, 0, 1, 1], [], []>} : vector<32x256xf32>, vector<256x128xf32>, vector<32x128xf32> -> vector<32x128xf32>
    %222 = vector.broadcast %212 : vector<1x128xf32> to vector<32x128xf32>
    %223 = arith.addf %221, %222 : vector<32x128xf32>
    %cst_148 = arith.constant 0.000000e+00 : f32
    %224 = vector.broadcast %cst_148 : f32 to vector<32x128xf32>
    %225 = arith.maximumf %223, %224 : vector<32x128xf32>
    %226 = arith.negf %225 : vector<32x128xf32>
    %227 = math.exp %226 : vector<32x128xf32>
    %cst_149 = arith.constant 1.000000e+00 : f32
    %228 = vector.broadcast %cst_149 : f32 to vector<32x128xf32>
    %229 = arith.addf %228, %227 : vector<32x128xf32>
    %230 = arith.divf %228, %229 : vector<32x128xf32>
    %231 = arith.mulf %142, %230 : vector<32x128xf32>
    %c2_150 = arith.constant 2 : index
    %c0_151 = arith.constant 0 : index
    %c0_152 = arith.constant 0 : index
    %c0_153 = arith.constant 0 : index
    %232 = vector.load %arg8[%c2_150, %c0_151, %c0_152, %c0_153] : memref<4x2x256x128xf32, #tpu.memory_space<vmem>>, vector<1x1x256x128xf32>
    %233 = vector.shape_cast %232 : vector<1x1x256x128xf32> to vector<256x128xf32>
    %c2_154 = arith.constant 2 : index
    %c0_155 = arith.constant 0 : index
    %c0_156 = arith.constant 0 : index
    %c0_157 = arith.constant 0 : index
    %234 = vector.load %arg9[%c2_154, %c0_155, %c0_156, %c0_157] : memref<4x2x1x128xf32, #tpu.memory_space<vmem>>, vector<1x1x1x128xf32>
    %235 = vector.shape_cast %234 : vector<1x1x1x128xf32> to vector<1x128xf32>
    %c28_i32 = arith.constant 28 : i32
    %236 = tpu.dynamic_rotate %182 by %c28_i32 dim 0 : vector<32x128xf32>, i32 -> vector<32x128xf32>
    %c28_i32_158 = arith.constant 28 : i32
    %237 = vector.broadcast %c28_i32_158 : i32 to vector<32x1xi32>
    %238 = arith.cmpi slt, %0, %237 : vector<32x1xi32>
    %cst_159 = arith.constant 0.000000e+00 : f32
    %239 = vector.shape_cast %238 : vector<32x1xi1> to vector<32x1xi1>
    %240 = vector.broadcast %239 : vector<32x1xi1> to vector<32x128xi1>
    %241 = vector.broadcast %cst_159 : f32 to vector<32x128xf32>
    %242 = arith.select %240, %236, %241 : vector<32x128xi1>, vector<32x128xf32>
    %243 = tpu.concatenate %242, %182 in 1 : vector<32x128xf32>, vector<32x128xf32> -> vector<32x256xf32>
    %cst_160 = arith.constant dense<0.000000e+00> : vector<32x128xf32>
    %244 = tpu.matmul %243, %233, %cst_160 {dimension_numbers = #tpu.dot_dimension_numbers<[1], [0], [0], [1], [0, 0, 1, 1], [], []>} : vector<32x256xf32>, vector<256x128xf32>, vector<32x128xf32> -> vector<32x128xf32>
    %245 = vector.broadcast %235 : vector<1x128xf32> to vector<32x128xf32>
    %246 = arith.addf %244, %245 : vector<32x128xf32>
    %cst_161 = arith.constant 0.000000e+00 : f32
    %247 = vector.broadcast %cst_161 : f32 to vector<32x128xf32>
    %248 = arith.maximumf %246, %247 : vector<32x128xf32>
    %c2_162 = arith.constant 2 : index
    %c1_163 = arith.constant 1 : index
    %c0_164 = arith.constant 0 : index
    %c0_165 = arith.constant 0 : index
    %249 = vector.load %arg8[%c2_162, %c1_163, %c0_164, %c0_165] : memref<4x2x256x128xf32, #tpu.memory_space<vmem>>, vector<1x1x256x128xf32>
    %250 = vector.shape_cast %249 : vector<1x1x256x128xf32> to vector<256x128xf32>
    %c2_166 = arith.constant 2 : index
    %c1_167 = arith.constant 1 : index
    %c0_168 = arith.constant 0 : index
    %c0_169 = arith.constant 0 : index
    %251 = vector.load %arg9[%c2_166, %c1_167, %c0_168, %c0_169] : memref<4x2x1x128xf32, #tpu.memory_space<vmem>>, vector<1x1x1x128xf32>
    %252 = vector.shape_cast %251 : vector<1x1x1x128xf32> to vector<1x128xf32>
    %c28_i32_170 = arith.constant 28 : i32
    %253 = tpu.dynamic_rotate %248 by %c28_i32_170 dim 0 : vector<32x128xf32>, i32 -> vector<32x128xf32>
    %c28_i32_171 = arith.constant 28 : i32
    %254 = vector.broadcast %c28_i32_171 : i32 to vector<32x1xi32>
    %255 = arith.cmpi slt, %0, %254 : vector<32x1xi32>
    %cst_172 = arith.constant 0.000000e+00 : f32
    %256 = vector.shape_cast %255 : vector<32x1xi1> to vector<32x1xi1>
    %257 = vector.broadcast %256 : vector<32x1xi1> to vector<32x128xi1>
    %258 = vector.broadcast %cst_172 : f32 to vector<32x128xf32>
    %259 = arith.select %257, %253, %258 : vector<32x128xi1>, vector<32x128xf32>
    %260 = tpu.concatenate %259, %248 in 1 : vector<32x128xf32>, vector<32x128xf32> -> vector<32x256xf32>
    %cst_173 = arith.constant dense<0.000000e+00> : vector<32x128xf32>
    %261 = tpu.matmul %260, %250, %cst_173 {dimension_numbers = #tpu.dot_dimension_numbers<[1], [0], [0], [1], [0, 0, 1, 1], [], []>} : vector<32x256xf32>, vector<256x128xf32>, vector<32x128xf32> -> vector<32x128xf32>
    %262 = vector.broadcast %252 : vector<1x128xf32> to vector<32x128xf32>
    %263 = arith.addf %261, %262 : vector<32x128xf32>
    %cst_174 = arith.constant 0.000000e+00 : f32
    %264 = vector.broadcast %cst_174 : f32 to vector<32x128xf32>
    %265 = arith.maximumf %263, %264 : vector<32x128xf32>
    %266 = arith.negf %265 : vector<32x128xf32>
    %267 = math.exp %266 : vector<32x128xf32>
    %cst_175 = arith.constant 1.000000e+00 : f32
    %268 = vector.broadcast %cst_175 : f32 to vector<32x128xf32>
    %269 = arith.addf %268, %267 : vector<32x128xf32>
    %270 = arith.divf %268, %269 : vector<32x128xf32>
    %271 = arith.mulf %182, %270 : vector<32x128xf32>
    %272 = arith.addf %231, %271 : vector<32x128xf32>
    %cst_176 = arith.constant dense<0.000000e+00> : vector<128xf32>
    %273 = vector.multi_reduction <add>, %272, %cst_176 [0] : vector<32x128xf32> to vector<128xf32>
    %274 = vector.shape_cast %273 : vector<128xf32> to vector<1x128xf32>
    %cst_177 = arith.constant 3.200000e+01 : f32
    %275 = vector.broadcast %cst_177 : f32 to vector<1x128xf32>
    %276 = arith.divf %274, %275 : vector<1x128xf32>
    %c2_178 = arith.constant 2 : index
    %c0_179 = arith.constant 0 : index
    %c0_180 = arith.constant 0 : index
    %277 = vector.load %arg10[%c2_178, %c0_179, %c0_180] : memref<4x1x128xf32, #tpu.memory_space<vmem>>, vector<1x1x128xf32>
    %278 = vector.shape_cast %277 : vector<1x1x128xf32> to vector<1x128xf32>
    %279 = arith.mulf %276, %278 : vector<1x128xf32>
    %280 = arith.addf %191, %279 : vector<1x128xf32>
    %c3 = arith.constant 3 : index
    %c0_181 = arith.constant 0 : index
    %c0_182 = arith.constant 0 : index
    %c0_183 = arith.constant 0 : index
    %281 = vector.load %arg6[%c3, %c0_181, %c0_182, %c0_183] : memref<4x2x256x128xf32, #tpu.memory_space<vmem>>, vector<1x1x256x128xf32>
    %282 = vector.shape_cast %281 : vector<1x1x256x128xf32> to vector<256x128xf32>
    %c3_184 = arith.constant 3 : index
    %c0_185 = arith.constant 0 : index
    %c0_186 = arith.constant 0 : index
    %c0_187 = arith.constant 0 : index
    %283 = vector.load %arg7[%c3_184, %c0_185, %c0_186, %c0_187] : memref<4x2x1x128xf32, #tpu.memory_space<vmem>>, vector<1x1x1x128xf32>
    %284 = vector.shape_cast %283 : vector<1x1x1x128xf32> to vector<1x128xf32>
    %c8_i32 = arith.constant 8 : i32
    %285 = tpu.dynamic_rotate %231 by %c8_i32 dim 0 : vector<32x128xf32>, i32 -> vector<32x128xf32>
    %c8_i32_188 = arith.constant 8 : i32
    %286 = vector.broadcast %c8_i32_188 : i32 to vector<32x1xi32>
    %287 = arith.cmpi sge, %0, %286 : vector<32x1xi32>
    %cst_189 = arith.constant 0.000000e+00 : f32
    %288 = vector.shape_cast %287 : vector<32x1xi1> to vector<32x1xi1>
    %289 = vector.broadcast %288 : vector<32x1xi1> to vector<32x128xi1>
    %290 = vector.broadcast %cst_189 : f32 to vector<32x128xf32>
    %291 = arith.select %289, %285, %290 : vector<32x128xi1>, vector<32x128xf32>
    %292 = tpu.concatenate %291, %231 in 1 : vector<32x128xf32>, vector<32x128xf32> -> vector<32x256xf32>
    %cst_190 = arith.constant dense<0.000000e+00> : vector<32x128xf32>
    %293 = tpu.matmul %292, %282, %cst_190 {dimension_numbers = #tpu.dot_dimension_numbers<[1], [0], [0], [1], [0, 0, 1, 1], [], []>} : vector<32x256xf32>, vector<256x128xf32>, vector<32x128xf32> -> vector<32x128xf32>
    %294 = vector.broadcast %284 : vector<1x128xf32> to vector<32x128xf32>
    %295 = arith.addf %293, %294 : vector<32x128xf32>
    %cst_191 = arith.constant 0.000000e+00 : f32
    %296 = vector.broadcast %cst_191 : f32 to vector<32x128xf32>
    %297 = arith.maximumf %295, %296 : vector<32x128xf32>
    %c3_192 = arith.constant 3 : index
    %c1_193 = arith.constant 1 : index
    %c0_194 = arith.constant 0 : index
    %c0_195 = arith.constant 0 : index
    %298 = vector.load %arg6[%c3_192, %c1_193, %c0_194, %c0_195] : memref<4x2x256x128xf32, #tpu.memory_space<vmem>>, vector<1x1x256x128xf32>
    %299 = vector.shape_cast %298 : vector<1x1x256x128xf32> to vector<256x128xf32>
    %c3_196 = arith.constant 3 : index
    %c1_197 = arith.constant 1 : index
    %c0_198 = arith.constant 0 : index
    %c0_199 = arith.constant 0 : index
    %300 = vector.load %arg7[%c3_196, %c1_197, %c0_198, %c0_199] : memref<4x2x1x128xf32, #tpu.memory_space<vmem>>, vector<1x1x1x128xf32>
    %301 = vector.shape_cast %300 : vector<1x1x1x128xf32> to vector<1x128xf32>
    %c8_i32_200 = arith.constant 8 : i32
    %302 = tpu.dynamic_rotate %297 by %c8_i32_200 dim 0 : vector<32x128xf32>, i32 -> vector<32x128xf32>
    %c8_i32_201 = arith.constant 8 : i32
    %303 = vector.broadcast %c8_i32_201 : i32 to vector<32x1xi32>
    %304 = arith.cmpi sge, %0, %303 : vector<32x1xi32>
    %cst_202 = arith.constant 0.000000e+00 : f32
    %305 = vector.shape_cast %304 : vector<32x1xi1> to vector<32x1xi1>
    %306 = vector.broadcast %305 : vector<32x1xi1> to vector<32x128xi1>
    %307 = vector.broadcast %cst_202 : f32 to vector<32x128xf32>
    %308 = arith.select %306, %302, %307 : vector<32x128xi1>, vector<32x128xf32>
    %309 = tpu.concatenate %308, %297 in 1 : vector<32x128xf32>, vector<32x128xf32> -> vector<32x256xf32>
    %cst_203 = arith.constant dense<0.000000e+00> : vector<32x128xf32>
    %310 = tpu.matmul %309, %299, %cst_203 {dimension_numbers = #tpu.dot_dimension_numbers<[1], [0], [0], [1], [0, 0, 1, 1], [], []>} : vector<32x256xf32>, vector<256x128xf32>, vector<32x128xf32> -> vector<32x128xf32>
    %311 = vector.broadcast %301 : vector<1x128xf32> to vector<32x128xf32>
    %312 = arith.addf %310, %311 : vector<32x128xf32>
    %cst_204 = arith.constant 0.000000e+00 : f32
    %313 = vector.broadcast %cst_204 : f32 to vector<32x128xf32>
    %314 = arith.maximumf %312, %313 : vector<32x128xf32>
    %315 = arith.negf %314 : vector<32x128xf32>
    %316 = math.exp %315 : vector<32x128xf32>
    %cst_205 = arith.constant 1.000000e+00 : f32
    %317 = vector.broadcast %cst_205 : f32 to vector<32x128xf32>
    %318 = arith.addf %317, %316 : vector<32x128xf32>
    %319 = arith.divf %317, %318 : vector<32x128xf32>
    %320 = arith.mulf %231, %319 : vector<32x128xf32>
    %c3_206 = arith.constant 3 : index
    %c0_207 = arith.constant 0 : index
    %c0_208 = arith.constant 0 : index
    %c0_209 = arith.constant 0 : index
    %321 = vector.load %arg8[%c3_206, %c0_207, %c0_208, %c0_209] : memref<4x2x256x128xf32, #tpu.memory_space<vmem>>, vector<1x1x256x128xf32>
    %322 = vector.shape_cast %321 : vector<1x1x256x128xf32> to vector<256x128xf32>
    %c3_210 = arith.constant 3 : index
    %c0_211 = arith.constant 0 : index
    %c0_212 = arith.constant 0 : index
    %c0_213 = arith.constant 0 : index
    %323 = vector.load %arg9[%c3_210, %c0_211, %c0_212, %c0_213] : memref<4x2x1x128xf32, #tpu.memory_space<vmem>>, vector<1x1x1x128xf32>
    %324 = vector.shape_cast %323 : vector<1x1x1x128xf32> to vector<1x128xf32>
    %c24_i32 = arith.constant 24 : i32
    %325 = tpu.dynamic_rotate %271 by %c24_i32 dim 0 : vector<32x128xf32>, i32 -> vector<32x128xf32>
    %c24_i32_214 = arith.constant 24 : i32
    %326 = vector.broadcast %c24_i32_214 : i32 to vector<32x1xi32>
    %327 = arith.cmpi slt, %0, %326 : vector<32x1xi32>
    %cst_215 = arith.constant 0.000000e+00 : f32
    %328 = vector.shape_cast %327 : vector<32x1xi1> to vector<32x1xi1>
    %329 = vector.broadcast %328 : vector<32x1xi1> to vector<32x128xi1>
    %330 = vector.broadcast %cst_215 : f32 to vector<32x128xf32>
    %331 = arith.select %329, %325, %330 : vector<32x128xi1>, vector<32x128xf32>
    %332 = tpu.concatenate %331, %271 in 1 : vector<32x128xf32>, vector<32x128xf32> -> vector<32x256xf32>
    %cst_216 = arith.constant dense<0.000000e+00> : vector<32x128xf32>
    %333 = tpu.matmul %332, %322, %cst_216 {dimension_numbers = #tpu.dot_dimension_numbers<[1], [0], [0], [1], [0, 0, 1, 1], [], []>} : vector<32x256xf32>, vector<256x128xf32>, vector<32x128xf32> -> vector<32x128xf32>
    %334 = vector.broadcast %324 : vector<1x128xf32> to vector<32x128xf32>
    %335 = arith.addf %333, %334 : vector<32x128xf32>
    %cst_217 = arith.constant 0.000000e+00 : f32
    %336 = vector.broadcast %cst_217 : f32 to vector<32x128xf32>
    %337 = arith.maximumf %335, %336 : vector<32x128xf32>
    %c3_218 = arith.constant 3 : index
    %c1_219 = arith.constant 1 : index
    %c0_220 = arith.constant 0 : index
    %c0_221 = arith.constant 0 : index
    %338 = vector.load %arg8[%c3_218, %c1_219, %c0_220, %c0_221] : memref<4x2x256x128xf32, #tpu.memory_space<vmem>>, vector<1x1x256x128xf32>
    %339 = vector.shape_cast %338 : vector<1x1x256x128xf32> to vector<256x128xf32>
    %c3_222 = arith.constant 3 : index
    %c1_223 = arith.constant 1 : index
    %c0_224 = arith.constant 0 : index
    %c0_225 = arith.constant 0 : index
    %340 = vector.load %arg9[%c3_222, %c1_223, %c0_224, %c0_225] : memref<4x2x1x128xf32, #tpu.memory_space<vmem>>, vector<1x1x1x128xf32>
    %341 = vector.shape_cast %340 : vector<1x1x1x128xf32> to vector<1x128xf32>
    %c24_i32_226 = arith.constant 24 : i32
    %342 = tpu.dynamic_rotate %337 by %c24_i32_226 dim 0 : vector<32x128xf32>, i32 -> vector<32x128xf32>
    %c24_i32_227 = arith.constant 24 : i32
    %343 = vector.broadcast %c24_i32_227 : i32 to vector<32x1xi32>
    %344 = arith.cmpi slt, %0, %343 : vector<32x1xi32>
    %cst_228 = arith.constant 0.000000e+00 : f32
    %345 = vector.shape_cast %344 : vector<32x1xi1> to vector<32x1xi1>
    %346 = vector.broadcast %345 : vector<32x1xi1> to vector<32x128xi1>
    %347 = vector.broadcast %cst_228 : f32 to vector<32x128xf32>
    %348 = arith.select %346, %342, %347 : vector<32x128xi1>, vector<32x128xf32>
    %349 = tpu.concatenate %348, %337 in 1 : vector<32x128xf32>, vector<32x128xf32> -> vector<32x256xf32>
    %cst_229 = arith.constant dense<0.000000e+00> : vector<32x128xf32>
    %350 = tpu.matmul %349, %339, %cst_229 {dimension_numbers = #tpu.dot_dimension_numbers<[1], [0], [0], [1], [0, 0, 1, 1], [], []>} : vector<32x256xf32>, vector<256x128xf32>, vector<32x128xf32> -> vector<32x128xf32>
    %351 = vector.broadcast %341 : vector<1x128xf32> to vector<32x128xf32>
    %352 = arith.addf %350, %351 : vector<32x128xf32>
    %cst_230 = arith.constant 0.000000e+00 : f32
    %353 = vector.broadcast %cst_230 : f32 to vector<32x128xf32>
    %354 = arith.maximumf %352, %353 : vector<32x128xf32>
    %355 = arith.negf %354 : vector<32x128xf32>
    %356 = math.exp %355 : vector<32x128xf32>
    %cst_231 = arith.constant 1.000000e+00 : f32
    %357 = vector.broadcast %cst_231 : f32 to vector<32x128xf32>
    %358 = arith.addf %357, %356 : vector<32x128xf32>
    %359 = arith.divf %357, %358 : vector<32x128xf32>
    %360 = arith.mulf %271, %359 : vector<32x128xf32>
    %361 = arith.addf %320, %360 : vector<32x128xf32>
    %cst_232 = arith.constant dense<0.000000e+00> : vector<128xf32>
    %362 = vector.multi_reduction <add>, %361, %cst_232 [0] : vector<32x128xf32> to vector<128xf32>
    %363 = vector.shape_cast %362 : vector<128xf32> to vector<1x128xf32>
    %cst_233 = arith.constant 3.200000e+01 : f32
    %364 = vector.broadcast %cst_233 : f32 to vector<1x128xf32>
    %365 = arith.divf %363, %364 : vector<1x128xf32>
    %c3_234 = arith.constant 3 : index
    %c0_235 = arith.constant 0 : index
    %c0_236 = arith.constant 0 : index
    %366 = vector.load %arg10[%c3_234, %c0_235, %c0_236] : memref<4x1x128xf32, #tpu.memory_space<vmem>>, vector<1x1x128xf32>
    %367 = vector.shape_cast %366 : vector<1x1x128xf32> to vector<1x128xf32>
    %368 = arith.mulf %365, %367 : vector<1x128xf32>
    %369 = arith.addf %280, %368 : vector<1x128xf32>
    %c0_237 = arith.constant 0 : index
    %c0_238 = arith.constant 0 : index
    %370 = vector.load %arg11[%c0_237, %c0_238] : memref<128x128xf32, #tpu.memory_space<vmem>>, vector<128x128xf32>
    %cst_239 = arith.constant dense<0.000000e+00> : vector<1x128xf32>
    %371 = tpu.matmul %369, %370, %cst_239 {dimension_numbers = #tpu.dot_dimension_numbers<[1], [0], [0], [1], [0, 0, 1, 1], [], []>} : vector<1x128xf32>, vector<128x128xf32>, vector<1x128xf32> -> vector<1x128xf32>
    %c0_240 = arith.constant 0 : index
    %c0_241 = arith.constant 0 : index
    %372 = vector.load %arg12[%c0_240, %c0_241] : memref<1x128xf32, #tpu.memory_space<vmem>>, vector<1x128xf32>
    %373 = arith.addf %371, %372 : vector<1x128xf32>
    %c0_242 = arith.constant 0 : index
    %c0_243 = arith.constant 0 : index
    %c0_244 = arith.constant 0 : index
    %374 = vector.load %arg13[%c0_242, %c0_243, %c0_244] : memref<1x1x128xf32, #tpu.memory_space<vmem>>, vector<1x1x128xf32>
    %375 = vector.shape_cast %374 : vector<1x1x128xf32> to vector<1x128xf32>
    %376 = vector.shape_cast %373 : vector<1x128xf32> to vector<1x1x128xf32>
    tpu.vector_store %arg13[%c0_242, %c0_243, %c0_244], %376 {strides = array<i32>} : memref<1x1x128xf32, #tpu.memory_space<vmem>>, vector<1x1x128xf32>,
    return
  }
  func.func @transform_0(%arg0: i32) -> (i32, i32, i32) {
    %c0_i32 = arith.constant 0 : i32
    %c0_i32_0 = arith.constant 0 : i32
    %c0_i32_1 = arith.constant 0 : i32
    return %arg0, %c0_i32, %c0_i32_0 : i32, i32, i32
  }
  func.func @transform_1(%arg0: i32) -> (i32, i32) {
    %c0_i32 = arith.constant 0 : i32
    %c0_i32_0 = arith.constant 0 : i32
    %c0_i32_1 = arith.constant 0 : i32
    return %c0_i32, %c0_i32_0 : i32, i32
  }
  func.func @transform_2(%arg0: i32) -> (i32, i32) {
    %c0_i32 = arith.constant 0 : i32
    %c0_i32_0 = arith.constant 0 : i32
    %c0_i32_1 = arith.constant 0 : i32
    return %c0_i32, %c0_i32_0 : i32, i32
  }
  func.func @transform_3(%arg0: i32) -> (i32, i32) {
    %c0_i32 = arith.constant 0 : i32
    %c0_i32_0 = arith.constant 0 : i32
    %c0_i32_1 = arith.constant 0 : i32
    return %c0_i32, %c0_i32_0 : i32, i32
  }
  func.func @transform_4(%arg0: i32) -> (i32, i32) {
    %c0_i32 = arith.constant 0 : i32
    %c0_i32_0 = arith.constant 0 : i32
    %c0_i32_1 = arith.constant 0 : i32
    return %c0_i32, %c0_i32_0 : i32, i32
  }
  func.func @transform_5(%arg0: i32) -> (i32, i32, i32, i32) {
    %c0_i32 = arith.constant 0 : i32
    %c0_i32_0 = arith.constant 0 : i32
    %c0_i32_1 = arith.constant 0 : i32
    %c0_i32_2 = arith.constant 0 : i32
    %c0_i32_3 = arith.constant 0 : i32
    return %c0_i32, %c0_i32_0, %c0_i32_1, %c0_i32_2 : i32, i32, i32, i32
  }
  func.func @transform_6(%arg0: i32) -> (i32, i32, i32, i32) {
    %c0_i32 = arith.constant 0 : i32
    %c0_i32_0 = arith.constant 0 : i32
    %c0_i32_1 = arith.constant 0 : i32
    %c0_i32_2 = arith.constant 0 : i32
    %c0_i32_3 = arith.constant 0 : i32
    return %c0_i32, %c0_i32_0, %c0_i32_1, %c0_i32_2 : i32, i32, i32, i32
  }
  func.func @transform_7(%arg0: i32) -> (i32, i32, i32, i32) {
    %c0_i32 = arith.constant 0 : i32
    %c0_i32_0 = arith.constant 0 : i32
    %c0_i32_1 = arith.constant 0 : i32
    %c0_i32_2 = arith.constant 0 : i32
    %c0_i32_3 = arith.constant 0 : i32
    return %c0_i32, %c0_i32_0, %c0_i32_1, %c0_i32_2 : i32, i32, i32, i32
  }
  func.func @transform_8(%arg0: i32) -> (i32, i32, i32, i32) {
    %c0_i32 = arith.constant 0 : i32
    %c0_i32_0 = arith.constant 0 : i32
    %c0_i32_1 = arith.constant 0 : i32
    %c0_i32_2 = arith.constant 0 : i32
    %c0_i32_3 = arith.constant 0 : i32
    return %c0_i32, %c0_i32_0, %c0_i32_1, %c0_i32_2 : i32, i32, i32, i32
  }
  func.func @transform_9(%arg0: i32) -> (i32, i32, i32) {
    %c0_i32 = arith.constant 0 : i32
    %c0_i32_0 = arith.constant 0 : i32
    %c0_i32_1 = arith.constant 0 : i32
    %c0_i32_2 = arith.constant 0 : i32
    return %c0_i32, %c0_i32_0, %c0_i32_1 : i32, i32, i32
  }
  func.func @transform_10(%arg0: i32) -> (i32, i32) {
    %c0_i32 = arith.constant 0 : i32
    %c0_i32_0 = arith.constant 0 : i32
    %c0_i32_1 = arith.constant 0 : i32
    return %c0_i32, %c0_i32_0 : i32, i32
  }
  func.func @transform_11(%arg0: i32) -> (i32, i32) {
    %c0_i32 = arith.constant 0 : i32
    %c0_i32_0 = arith.constant 0 : i32
    %c0_i32_1 = arith.constant 0 : i32
    return %c0_i32, %c0_i32_0 : i32, i32
  }
  func.func @transform_12(%arg0: i32) -> (i32, i32, i32) {
    %c0_i32 = arith.constant 0 : i32
    %c0_i32_0 = arith.constant 0 : i32
    %c0_i32_1 = arith.constant 0 : i32
    return %arg0, %c0_i32, %c0_i32_0 : i32, i32, i32
  }
}

</mosaic_0001>

<bundles_post_ra>
// kernel: tpu_custom_call.1
= control target key start
LH: loop header
LB: loop body
LE: loop exit
PB: predicated region body
PF: predicated region fallthrough
CT: control target
= control target key end

     0   :  { %s6435_s0 = inlined_call_operand.hbm [shape: f32[2,32,128], index: 0, kind: input, shape index: {}]   ;;  %s6436_s1 = inlined_call_operand.hbm [shape: f32[128,128], index: 1, kind: input, shape index: {}]   ;;  %s6437_s2 = inlined_call_operand.vmem [shape: f32[1,128], index: 2, kind: input, shape index: {}]   ;;  %s6438_s3 = inlined_call_operand.hbm [shape: f32[128,128], index: 3, kind: input, shape index: {}]   ;;  %s6439_s4 = inlined_call_operand.vmem [shape: f32[1,128], index: 4, kind: input, shape index: {}]   ;;  %s6440_s5 = inlined_call_operand.hbm [shape: f32[4,2,256,128], index: 5, kind: input, shape index: {}]   ;;  %s6441_s6 = inlined_call_operand.vmem [shape: f32[4,2,1,128], index: 6, kind: input, shape index: {}]   ;;  %s6442_s7 = inlined_call_operand.hbm [shape: f32[4,2,256,128], index: 7, kind: input, shape index: {}]   ;;  %s6443_s8 = inlined_call_operand.vmem [shape: f32[4,2,1,128], index: 8, kind: input, shape index: {}]   ;;  %s6444_s9 = inlined_call_operand.vmem [shape: f32[4,1,128], index: 9, kind: input, shape index: {}]   ;;  %s6445_s10 = inlined_call_operand.hbm [shape: f32[128,128], index: 10, kind: input, shape index: {}]   ;;  %s6446_s11 = inlined_call_operand.vmem [shape: f32[1,128], index: 11, kind: input, shape index: {}]   ;;  %s6447_s12 = inlined_call_operand.hbm [shape: f32[2,1,128], index: 12, kind: output, shape index: {}]  }
   0x1   :  { %6455 = sst [smem:[#allocation19_spill]] %s6436_s1 }
   0x2   :  { %6456 = sst [smem:[#allocation20_spill]] %s6443_s8 }
   0x3   :  { %6457 = sst [smem:[#allocation21_spill]] %s6444_s9 }
   0x4   :  { %6458 = sst [smem:[#allocation22_spill]] %s6446_s11 }
   0x5   :  { %6459 = sst [smem:[#allocation23_spill]] %s6447_s12 }
   0x6   :  { %17 = vsyncpa [#allocation3], 0 }
   0x7   :  { %19 = vsyncpa [#allocation3 + $0x1], 0 }
   0x8   :  { %20 = vsyncpa [#allocation6], 0 }
   0x9   :  { %21 = vsyncpa [#allocation9], 0 }
   0xa   :  { %22 = vsyncpa [#allocation12], 0 }
   0xb   :  { %23 = vsyncpa [#allocation4], 0 }
   0xc   :  { %25 = vsyncpa [#allocation4 + $0x1], 0  ;;  %s5707_s21 = smov 0   ;;  %s5709_s22 = smov 0  }
   0xd   :  { %s5711_s23 = smov 0   ;;  %s5713_s24 = smov 0  }
   0xe LB: > { %s5630_s25 = smov [#allocation5]   ;;  %s5728_s27 = sadd.s32 4294967295, %s5628_s24   ;;  %s5628_s24 = sphi %s5713_s24, %s6487_s24   ;;  %s5624_s23 = sphi %s5711_s23, %s6486_s23   ;;  %s5620_s22 = sphi %s5709_s22, %s6485_s22   ;;  %s5616_s21 = sphi %s5707_s21, %s6484_s21  }
   0xf   : > { %s331_s26 = sshll.u32 %s5630_s25, 4  ;;  %p3578_p0 = scmp.ge.s32.totalorder %s5628_s24, 1  ;;  %s5733_s26 = int_to_ptr.vmem [resolvable:$true] %s331_s26 }
  0x10   : > { %p6451_p1 = scmp.eq.s32.totalorder %s5728_s27, 0  ;;  %p319_p2 = scmp.lt.s32.totalorder %s5628_s24, 3 }
  0x11   : > { %s5631_s29 = smov [#allocation8]   ;;  %s5632_s14 = smov [#allocation7]  }
  0x12   : > { %p5735_p3 = pnand %p3578_p0, %p319_p2  ;;  %s363_s30 = sshll.u32 %s5631_s29, 4  ;;  %s5748_s30 = int_to_ptr.vmem [resolvable:$true] %s363_s30 }
  0x13   : > { %s347_s15 = sshll.u32 %s5632_s14, 4  ;;  %s6462_s1 = sld [smem:[#allocation19_spill]]  ;;  %s5750_s15 = int_to_ptr.vmem [resolvable:$true] %s347_s15 }
  0x14   : > { %s6460_s28 = scalar_select %p5735_p3, 1, 0 }
  0x15   : > { %p5174_p5 = pneg %p5735_p3 }
  0x17   : > { %p5744_p6 = pnand %p5174_p5, %p6451_p1 }
  0x19   : > { %s5380_s18 = scalar_lea.hbm %s6462_s1, 2048  ;;  %p5760_p8 = pneg %p5744_p6 }
  0x1a   : > { %p5381_p7 = scmp.ne.s32.totalorder %s6462_s1, %s5380_s18  ;;  %p5387_p11 = scmp.lt.u32.totalorder %s5380_s18, %s6462_s1 }
  0x1c   : > { %p5383_p9 = pnand %p5760_p8, %p5381_p7 }
  0x1e   : > { %p5384_p10 = pneg %p5383_p9 }
  0x20   : > { %p5389_p12 = pnand %p5387_p11, %p5384_p10 }
  0x22   : > { %5392 = shalt.err (!%p5389_p12)
}
  0x23   : > { %s5393_s16 = scalar_lea.vmem %s5733_s26, 2048  ;;  %p5401_p5 = scmp.lt.s32.totalorder %s5733_s26, %s5733_s26 }
  0x24   : > { %p5394_p13 = scmp.ne.s32.totalorder %s5733_s26, %s5393_s16  ;;  %p5402_p4 = scmp.lt.s32.totalorder %s5393_s16, %s5393_s16 }
  0x26   : > { %p5396_p0 = pnand %p5394_p13, %p5760_p8  ;;  %p5403_p7 = por %p5402_p4, %p5401_p5 }
  0x28   : > { %p5397_p2 = pneg %p5396_p0 }
  0x2a   : > { %p5404_p9 = pnand %p5403_p7, %p5397_p2 }
  0x2c   : > { %5407 = shalt.err (!%p5404_p9)
}
  0x2d   : > { %s6453_s17 = smov 128   ;;  %s5634_s18 = smov 8  }
  0x2e   : > { %5177 = dma.hbm_to_vmem [thread:$0]  (!%p5744_p6), %s6462_s1, 2048, %s5733_s26, [#allocation6], %s6453_s17, %s6453_s17, %s5634_s18  }
  0x2f   : > { %s5408_s16 = scalar_lea.hbm %s6440_s5, 32768 }
  0x30   : > { %p5409_p4 = scmp.ne.s32.totalorder %s6440_s5, %s5408_s16  ;;  %p5415_p12 = scmp.lt.u32.totalorder %s5408_s16, %s6440_s5 }
  0x32   : > { %p5411_p10 = pnand %p5409_p4, %p5760_p8 }
  0x34   : > { %p5412_p11 = pneg %p5411_p10 }
  0x36   : > { %p5417_p13 = pnand %p5415_p12, %p5412_p11 }
  0x38   : > { %5420 = shalt.err (!%p5417_p13)
}
  0x39   : > { %s5421_s26 = scalar_lea.vmem %s5748_s30, 32768  ;;  %p5429_p7 = scmp.lt.s32.totalorder %s5748_s30, %s5748_s30 }
  0x3a   : > { %p5422_p0 = scmp.ne.s32.totalorder %s5748_s30, %s5421_s26  ;;  %p5430_p9 = scmp.lt.s32.totalorder %s5421_s26, %s5421_s26 }
  0x3c   : > { %p5424_p2 = pnand %p5422_p0, %p5760_p8  ;;  %p5431_p4 = por %p5430_p9, %p5429_p7 }
  0x3e   : > { %p5425_p5 = pneg %p5424_p2 }
  0x40   : > { %p5432_p10 = pnand %p5431_p4, %p5425_p5 }
  0x42   : > { %5435 = shalt.err (!%p5432_p10)
}
  0x43   : > { %5183 = dma.hbm_to_vmem [thread:$0]  (!%p5744_p6), %s6440_s5, 32768, %s5748_s30, [#allocation9], %s6453_s17, %s6453_s17, %s5634_s18  }
  0x44   : > { %s5436_s19 = scalar_lea.hbm %s6438_s3, 2048 }
  0x45   : > { %p5437_p11 = scmp.ne.s32.totalorder %s6438_s3, %s5436_s19  ;;  %p5443_p0 = scmp.lt.u32.totalorder %s5436_s19, %s6438_s3 }
  0x47   : > { %p5439_p12 = pnand %p5437_p11, %p5760_p8 }
  0x49   : > { %p5440_p13 = pneg %p5439_p12 }
  0x4b   : > { %p5445_p2 = pnand %p5443_p0, %p5440_p13 }
  0x4d   : > { %5448 = shalt.err (!%p5445_p2)
}
  0x4e   : > { %s5449_s30 = scalar_lea.vmem %s5750_s15, 2048  ;;  %p5457_p4 = scmp.lt.s32.totalorder %s5750_s15, %s5750_s15 }
  0x4f   : > { %p5450_p5 = scmp.ne.s32.totalorder %s5750_s15, %s5449_s30  ;;  %p5458_p10 = scmp.lt.s32.totalorder %s5449_s30, %s5449_s30 }
  0x51   : > { %p5452_p7 = pnand %p5450_p5, %p5760_p8  ;;  %p5459_p11 = por %p5458_p10, %p5457_p4 }
  0x53   : > { %p5453_p9 = pneg %p5452_p7 }
  0x55   : > { %p5460_p12 = pnand %p5459_p11, %p5453_p9 }
  0x57   : > { %5463 = shalt.err (!%p5460_p12)
}
  0x58   : > { %5180 = dma.hbm_to_vmem [thread:$0]  (!%p5744_p6), %s6438_s3, 2048, %s5750_s15, [#allocation6], %s6453_s17, %s6453_s17, %s5634_s18  }
  0x59   : > { %s5635_s9 = smov [#allocation10]   ;;  %s5636_s12 = smov [#allocation11]  }
  0x5a   : > { %s379_s11 = sshll.u32 %s5635_s9, 4  ;;  %s398_s19 = sshll.u32 %s5636_s12, 4  ;;  %s380_s11 = int_to_ptr.vmem [resolvable:$true] %s379_s11  ;;  %s399_s19 = int_to_ptr.vmem [resolvable:$true] %s398_s19 }
  0x5b   : > { %s5464_s14 = scalar_lea.hbm %s6442_s7, 32768 }
  0x5c   : > { %p5465_p13 = scmp.ne.s32.totalorder %s6442_s7, %s5464_s14  ;;  %p5471_p5 = scmp.lt.u32.totalorder %s5464_s14, %s6442_s7 }
  0x5e   : > { %p5467_p0 = pnand %p5465_p13, %p5760_p8 }
  0x60   : > { %p5468_p2 = pneg %p5467_p0 }
  0x62   : > { %p5473_p7 = pnand %p5471_p5, %p5468_p2 }
  0x64   : > { %5476 = shalt.err (!%p5473_p7)
}
  0x65   : > { %s5477_s15 = scalar_lea.vmem %s380_s11, 32768  ;;  %p5485_p11 = scmp.lt.s32.totalorder %s380_s11, %s380_s11 }
  0x66   : > { %p5478_p9 = scmp.ne.s32.totalorder %s380_s11, %s5477_s15  ;;  %p5486_p12 = scmp.lt.s32.totalorder %s5477_s15, %s5477_s15 }
  0x68   : > { %p5480_p4 = pnand %p5478_p9, %p5760_p8  ;;  %p5487_p1 = por %p5486_p12, %p5485_p11 }
  0x6a   : > { %p5481_p10 = pneg %p5480_p4 }
  0x6c   : > { %p5488_p3 = pnand %p5487_p1, %p5481_p10 }
  0x6e   : > { %5491 = shalt.err (!%p5488_p3)
}
  0x6f   : > { %5186 = dma.hbm_to_vmem [thread:$0]  (!%p5744_p6), %s6442_s7, 32768, %s380_s11, [#allocation9], %s6453_s17, %s6453_s17, %s5634_s18  }
  0x70   : > { %s5492_s20 = scalar_lea.hbm %s6445_s10, 2048 }
  0x71   : > { %p5493_p1 = scmp.ne.s32.totalorder %s6445_s10, %s5492_s20  ;;  %p5499_p0 = scmp.lt.u32.totalorder %s5492_s20, %s6445_s10 }
  0x73   : > { %p5495_p3 = pnand %p5493_p1, %p5760_p8 }
  0x75   : > { %p5496_p13 = pneg %p5495_p3 }
  0x77   : > { %p5501_p2 = pnand %p5499_p0, %p5496_p13 }
  0x79   : > { %5504 = shalt.err (!%p5501_p2)
}
  0x7a   : > { %s5505_s26 = scalar_lea.vmem %s399_s19, 2048  ;;  %p5513_p4 = scmp.lt.s32.totalorder %s399_s19, %s399_s19 }
  0x7b   : > { %p5506_p5 = scmp.ne.s32.totalorder %s399_s19, %s5505_s26  ;;  %p5514_p10 = scmp.lt.s32.totalorder %s5505_s26, %s5505_s26 }
  0x7d   : > { %p5508_p7 = pnand %p5506_p5, %p5760_p8  ;;  %p5515_p11 = por %p5514_p10, %p5513_p4 }
  0x7f   : > { %p5509_p9 = pneg %p5508_p7 }
  0x81   : > { %p5516_p12 = pnand %p5515_p11, %p5509_p9 }
  0x83   : > { %5519 = shalt.err (!%p5516_p12)
}
  0x84   : > { %5189 = dma.hbm_to_vmem [thread:$0]  (!%p5744_p6), %s6445_s10, 2048, %s399_s19, [#allocation12], %s6453_s17, %s6453_s17, %s5634_s18  }
  0x85   : > { %s3577_s13 = sadd.s32 4294967294, %s5628_s24   ;;  %s5880_s25 = sadd.s32 1, %s5628_s24  }
  0x86   : > { %s38_s1 = sadd.s32 1, %s5624_s23  ;;  %s35_s8 = ssub.s32 %s5628_s24, %s5880_s25 }
  0x87   : > { %p45_p8 = scmp.ne.s32.totalorder %s5624_s23, %s5620_s22  ;;  %p36_p1 = scmp.eq.s32.totalorder %s35_s8, 0 }
  0x88   : > { %p46_p3 = scmp.eq.s32.totalorder %s5628_s24, 0  ;;  %p51_p13 = scmp.ne.s32.totalorder %s5620_s22, %s5616_s21 }
  0x89   : > { %p306_p0 = scmp.eq.s32.totalorder %s5728_s27, 1  ;;  %p6464_p5 = scmp.eq.s32.totalorder %s5728_s27, 0 }
  0x8a   : > { %s5892_s9 = scalar_select %p36_p1, %s5624_s23, %s38_s1  }
  0x8b   : > { %p47_p2 = por %p46_p3, %p45_p8  ;;  %p5896_p7 = por %p6464_p5, %p51_p13 }
  0x8c   : > { %p5900_p6 = por %p306_p0, %p45_p8  ;;  %p312_p9 = scmp.eq.s32.totalorder %s3577_s13, 1 }
  0x8d   : > { %p5203_p4 = scmp.lt.s32.totalorder %s5628_s24, 2  ;;  %s415_s20 = sand.u32 1, %s5624_s23  }
  0x8e   : > { %s6466_s19 = scalar_select %p5900_p6, 1, 0 }
  0x8f   : > { %p5906_p10 = por %p312_p9, %p51_p13  ;;  %s3585_s14 = sshll.u32 %s415_s20, 5 }
  0x90   : > { %s3677_s16 = sshll.u32 %s5628_s24, 9  ;;  %s419_s15 = scalar_lea.vmem [#allocation2], %s3585_s14 }
  0x91   : > { %s6467_s29 = scalar_select %p5906_p10, 1, 0 }
  0x92   : > { %s5914_s11 = scalar_lea.hbm %s6435_s0, %s3677_s16  ;;  %s426_s1 = sshll.u32 %s419_s15, 4  ;;  %s5920_s1 = int_to_ptr.vmem [resolvable:$true] %s426_s1 }
  0x93   : > { %p5916_p11 = pnand %p5203_p4, %p47_p2  ;;  %s5922_s8 = scalar_lea.sflag [#allocation3], %s415_s20 }
  0x94   : > { %s5520_s17 = scalar_lea.hbm %s5914_s11, 512  ;;  %s5525_s30 = scalar_lea.hbm %s6435_s0, 1024 }
  0x95   : > { %p5521_p12 = scmp.ne.s32.totalorder %s5914_s11, %s5520_s17  ;;  %p5522_p8 = pneg %p5916_p11 }
  0x96   : > { %p5526_p13 = scmp.lt.u32.totalorder %s5914_s11, %s6435_s0  ;;  %p5527_p0 = scmp.lt.u32.totalorder %s5525_s30, %s5520_s17 }
  0x97   : > { %p5523_p1 = pnand %p5522_p8, %p5521_p12  ;;  %p5529_p5 = scmp.lt.u32.totalorder %s5520_s17, %s5914_s11 }
  0x98   : > { %p5528_p2 = por %p5527_p0, %p5526_p13 }
  0x99   : > { %p5524_p3 = pneg %p5523_p1 }
  0x9a   : > { %p5530_p9 = por %p5529_p5, %p5528_p2 }
  0x9c   : > { %p5531_p4 = pnand %p5530_p9, %p5524_p3 }
  0x9e   : > { %5534 = shalt.err (!%p5531_p4)
}
  0x9f   : > { %s5535_s20 = scalar_lea.vmem %s5920_s1, 512  ;;  %s5637_s14 = smov [#allocation2]  }
  0xa0   : > { %p5536_p12 = scmp.ne.s32.totalorder %s5920_s1, %s5535_s20  ;;  %s5540_s16 = sshll.u32 %s5637_s14, 4  ;;  %s5541_s16 = int_to_ptr.vmem [resolvable:$false] %s5540_s16 }
  0xa1   : > { %s5542_s26 = scalar_lea.vmem %s5541_s16, 1024  ;;  %p5543_p6 = scmp.lt.s32.totalorder %s5920_s1, %s5541_s16 }
  0xa2   : > { %p5538_p1 = pnand %p5536_p12, %p5522_p8  ;;  %p5544_p13 = scmp.lt.s32.totalorder %s5542_s26, %s5535_s20 }
  0xa4   : > { %p5539_p10 = pneg %p5538_p1  ;;  %p5545_p0 = por %p5544_p13, %p5543_p6 }
  0xa6   : > { %p5546_p2 = pnand %p5545_p0, %p5539_p10 }
  0xa8   : > { %5549 = shalt.err (!%p5546_p2)
}
  0xa9   : > { %s6469_s17 = smov 128   ;;  %p6470_p8 = scmp.ne.s32.totalorder %s6460_s28, 0 }
  0xaa   : > { %5193 = dma.hbm_to_vmem [thread:$0]  (!%p5916_p11), %s5914_s11, 512, %s5920_s1, %s5922_s8, %s6469_s17, %s6469_s17, %s5634_s18  }
  0xab   : > { %438 = sbr.rel (%p6470_p8) target bundleno = 2686 (0xa7e), region = 68  ;;  %s5956_s30 = sand.u32 (!%p6470_p8), 1, %s5620_s22  }
  0xac   : > { %s3589_s15 = sshll.u32 (!%p6470_p8), %s5956_s30, 5  ;;  %s441_s20 = scalar_lea.sflag (!%p6470_p8), [#allocation3], %s5956_s30 }
  0xad   : > { %s5960_s14 = scalar_lea.vmem (!%p6470_p8), [#allocation2], %s3589_s15 }
  0xb2   : > { %5595 = dma.done.wait (%p5896_p7), %s441_s20, 512  }
  0xb3   : > { %5597 = vsyncadd (%p5896_p7), %s441_s20, 4294966784  ;;  %p6471_p6 = scmp.eq.s32.totalorder %s5728_s27, 0 }
  0xb5   : > { %5599 = dma.done.wait (%p6471_p6), [#allocation6], 4096   ;;  %p6472_p10 = pmov %p6471_p6 }
  0xb6   : > { %p6473_p11 = pmov %p6471_p6 }
  0xb7   : > { %5601 = vsyncadd (%p6472_p10), [#allocation6], 4294963200 }
  0xb8   : > { %5603 = dma.done.wait (%p6473_p11), [#allocation9], 65536   ;;  %p6474_p3 = pmov %p6471_p6 }
  0xba   : > { %5605 = vsyncadd (%p6474_p3), [#allocation9], 4294901760  ;;  %p6475_p5 = pmov %p6474_p3 }
  0xbb   : > { %p6476_p9 = pmov %p6474_p3 }
  0xbc   : > { %5607 = dma.done.wait (%p6475_p5), [#allocation12], 2048  }
  0xbd   : > { %5609 = vsyncadd (%p6476_p9), [#allocation12], 4294965248  ;;  %v513_v0 = vld [vmem:[#allocation5] sm:$0xff]  ;;  %v514_v1 = vld [vmem:[#allocation5 + $0x8] sm:$0xff]  ;;  %s6477_s26 = sld [smem:[#allocation20_spill]]  ;;  %vm5640_vm11 = vmmov 0  }
  0xbe   : > { %v515_v2 = vld [vmem:[#allocation5 + $0x10] sm:$0xff]  ;;  %v4550_v3 = vpack.c.bf16 %v514_v1, %v513_v0  ;;  %v516_v4 = vld [vmem:[#allocation5 + $0x18] sm:$0xff]  ;;  %v517_v6 = vld [vmem:[#allocation5 + $0x20] sm:$0xff]  ;;  %s6478_s12 = sld [smem:[#allocation21_spill]]  ;;  %s3674_s28 = sshll.u32 %s5728_s27, 4 }
  0xbf   : > { %v4554_v5 = vpack.c.bf16 %v516_v4, %v515_v2  ;;  %v518_v7 = vld [vmem:[#allocation5 + $0x28] sm:$0xff]  ;;  %v509_v9 = vld [vmem:[%s5960_s14] sm:$0xff]  ;;  %v519_v10 = vld [vmem:[#allocation5 + $0x30] sm:$0xff]  ;;  %s503_s18 = scalar_lea.vmem [#allocation13], %s5956_s30  ;;  %s6480_s8 = sld [smem:[#allocation23_spill]] }
  0xc0   : > { %4551 = vmatprep.subr.bf16.mxu0 %v4550_v3  ;;  %v4558_v8 = vpack.c.bf16 %v518_v7, %v517_v6  ;;  %v520_v11 = vld [vmem:[#allocation5 + $0x38] sm:$0xff]  ;;  %4471 = vmatprep.mubr.f32.mxu0 %v509_v9  ;;  %v621_v12 = vld [vmem:[#allocation7] sm:$0xff]  ;;  %v622_v13 = vld [vmem:[#allocation7 + $0x8] sm:$0xff]  ;;  %s3463_s11 = sshll.u32 %s503_s18, 4  ;;  %s3451_s17 = scalar_lea.sflag [#allocation4], %s5956_s30  ;;  %s6393_s11 = int_to_ptr.vmem [resolvable:$true] %s3463_s11 }
  0xc1   : > { %4553 = vmatpush3.bf16.msra.mxu0 %v4550_v3  ;;  %4509 = vmatprep.mubr.f32.mxu1 %v509_v9  ;;  %v623_v14 = vld [vmem:[#allocation7 + $0x10] sm:$0xff]  ;;  %v624_v15 = vld [vmem:[#allocation7 + $0x18] sm:$0xff]  ;;  %v4582_v16 = vpack.c.bf16 %v622_v13, %v621_v12  ;;  %v4562_v18 = vpack.c.bf16 %v520_v11, %v519_v10  ;;  %v625_v19 = vld [vmem:[#allocation7 + $0x20] sm:$0xff]  ;;  %s5550_s15 = scalar_lea.vmem %s6393_s11, 16  ;;  %p6481_p4 = scmp.ne.s32.totalorder %s6466_s19, 0 }
  0xc2   : > { %4555 = vmatprep.subr.bf16.mxu0 %v4554_v5  ;;  %v4586_v17 = vpack.c.bf16 %v624_v15, %v623_v14  ;;  %v626_v20 = vld [vmem:[#allocation7 + $0x28] sm:$0xff]  ;;  %v521_v21 = vld [vmem:[#allocation5 + $0x40] sm:$0xff]  ;;  %v627_v25 = vld [vmem:[#allocation7 + $0x30] sm:$0xff]  ;;  %p5551_p7 = scmp.ne.s32.totalorder %s6393_s11, %s5550_s15  ;;  %s5641_s27 = smov [#allocation13]  }
  0xc3   : > { %v522_v22 = vld [vmem:[#allocation5 + $0x48] sm:$0xff]  ;;  %4583 = vmatprep.subr.bf16.mxu1 %v4582_v16  ;;  %v4590_v23 = vpack.c.bf16 %v626_v20, %v625_v19  ;;  %v628_v26 = vld [vmem:[#allocation7 + $0x38] sm:$0xff]  ;;  %v523_v27 = vld [vmem:[#allocation5 + $0x50] sm:$0xff]  ;;  %s5554_s20 = sshll.u32 %s5641_s27, 4  ;;  %s5555_s20 = int_to_ptr.vmem [resolvable:$false] %s5554_s20 }
  0xc4   : > { %4585 = vmatpush3.bf16.msra.mxu1 %v4582_v16  ;;  %v4566_v24 = vpack.c.bf16 %v522_v22, %v521_v21  ;;  %v524_v28 = vld [vmem:[#allocation5 + $0x58] sm:$0xff]  ;;  %v4594_v29 = vpack.c.bf16 %v628_v26, %v627_v25  ;;  %v629_v31 = vld [vmem:[#allocation7 + $0x40] sm:$0xff]  ;;  %v630_v32 = vld [vmem:[#allocation7 + $0x48] sm:$0xff]  ;;  %p5552_p12 = pnand %p5551_p7, %p6481_p4  ;;  %p5557_p13 = scmp.lt.s32.totalorder %s6393_s11, %s5555_s20 }
  0xc5   : > { %4557 = vmatpush3.bf16.msra.mxu0 %v4554_v5  ;;  %4587 = vmatprep.subr.bf16.mxu1 %v4586_v17  ;;  %v4570_v30 = vpack.c.bf16 %v524_v28, %v523_v27  ;;  %v525_v33 = vld [vmem:[#allocation5 + $0x60] sm:$0xff]  ;;  %v526_v34 = vld [vmem:[#allocation5 + $0x68] sm:$0xff]  ;;  %v4598_v35 = vpack.c.bf16 %v630_v32, %v629_v31  ;;  %v631_v37 = vld [vmem:[#allocation7 + $0x50] sm:$0xff]  ;;  %s6391_s16 = scalar_lea.hbm %s6480_s8, %s3674_s28 }
  0xc6   : > { %4559 = vmatprep.subr.bf16.mxu0 %v4558_v8  ;;  %v4574_v36 = vpack.c.bf16 %v526_v34, %v525_v33  ;;  %v632_v38 = vld [vmem:[#allocation7 + $0x58] sm:$0xff]  ;;  %v527_v39 = vld [vmem:[#allocation5 + $0x70] sm:$0xff]  ;;  %v633_v43 = vld [vmem:[#allocation7 + $0x60] sm:$0xff]  ;;  %p5553_p1 = pneg %p5552_p12 }
  0xc7   : > { %v528_v40 = vld [vmem:[#allocation5 + $0x78] sm:$0xff]  ;;  %v4602_v41 = vpack.c.bf16 %v632_v38, %v631_v37  ;;  %v634_v44 = vld [vmem:[#allocation7 + $0x68] sm:$0xff]  ;;  %v745_v45 = vld [vmem:[#allocation8 + $0x80] sm:$0xff] }
  0xc8   : > { %4589 = vmatpush3.bf16.msra.mxu1 %v4586_v17  ;;  %v4578_v42 = vpack.c.bf16 %v528_v40, %v527_v39  ;;  %v746_v46 = vld [vmem:[#allocation8 + $0x88] sm:$0xff]  ;;  %v4606_v47 = vpack.c.bf16 %v634_v44, %v633_v43  ;;  %v635_v48 = vld [vmem:[#allocation7 + $0x70] sm:$0xff]  ;;  %v636_v49 = vld [vmem:[#allocation7 + $0x78] sm:$0xff] }
  0xc9   : > { %4561 = vmatpush3.bf16.msra.mxu0 %v4558_v8  ;;  %4591 = vmatprep.subr.bf16.mxu1 %v4590_v23  ;;  %v4614_v50 = vpack.c.bf16 %v746_v46, %v745_v45  ;;  %v729_v51 = vld [vmem:[#allocation8] sm:$0xff]  ;;  %v730_v52 = vld [vmem:[#allocation8 + $0x8] sm:$0xff]  ;;  %v747_v53 = vld [vmem:[#allocation8 + $0x90] sm:$0xff]  ;;  %v4610_v56 = vpack.c.bf16 %v636_v49, %v635_v48 }
  0xca   : > { %4563 = vmatprep.subr.bf16.mxu0 %v4562_v18  ;;  %v748_v54 = vld [vmem:[#allocation8 + $0x98] sm:$0xff]  ;;  %v510_v55 = vld [vmem:[%s5960_s14 + $0x8] sm:$0xff]  ;;  %v511_v57 = vld [vmem:[%s5960_s14 + $0x10] sm:$0xff]  ;;  %v4616_v58 = vpack.c.bf16 %v730_v52, %v729_v51 }
  0xcb   : > { %v4618_v59 = vpack.c.bf16 %v748_v54, %v747_v53  ;;  %v731_v60 = vld [vmem:[#allocation8 + $0x10] sm:$0xff]  ;;  %v732_v61 = vld [vmem:[#allocation8 + $0x18] sm:$0xff]  ;;  %v749_v62 = vld [vmem:[#allocation8 + $0xa0] sm:$0xff] }
  0xcc   : > { %4593 = vmatpush3.bf16.msra.mxu1 %v4590_v23  ;;  %v750_v63 = vld [vmem:[#allocation8 + $0xa8] sm:$0xff]  ;;  %v512_v0 = vld [vmem:[%s5960_s14 + $0x18] sm:$0xff]  ;;  %v4620_v1 = vpack.c.bf16 %v732_v61, %v731_v60  ;;  %v733_v3 = vld [vmem:[#allocation8 + $0x20] sm:$0xff]  ;;  %s6479_s14 = sld [smem:[#allocation22_spill]] }
  0xcd   : > { %4565 = vmatpush3.bf16.msra.mxu0 %v4562_v18  ;;  %4595 = vmatprep.subr.bf16.mxu1 %v4594_v29  ;;  %v4622_v2 = vpack.c.bf16 %v750_v63, %v749_v62  ;;  %v734_v4 = vld [vmem:[#allocation8 + $0x28] sm:$0xff]  ;;  %v751_v5 = vld [vmem:[#allocation8 + $0xb0] sm:$0xff]  ;;  %v752_v6 = vld [vmem:[#allocation8 + $0xb8] sm:$0xff] }
  0xce   : > { %4567 = vmatprep.subr.bf16.mxu0 %v4566_v24  ;;  %v4624_v7 = vpack.c.bf16 %v734_v4, %v733_v3  ;;  %v4626_v8 = vpack.c.bf16 %v752_v6, %v751_v5  ;;  %v735_v9 = vld [vmem:[#allocation8 + $0x30] sm:$0xff]  ;;  %v736_v10 = vld [vmem:[#allocation8 + $0x38] sm:$0xff]  ;;  %v753_v11 = vld [vmem:[#allocation8 + $0xc0] sm:$0xff] }
  0xcf   : > { %v754_v12 = vld [vmem:[#allocation8 + $0xc8] sm:$0xff]  ;;  %v4628_v13 = vpack.c.bf16 %v736_v10, %v735_v9  ;;  %v737_v15 = vld [vmem:[#allocation8 + $0x40] sm:$0xff]  ;;  %v755_v17 = vld [vmem:[#allocation8 + $0xd0] sm:$0xff] }
  0xd0   : > { %4597 = vmatpush3.bf16.msra.mxu1 %v4594_v29  ;;  %v4630_v14 = vpack.c.bf16 %v754_v12, %v753_v11  ;;  %v738_v16 = vld [vmem:[#allocation8 + $0x48] sm:$0xff]  ;;  %v756_v18 = vld [vmem:[#allocation8 + $0xd8] sm:$0xff]  ;;  %v739_v21 = vld [vmem:[#allocation8 + $0x50] sm:$0xff] }
  0xd1   : > { %4569 = vmatpush3.bf16.msra.mxu0 %v4566_v24  ;;  %4599 = vmatprep.subr.bf16.mxu1 %v4598_v35  ;;  %v4632_v19 = vpack.c.bf16 %v738_v16, %v737_v15  ;;  %v4634_v20 = vpack.c.bf16 %v756_v18, %v755_v17  ;;  %v740_v22 = vld [vmem:[#allocation8 + $0x58] sm:$0xff]  ;;  %v757_v24 = vld [vmem:[#allocation8 + $0xe0] sm:$0xff]  ;;  %v758_v25 = vld [vmem:[#allocation8 + $0xe8] sm:$0xff] }
  0xd2   : > { %4571 = vmatprep.subr.bf16.mxu0 %v4570_v30  ;;  %v4636_v23 = vpack.c.bf16 %v740_v22, %v739_v21  ;;  %v4638_v26 = vpack.c.bf16 %v758_v25, %v757_v24  ;;  %v741_v27 = vld [vmem:[#allocation8 + $0x60] sm:$0xff]  ;;  %v742_v28 = vld [vmem:[#allocation8 + $0x68] sm:$0xff]  ;;  %v760_v31 = vld [vmem:[#allocation8 + $0xf8] sm:$0xff] }
  0xd3   : > { %v4640_v29 = vpack.c.bf16 %v742_v28, %v741_v27  ;;  %v743_v33 = vld [vmem:[#allocation8 + $0x70] sm:$0xff]  ;;  %v744_v34 = vld [vmem:[#allocation8 + $0x78] sm:$0xff]  ;;  %v1069_v37 = vld [vmem:[#allocation10 + $0x88] sm:$0xff] }
  0xd4   : > { %4601 = vmatpush3.bf16.msra.mxu1 %v4598_v35  ;;  %v4644_v35 = vpack.c.bf16 %v744_v34, %v743_v33  ;;  %v899_v39 = vld [vmem:[#allocation8 + $0x180] sm:$0xff]  ;;  %v900_v40 = vld [vmem:[#allocation8 + $0x188] sm:$0xff]  ;;  %v901_v44 = vld [vmem:[#allocation8 + $0x190] sm:$0xff] }
  0xd5   : > { %4573 = vmatpush3.bf16.msra.mxu0 %v4570_v30  ;;  %4603 = vmatprep.subr.bf16.mxu1 %v4602_v41  ;;  %v759_v30 = vld [vmem:[#allocation8 + $0xf0] sm:$0xff]  ;;  %v884_v43 = vld [vmem:[#allocation8 + $0x108] sm:$0xff]  ;;  %v902_v45 = vld [vmem:[#allocation8 + $0x198] sm:$0xff] }
  0xd6   : > { %4575 = vmatprep.subr.bf16.mxu0 %v4574_v36  ;;  %v4642_v32 = vpack.c.bf16 %v760_v31, %v759_v30  ;;  %v885_v48 = vld [vmem:[#allocation8 + $0x110] sm:$0xff]  ;;  %v886_v49 = vld [vmem:[#allocation8 + $0x118] sm:$0xff]  ;;  %v904_v51 = vld [vmem:[#allocation8 + $0x1a8] sm:$0xff] }
  0xd7   : > { %v4652_v52 = vpack.c.bf16 %v886_v49, %v885_v48  ;;  %v887_v54 = vld [vmem:[#allocation8 + $0x120] sm:$0xff]  ;;  %v1070_v5 = vld [vmem:[#allocation10 + $0x90] sm:$0xff]  ;;  %v1071_v6 = vld [vmem:[#allocation10 + $0x98] sm:$0xff] }
  0xd8   : > { %4605 = vmatpush3.bf16.msra.mxu1 %v4602_v41  ;;  %v883_v41 = vld [vmem:[#allocation8 + $0x100] sm:$0xff]  ;;  %v4682_v11 = vpack.c.bf16 %v1071_v6, %v1070_v5  ;;  %v1054_v12 = vld [vmem:[#allocation10 + $0x10] sm:$0xff]  ;;  %v1057_v24 = vld [vmem:[#allocation10 + $0x28] sm:$0xff] }
  0xd9   : > { %4577 = vmatpush3.bf16.msra.mxu0 %v4574_v36  ;;  %4607 = vmatprep.subr.bf16.mxu1 %v4606_v47  ;;  %v1068_v36 = vld [vmem:[#allocation10 + $0x80] sm:$0xff]  ;;  %v4648_v46 = vpack.c.bf16 %v884_v43, %v883_v41  ;;  %v1074_v28 = vld [vmem:[#allocation10 + $0xb0] sm:$0xff]  ;;  %v1059_v33 = vld [vmem:[#allocation10 + $0x38] sm:$0xff] }
  0xda   : > { %4579 = vmatprep.subr.bf16.mxu0 %v4578_v42  ;;  %v4678_v38 = vpack.c.bf16 %v1069_v37, %v1068_v36  ;;  %v1072_v18 = vld [vmem:[#allocation10 + $0xa0] sm:$0xff]  ;;  %v1077_v36 = vld [vmem:[#allocation10 + $0xc8] sm:$0xff]  ;;  %v1078_v43 = vld [vmem:[#allocation10 + $0xd0] sm:$0xff] }
  0xdb   : > { %v3596_v37 = vld [vmem:[%s6439_s4] ss:$0 sm:$0xff]  ;;  %v1061_v41 = vld [vmem:[#allocation10 + $0x48] sm:$0xff]  ;;  %v1062_v48 = vld [vmem:[#allocation10 + $0x50] sm:$0xff] }
  0xdc   : > { %4609 = vmatpush3.bf16.msra.mxu1 %v4606_v47  ;;  %v4650_v47 = vpack.c.bf16 %v902_v45, %v901_v44  ;;  %v1079_v44 = vld [vmem:[#allocation10 + $0xd8] sm:$0xff] }
  0xdd   : > { %4581 = vmatpush3.bf16.msra.mxu0 %v4578_v42  ;;  %4611 = vmatprep.subr.bf16.mxu1 %v4610_v56  ;;  %v4646_v42 = vpack.c.bf16 %v900_v40, %v899_v39  ;;  %v1060_v40 = vld [vmem:[#allocation10 + $0x40] sm:$0xff]  ;;  %v1063_v49 = vld [vmem:[#allocation10 + $0x58] sm:$0xff] }
  0xde   : > { %4615 = vmatprep.subr.bf16.mxu0 %v4614_v50  ;;  %v903_v50 = vld [vmem:[#allocation8 + $0x1a0] sm:$0xff] }
  0xdf   : > { %v4654_v53 = vpack.c.bf16 %v904_v51, %v903_v50  ;;  %v1080_v50 = vld [vmem:[#allocation10 + $0xe0] sm:$0xff]  ;;  %v1081_v51 = vld [vmem:[#allocation10 + $0xe8] sm:$0xff] }
  0xe0   : > { %4472 = vmatmul.mubr.f32.vlgmr.msra.gmra.mrb[0].mxu0 %v510_v55  ;;  %4613 = vmatpush3.bf16.msra.mxu1 %v4610_v56 }
  0xe1   : > { %4474 = vmatprep.mubr.f32.mxu0 %v511_v57  ;;  %4617 = vmatpush3.bf16.msra.mxu0 %v4616_v58 }
  0xe2   : > { %4619 = vmatprep.subr.bf16.mxu0 %v4618_v59  ;;  %4647 = vmatprep.subr.bf16.mxu1 %v4646_v42  ;;  %v504_v59 = vlaneseq }
  0xe3   : > { %4510 = vmatmul.mubr.f32.vlgmr.msra.gmra.mrb[0].mxu1 %v510_v55  ;;  %v888_v55 = vld [vmem:[#allocation8 + $0x128] sm:$0xff] }
  0xe4   : > { %4475 = vmatmul.mubr.f32.gmra.mrb[2].mxu0 %v512_v0  ;;  %4512 = vmatprep.mubr.f32.mxu1 %v511_v57  ;;  %v4656_v56 = vpack.c.bf16 %v888_v55, %v887_v54  ;;  %v3595_v57 = vld [vmem:[%s6437_s2] ss:$0 sm:$0xff]  ;;  %v5988_v63 = vshrl.u32 %v504_v59, 7  ;;  %v1065_v55 = vld [vmem:[#allocation10 + $0x68] sm:$0xff] }
  0xe5   : > { %4621 = vmatpush3.bf16.msra.mxu0 %v4620_v1  ;;  %4649 = vmatpush3.bf16.msra.mxu1 %v4648_v46  ;;  %v1053_v1 = vld [vmem:[#allocation10 + $0x8] sm:$0xff]  ;;  %v4696_v46 = vpack.c.bf16 %v1061_v41, %v1060_v40  ;;  %v1064_v54 = vld [vmem:[#allocation10 + $0x60] sm:$0xff]  ;;  %v913_v40 = vld [vmem:[#allocation8 + $0x1f0] sm:$0xff] }
  0xe6   : > { %4623 = vmatprep.subr.bf16.mxu0 %v4622_v2  ;;  %4651 = vmatprep.subr.bf16.mxu1 %v4650_v47  ;;  %vm771_vm0 = vcmp.ge.s32.totalorder %v5988_v63, 1  ;;  %vm766_vm1 = vcmp.lt.s32.totalorder %v5988_v63, 1  ;;  %v4698_v47 = vpack.c.bf16 %v1079_v44, %v1078_v43  ;;  %v4704_v59 = vpack.c.bf16 %v1065_v55, %v1064_v54  ;;  %v914_v41 = vld [vmem:[#allocation8 + $0x1f8] sm:$0xff]  ;;  %v897_v43 = vld [vmem:[#allocation8 + $0x170] sm:$0xff] }
  0xe7   : > { %4513 = vmatmul.mubr.f32.gmra.mrb[2].mxu1 %v512_v0  ;;  %v1052_v0 = vld [vmem:[#allocation10] sm:$0xff]  ;;  %vm1089_vm2 = vcmp.lt.s32.totalorder %v5988_v63, 7  ;;  %v898_v44 = vld [vmem:[#allocation8 + $0x178] sm:$0xff]  ;;  %vm1437_vm4 = vcmp.ge.s32.totalorder %v5988_v63, 2  ;;  %vm1432_vm5 = vcmp.lt.s32.totalorder %v5988_v63, 2  ;;  %vm1757_vm6 = vcmp.lt.s32.totalorder %v5988_v63, 6 }
  0xe8   : > { %v4680_v9 = vpack.c.bf16 %v1053_v1, %v1052_v0  ;;  %v1067_v0 = vld [vmem:[#allocation10 + $0x78] sm:$0xff]  ;;  %vm2105_vm8 = vcmp.ge.s32.totalorder %v5988_v63, 4  ;;  %vm2100_vm9 = vcmp.lt.s32.totalorder %v5988_v63, 4 }
  0xe9   : > { %4625 = vmatpush3.bf16.msra.mxu0 %v4624_v7  ;;  %4653 = vmatpush3.bf16.msra.mxu1 %v4652_v52  ;;  %v4700_v52 = vpack.c.bf16 %v1063_v49, %v1062_v48  ;;  %v1223_v48 = vld [vmem:[#allocation10 + $0x188] sm:$0xff] }
  0xea   : > { %4627 = vmatprep.subr.bf16.mxu0 %v4626_v8  ;;  %4655 = vmatprep.subr.bf16.mxu1 %v4654_v53  ;;  %v4702_v53 = vpack.c.bf16 %v1081_v51, %v1080_v50  ;;  %v3597_v51 = vld [vmem:[%s6441_s6] ss:$0 sm:$0xff] }
  0xed   : > { %4629 = vmatpush3.bf16.msra.mxu0 %v4628_v13  ;;  %4657 = vmatpush3.bf16.msra.mxu1 %v4656_v56  ;;  %v1055_v13 = vld [vmem:[#allocation10 + $0x18] sm:$0xff]  ;;  %v1082_v56 = vld [vmem:[#allocation10 + $0xf0] sm:$0xff] }
  0xee   : > { %4631 = vmatprep.subr.bf16.mxu0 %v4630_v14 }
  0xf1   : > { %4633 = vmatpush3.bf16.msra.mxu0 %v4632_v19  ;;  %v1073_v19 = vld [vmem:[#allocation10 + $0xa8] sm:$0xff] }
  0xf2   : > { %4635 = vmatprep.subr.bf16.mxu0 %v4634_v20  ;;  %v4684_v20 = vpack.c.bf16 %v1055_v13, %v1054_v12  ;;  %v4686_v22 = vpack.c.bf16 %v1073_v19, %v1072_v18  ;;  %v6047_v13 = vadd.s32 24, %v5988_v63  ;;  %v889_v19 = vld [vmem:[#allocation8 + $0x130] sm:$0xff]  ;;  %v2748_v63 = vld [vmem:[#allocation8 + $0x698] sm:$0xff] }
  0xf4   : > { %vm1097_vm3 = vcmp.lt.s32.totalorder %v6047_v13, 31  ;;  %vm1765_vm7 = vcmp.lt.s32.totalorder %v6047_v13, 30  ;;  %vm2432_vm10 = vcmp.lt.s32.totalorder %v6047_v13, 28 }
  0xf5   : > { %4637 = vmatpush3.bf16.msra.mxu0 %v4636_v23  ;;  %v1056_v23 = vld [vmem:[#allocation10 + $0x20] sm:$0xff] }
  0xf6   : > { %4639 = vmatprep.subr.bf16.mxu0 %v4638_v26  ;;  %v4688_v30 = vpack.c.bf16 %v1057_v24, %v1056_v23  ;;  %v908_v23 = vld [vmem:[#allocation8 + $0x1c8] sm:$0xff] }
  0xf9   : > { %4641 = vmatpush3.bf16.msra.mxu0 %v4640_v29  ;;  %v1075_v29 = vld [vmem:[#allocation10 + $0xb8] sm:$0xff] }
  0xfa   : > { %4643 = vmatprep.subr.bf16.mxu0 %v4642_v32  ;;  %v4690_v31 = vpack.c.bf16 %v1075_v29, %v1074_v28  ;;  %v1058_v32 = vld [vmem:[#allocation10 + $0x30] sm:$0xff]  ;;  %v910_v29 = vld [vmem:[#allocation8 + $0x1d8] sm:$0xff] }
  0xfb   : > { %v909_v28 = vld [vmem:[#allocation8 + $0x1d0] sm:$0xff] }
  0xfd   : > { %4645 = vmatpush3.bf16.msra.mxu0 %v4644_v35  ;;  %v1076_v35 = vld [vmem:[#allocation10 + $0xc0] sm:$0xff] }
  0xfe   : > { %4679 = vmatprep.subr.bf16.mxu0 %v4678_v38  ;;  %v4692_v38 = vpack.c.bf16 %v1059_v33, %v1058_v32  ;;  %v4694_v39 = vpack.c.bf16 %v1077_v36, %v1076_v35  ;;  %v894_v32 = vld [vmem:[#allocation8 + $0x158] sm:$0xff]  ;;  %v912_v35 = vld [vmem:[#allocation8 + $0x1e8] sm:$0xff] }
 0x1b3   : > { %v4473_v58 = vpop.f32.mrb[0].mxu0 }
 0x1b4   : > { %v602_v60 = vpop.f32.mrb[1].mxu0  ;;  %v5990_v2 = vadd.f32 %v4473_v58, %v3595_v57 }
 0x1b5   : > { %v5985_v61 = vadd.f32 %v3595_v57, %v602_v60 }
 0x1b6   : > { %v5997_v10 = vpop.f32.mrb[0].mxu1  ;;  %v763_v15 = vrot.slane %v5990_v2, 7 }
 0x1b7   : > { %v4476_v62 = vpop.f32.mrb[2].mxu0  ;;  %857 = vmatprep.mubr.f32.mxu0 %v5985_v61  ;;  %v762_v7 = vrot.slane %v5985_v61, 7  ;;  %v710_v14 = vpop.f32.mrb[1].mxu1  ;;  %v6026_v58 = vadd.f32 %v5997_v10, %v3596_v37 }
 0x1b8   : > { %v5992_v3 = vadd.f32 %v4476_v62, %v3595_v57  ;;  %v612_v4 = vpop.f32.mrb[3].mxu0  ;;  %v6022_v45 = vadd.f32 %v3596_v37, %v710_v14  ;;  %v1066_v62 = vld [vmem:[#allocation10 + $0x70] sm:$0xff] }
 0x1b9   : > { %v6001_v16 = vadd.f32 %v3595_v57, %v612_v4  ;;  %v769_v27 = vsel %vm766_vm1, %v762_v7, %v763_v15  ;;  %v1083_v57 = vld [vmem:[#allocation10 + $0xf8] sm:$0xff]  ;;  %v1086_v1 = vrot.slane %v6026_v58, 1  ;;  %v4708_v5 = vpack.c.bf16 %v1067_v0, %v1066_v62 }
 0x1ba   : > { %v765_v8 = vrot.slane %v5992_v3, 7  ;;  %v6008_v21 = vpop.f32.mrb[2].mxu1  ;;  %v4706_v60 = vpack.c.bf16 %v1083_v57, %v1082_v56  ;;  %v1085_v4 = vrot.slane %v6022_v45, 1 }
 0x1bb   : > { %v720_v25 = vpop.f32.mrb[3].mxu1  ;;  %v764_v26 = vrot.slane %v6001_v16, 7 }
 0x1bc   : > { %v770_v17 = vsel %vm766_vm1, %v765_v8, %v762_v7  ;;  %v6030_v6 = vadd.f32 %v3596_v37, %v720_v25  ;;  %v6034_v7 = vadd.f32 %v6008_v21, %v3596_v37  ;;  %v891_v25 = vld [vmem:[#allocation8 + $0x140] sm:$0xff] }
 0x1bd   : > { %3598 = vmatmul.mubr.msk.f32.vlgmr.msra.gmra.mrb[4].mxu0 %vm771_vm0, %v770_v17  ;;  %v768_v34 = vsel %vm766_vm1, %v763_v15, %v764_v26  ;;  %v767_v42 = vsel %vm766_vm1, %v764_v26, %v765_v8  ;;  %v905_v15 = vld [vmem:[#allocation8 + $0x1b0] sm:$0xff]  ;;  %v906_v17 = vld [vmem:[#allocation8 + $0x1b8] sm:$0xff]  ;;  %v892_v26 = vld [vmem:[#allocation8 + $0x148] sm:$0xff] }
 0x1be   : > { %862 = vmatprep.mubr.f32.mxu0 %v5990_v2  ;;  %4681 = vmatpush3.bf16.msra.mxu0 %v4680_v9  ;;  %v1087_v8 = vrot.slane %v6030_v6, 1  ;;  %v1092_v9 = vsel %vm1089_vm2, %v1085_v4, %v1086_v1  ;;  %v1088_v10 = vrot.slane %v6034_v7, 1  ;;  %v4658_v18 = vpack.c.bf16 %v906_v17, %v905_v15  ;;  %v895_v37 = vld [vmem:[#allocation8 + $0x160] sm:$0xff] }
 0x1bf   : > { %4683 = vmatprep.subr.bf16.mxu0 %v4682_v11 }
 0x1c0   : > { %v1091_v11 = vsel %vm1089_vm2, %v1086_v1, %v1087_v8  ;;  %v1090_v12 = vsel %vm1089_vm2, %v1087_v8, %v1088_v10  ;;  %v1093_v14 = vsel %vm1089_vm2, %v1088_v10, %v1085_v4  ;;  %4659 = vmatprep.subr.bf16.mxu1 %v4658_v18 }
 0x1c1   : > { %863 = vmatmul.mubr.f32.gmra.mrb[6].mxu0 %v769_v27  ;;  %v4664_v27 = vpack.c.bf16 %v892_v26, %v891_v25 }
 0x1c2   : > { %867 = vmatprep.mubr.f32.mxu0 %v6001_v16  ;;  %4685 = vmatpush3.bf16.msra.mxu0 %v4684_v20  ;;  %v890_v20 = vld [vmem:[#allocation8 + $0x138] sm:$0xff] }
 0x1c3   : > { %4687 = vmatprep.subr.bf16.mxu0 %v4686_v22  ;;  %v4660_v21 = vpack.c.bf16 %v890_v20, %v889_v19  ;;  %v907_v22 = vld [vmem:[#allocation8 + $0x1c0] sm:$0xff]  ;;  %v1207_v20 = vld [vmem:[#allocation10 + $0x108] sm:$0xff] }
 0x1c4   : > { %v4662_v24 = vpack.c.bf16 %v908_v23, %v907_v22  ;;  %v1206_v19 = vld [vmem:[#allocation10 + $0x100] sm:$0xff]  ;;  %v1224_v22 = vld [vmem:[#allocation10 + $0x190] sm:$0xff]  ;;  %v1225_v23 = vld [vmem:[#allocation10 + $0x198] sm:$0xff] }
 0x1c5   : > { %868 = vmatmul.mubr.f32.gmra.mrb[8].mxu0 %v768_v34  ;;  %4661 = vmatpush3.bf16.msra.mxu1 %v4660_v21  ;;  %v911_v34 = vld [vmem:[#allocation8 + $0x1e0] sm:$0xff]  ;;  %v4712_v26 = vpack.c.bf16 %v1207_v20, %v1206_v19 }
 0x1c6   : > { %872 = vmatprep.mubr.f32.mxu0 %v5992_v3  ;;  %4689 = vmatpush3.bf16.msra.mxu0 %v4688_v30  ;;  %v4666_v30 = vpack.c.bf16 %v910_v29, %v909_v28  ;;  %v4670_v36 = vpack.c.bf16 %v912_v35, %v911_v34  ;;  %v1208_v28 = vld [vmem:[#allocation10 + $0x110] sm:$0xff]  ;;  %v1209_v29 = vld [vmem:[#allocation10 + $0x118] sm:$0xff] }
 0x1c7   : > { %4691 = vmatprep.subr.bf16.mxu0 %v4690_v31  ;;  %4663 = vmatprep.subr.bf16.mxu1 %v4662_v24  ;;  %v893_v31 = vld [vmem:[#allocation8 + $0x150] sm:$0xff]  ;;  %v4716_v34 = vpack.c.bf16 %v1209_v29, %v1208_v28 }
 0x1c8   : > { %v4668_v33 = vpack.c.bf16 %v894_v32, %v893_v31  ;;  %v1226_v31 = vld [vmem:[#allocation10 + $0x1a0] sm:$0xff]  ;;  %v1227_v32 = vld [vmem:[#allocation10 + $0x1a8] sm:$0xff] }
 0x1c9   : > { %873 = vmatmul.mubr.f32.gmra.mrb[10].mxu0 %v767_v42  ;;  %4665 = vmatpush3.bf16.msra.mxu1 %v4664_v27  ;;  %v4674_v42 = vpack.c.bf16 %v914_v41, %v913_v40  ;;  %v4714_v27 = vpack.c.bf16 %v1225_v23, %v1224_v22  ;;  %v4718_v35 = vpack.c.bf16 %v1227_v32, %v1226_v31  ;;  %v1236_v23 = vld [vmem:[#allocation10 + $0x1f0] sm:$0xff]  ;;  %v1221_v31 = vld [vmem:[#allocation10 + $0x178] sm:$0xff] }
 0x1ca   : > { %4693 = vmatpush3.bf16.msra.mxu0 %v4692_v38  ;;  %1180 = vmatprep.mubr.f32.mxu0 %v6022_v45  ;;  %v896_v38 = vld [vmem:[#allocation8 + $0x168] sm:$0xff] }
 0x1cb   : > { %4695 = vmatprep.subr.bf16.mxu0 %v4694_v39  ;;  %4667 = vmatprep.subr.bf16.mxu1 %v4666_v30  ;;  %v4672_v39 = vpack.c.bf16 %v896_v38, %v895_v37  ;;  %v1211_v37 = vld [vmem:[#allocation10 + $0x128] sm:$0xff]  ;;  %v1228_v38 = vld [vmem:[#allocation10 + $0x1b0] sm:$0xff] }
 0x1cd   : > { %4669 = vmatpush3.bf16.msra.mxu1 %v4668_v33 }
 0x1ce   : > { %4697 = vmatpush3.bf16.msra.mxu0 %v4696_v46  ;;  %4671 = vmatprep.subr.bf16.mxu1 %v4670_v36  ;;  %v4676_v46 = vpack.c.bf16 %v898_v44, %v897_v43  ;;  %v1210_v36 = vld [vmem:[#allocation10 + $0x120] sm:$0xff]  ;;  %v1213_v43 = vld [vmem:[#allocation10 + $0x138] sm:$0xff] }
 0x1cf   : > { %4699 = vmatprep.subr.bf16.mxu0 %v4698_v47  ;;  %v1222_v47 = vld [vmem:[#allocation10 + $0x180] sm:$0xff]  ;;  %v4720_v40 = vpack.c.bf16 %v1211_v37, %v1210_v36 }
 0x1d0   : > { %v4710_v49 = vpack.c.bf16 %v1223_v48, %v1222_v47  ;;  %v1230_v44 = vld [vmem:[#allocation10 + $0x1c0] sm:$0xff] }
 0x1d1   : > { %4673 = vmatpush3.bf16.msra.mxu1 %v4672_v39  ;;  %v1229_v39 = vld [vmem:[#allocation10 + $0x1b8] sm:$0xff] }
 0x1d2   : > { %4701 = vmatpush3.bf16.msra.mxu0 %v4700_v52  ;;  %4675 = vmatprep.subr.bf16.mxu1 %v4674_v42  ;;  %v4722_v41 = vpack.c.bf16 %v1229_v39, %v1228_v38  ;;  %v1212_v42 = vld [vmem:[#allocation10 + $0x130] sm:$0xff] }
 0x1d3   : > { %4703 = vmatprep.subr.bf16.mxu0 %v4702_v53  ;;  %v4724_v47 = vpack.c.bf16 %v1213_v43, %v1212_v42 }
 0x1d5   : > { %4677 = vmatpush3.bf16.msra.mxu1 %v4676_v46  ;;  %v1231_v46 = vld [vmem:[#allocation10 + $0x1c8] sm:$0xff] }
 0x1d6   : > { %4705 = vmatpush3.bf16.msra.mxu0 %v4704_v59  ;;  %4711 = vmatprep.subr.bf16.mxu1 %v4710_v49  ;;  %v4726_v49 = vpack.c.bf16 %v1231_v46, %v1230_v44  ;;  %v1410_v44 = vld [vmem:[#allocation8 + $0x280] sm:$0xff]  ;;  %v1411_v46 = vld [vmem:[#allocation8 + $0x288] sm:$0xff] }
 0x1d7   : > { %4707 = vmatprep.subr.bf16.mxu0 %v4706_v60 }
 0x1da   : > { %4709 = vmatpush3.bf16.msra.mxu0 %v4708_v5 }
 0x1dd   : > { %1181 = vmatmul.mubr.f32.vlgmr.msra.gmra.mrb[12].mxu0 %v1092_v9 }
 0x1de   : > { %1185 = vmatprep.mubr.f32.mxu0 %v6026_v58 }
 0x1e1   : > { %1186 = vmatmul.mubr.f32.gmra.mrb[14].mxu0 %v1091_v11 }
 0x1e2   : > { %1190 = vmatprep.mubr.f32.mxu0 %v6030_v6 }
 0x1e5   : > { %1191 = vmatmul.mubr.f32.gmra.mrb[16].mxu0 %v1090_v12 }
 0x1e6   : > { %1195 = vmatprep.mubr.f32.mxu0 %v6034_v7 }
 0x1e9   : > { %3607 = vmatmul.mubr.msk.f32.gmra.mrb[18].mxu0 %vm1097_vm3, %v1093_v14 }
 0x290   : > { %v3750_v50 = vpop.f32.mrb[4].mxu0 }
 0x291   : > { %v3751_v52 = vpop.f32.mrb[5].mxu0 }
 0x292   : > { %v3752_v53 = vadd.f32 %v3751_v52, %v3750_v50  ;;  %v1214_v50 = vld [vmem:[#allocation10 + $0x140] sm:$0xff] }
 0x293   : > { %v3606_v52 = vld [vmem:[%s6477_s26] ss:$0 sm:$0xff] }
 0x294   : > { %v860_v54 = vadd.f32 %v3752_v53, %v3597_v51  ;;  %v3753_v55 = vpop.f32.mrb[6].mxu0 }
 0x295   : > { %v3754_v56 = vpop.f32.mrb[7].mxu0 }
 0x296   : > { %v878_v57 = vmax.f32 %v860_v54, 0.0  ;;  %v3755_v59 = vadd.f32 %v3754_v56, %v3753_v55  ;;  %v1232_v55 = vld [vmem:[#allocation10 + $0x1d0] sm:$0xff]  ;;  %v1233_v56 = vld [vmem:[#allocation10 + $0x1d8] sm:$0xff] }
 0x298   : > { %v865_v60 = vadd.f32 %v3755_v59, %v3597_v51  ;;  %v3756_v62 = vpop.f32.mrb[8].mxu0  ;;  %999 = vmatprep.mubr.f32.mxu1 %v878_v57  ;;  %v917_v5 = vrot.slane %v878_v57, 7 }
 0x299   : > { %v3757_v0 = vpop.f32.mrb[9].mxu0 }
 0x29a   : > { %v879_v1 = vmax.f32 %v865_v60, 0.0  ;;  %v3758_v4 = vadd.f32 %v3757_v0, %v3756_v62  ;;  %v4730_v62 = vpack.c.bf16 %v1233_v56, %v1232_v55  ;;  %v1216_v0 = vld [vmem:[#allocation10 + $0x150] sm:$0xff]  ;;  %v1397_v55 = vld [vmem:[#allocation8 + $0x218] sm:$0xff] }
 0x29c   : > { %v918_v8 = vrot.slane %v879_v1, 7  ;;  %v870_v9 = vadd.f32 %v3758_v4, %v3597_v51  ;;  %v3759_v10 = vpop.f32.mrb[10].mxu0 }
 0x29d   : > { %v3760_v11 = vpop.f32.mrb[11].mxu0 }
 0x29e   : > { %v880_v12 = vmax.f32 %v870_v9, 0.0  ;;  %v3761_v14 = vadd.f32 %v3760_v11, %v3759_v10  ;;  %v923_v15 = vsel %vm766_vm1, %v917_v5, %v918_v8  ;;  %v1234_v9 = vld [vmem:[#allocation10 + $0x1e0] sm:$0xff]  ;;  %v1235_v10 = vld [vmem:[#allocation10 + $0x1e8] sm:$0xff] }
 0x2a0   : > { %v919_v17 = vrot.slane %v880_v12, 7  ;;  %v875_v18 = vadd.f32 %v3761_v14, %v3597_v51  ;;  %v1215_v51 = vld [vmem:[#allocation10 + $0x148] sm:$0xff] }
 0x2a1   : > { %v4728_v57 = vpack.c.bf16 %v1215_v51, %v1214_v50  ;;  %v1412_v51 = vld [vmem:[#allocation8 + $0x290] sm:$0xff] }
 0x2a2   : > { %v881_v21 = vmax.f32 %v875_v18, 0.0  ;;  %v922_v24 = vsel %vm766_vm1, %v918_v8, %v919_v17  ;;  %v1219_v18 = vld [vmem:[#allocation10 + $0x168] sm:$0xff] }
 0x2a4   : > { %v920_v25 = vrot.slane %v881_v21, 7 }
 0x2a6   : > { %v924_v30 = vsel %vm766_vm1, %v920_v25, %v917_v5  ;;  %v921_v33 = vsel %vm766_vm1, %v919_v17, %v920_v25  ;;  %v1218_v17 = vld [vmem:[#allocation10 + $0x160] sm:$0xff] }
 0x2a7   : > { %3601 = vmatmul.mubr.msk.f32.vlgmr.msra.gmra.mrb[4].mxu1 %vm771_vm0, %v924_v30  ;;  %v1220_v30 = vld [vmem:[#allocation10 + $0x170] sm:$0xff] }
 0x2a8   : > { %4713 = vmatpush3.bf16.msra.mxu1 %v4712_v26  ;;  %1004 = vmatprep.mubr.f32.mxu1 %v879_v1  ;;  %v1217_v1 = vld [vmem:[#allocation10 + $0x158] sm:$0xff]  ;;  %v4736_v26 = vpack.c.bf16 %v1219_v18, %v1218_v17  ;;  %v4740_v37 = vpack.c.bf16 %v1221_v31, %v1220_v30  ;;  %v1402_v17 = vld [vmem:[#allocation8 + $0x240] sm:$0xff]  ;;  %v1403_v18 = vld [vmem:[#allocation8 + $0x248] sm:$0xff] }
 0x2a9   : > { %4715 = vmatprep.subr.bf16.mxu1 %v4714_v27  ;;  %v4732_v11 = vpack.c.bf16 %v1217_v1, %v1216_v0  ;;  %v1399_v0 = vld [vmem:[#allocation8 + $0x228] sm:$0xff] }
 0x2aa   : > { %v1407_v30 = vld [vmem:[#allocation8 + $0x268] sm:$0xff] }
 0x2ab   : > { %1005 = vmatmul.mubr.f32.gmra.mrb[6].mxu1 %v923_v15  ;;  %v4734_v15 = vpack.c.bf16 %v1235_v10, %v1234_v9  ;;  %v1400_v9 = vld [vmem:[#allocation8 + $0x230] sm:$0xff]  ;;  %v1401_v10 = vld [vmem:[#allocation8 + $0x238] sm:$0xff] }
 0x2ac   : > { %4717 = vmatpush3.bf16.msra.mxu1 %v4716_v34  ;;  %1009 = vmatprep.mubr.f32.mxu1 %v880_v12 }
 0x2ad   : > { %4719 = vmatprep.subr.bf16.mxu1 %v4718_v35 }
 0x2af   : > { %1010 = vmatmul.mubr.f32.gmra.mrb[8].mxu1 %v922_v24  ;;  %v1237_v24 = vld [vmem:[#allocation10 + $0x1f8] sm:$0xff] }
 0x2b0   : > { %4721 = vmatpush3.bf16.msra.mxu1 %v4720_v40  ;;  %1014 = vmatprep.mubr.f32.mxu1 %v881_v21  ;;  %v3838_v48 = vpop.f32.mrb[12].mxu0  ;;  %v4738_v29 = vpack.c.bf16 %v1237_v24, %v1236_v23  ;;  %v1404_v23 = vld [vmem:[#allocation8 + $0x250] sm:$0xff]  ;;  %v1405_v24 = vld [vmem:[#allocation8 + $0x258] sm:$0xff] }
 0x2b1   : > { %4723 = vmatprep.subr.bf16.mxu1 %v4722_v41  ;;  %v3839_v53 = vpop.f32.mrb[13].mxu0 }
 0x2b2   : > { %v3840_v54 = vadd.f32 %v3839_v53, %v3838_v48  ;;  %v1394_v48 = vld [vmem:[#allocation8 + $0x200] sm:$0xff] }
 0x2b3   : > { %1015 = vmatmul.mubr.f32.gmra.mrb[10].mxu1 %v921_v33 }
 0x2b4   : > { %4725 = vmatpush3.bf16.msra.mxu1 %v4724_v47  ;;  %v1183_v59 = vadd.f32 %v3840_v54, %v3606_v52  ;;  %v3841_v60 = vpop.f32.mrb[14].mxu0  ;;  %v4742_v47 = vpack.c.bf16 %v1411_v46, %v1410_v44  ;;  %v1396_v54 = vld [vmem:[#allocation8 + $0x210] sm:$0xff]  ;;  %v1550_v46 = vld [vmem:[#allocation8 + $0x308] sm:$0xff] }
 0x2b5   : > { %4727 = vmatprep.subr.bf16.mxu1 %v4726_v49  ;;  %v3842_v4 = vpop.f32.mrb[15].mxu0  ;;  %v1395_v49 = vld [vmem:[#allocation8 + $0x208] sm:$0xff]  ;;  %v4748_v56 = vpack.c.bf16 %v1397_v55, %v1396_v54 }
 0x2b6   : > { %v1201_v5 = vmax.f32 %v1183_v59, 0.0  ;;  %v3843_v8 = vadd.f32 %v3842_v4, %v3841_v60  ;;  %v4744_v50 = vpack.c.bf16 %v1395_v49, %v1394_v48  ;;  %4743 = vmatprep.subr.bf16.mxu0 %v4742_v47  ;;  %v1415_v59 = vld [vmem:[#allocation8 + $0x2a8] sm:$0xff]  ;;  %v1416_v4 = vld [vmem:[#allocation8 + $0x2b0] sm:$0xff]  ;;  %v1568_v48 = vld [vmem:[#allocation8 + $0x398] sm:$0xff] }
 0x2b7   : > { %v1567_v47 = vld [vmem:[#allocation8 + $0x390] sm:$0xff]  ;;  %v1570_v54 = vld [vmem:[#allocation8 + $0x3a8] sm:$0xff] }
 0x2b8   : > { %4729 = vmatpush3.bf16.msra.mxu1 %v4728_v57  ;;  %v1188_v12 = vadd.f32 %v3843_v8, %v3606_v52  ;;  %v3844_v14 = vpop.f32.mrb[16].mxu0  ;;  %1322 = vmatprep.mubr.f32.mxu1 %v1201_v5  ;;  %v1240_v20 = vrot.slane %v1201_v5, 1  ;;  %v1414_v57 = vld [vmem:[#allocation8 + $0x2a0] sm:$0xff]  ;;  %v1417_v5 = vld [vmem:[#allocation8 + $0x2b8] sm:$0xff] }
 0x2b9   : > { %4731 = vmatprep.subr.bf16.mxu1 %v4730_v62  ;;  %v3845_v19 = vpop.f32.mrb[17].mxu0  ;;  %4745 = vmatpush3.bf16.msra.mxu0 %v4744_v50  ;;  %v4750_v60 = vpack.c.bf16 %v1415_v59, %v1414_v57  ;;  %v1398_v62 = vld [vmem:[#allocation8 + $0x220] sm:$0xff]  ;;  %v4754_v8 = vpack.c.bf16 %v1417_v5, %v1416_v4  ;;  %v4778_v50 = vpack.c.bf16 %v1568_v48, %v1567_v47  ;;  %v1554_v59 = vld [vmem:[#allocation8 + $0x328] sm:$0xff] }
 0x2ba   : > { %v1202_v21 = vmax.f32 %v1188_v12, 0.0  ;;  %v3846_v22 = vadd.f32 %v3845_v19, %v3844_v14  ;;  %v4752_v1 = vpack.c.bf16 %v1399_v0, %v1398_v62  ;;  %v1418_v12 = vld [vmem:[#allocation8 + $0x2c0] sm:$0xff]  ;;  %v1419_v14 = vld [vmem:[#allocation8 + $0x2c8] sm:$0xff]  ;;  %v4760_v19 = vpack.c.bf16 %v1403_v18, %v1402_v17 }
 0x2bb   : > { %v1553_v57 = vld [vmem:[#allocation8 + $0x320] sm:$0xff] }
 0x2bc   : > { %4733 = vmatpush3.bf16.msra.mxu1 %v4732_v11  ;;  %v1241_v25 = vrot.slane %v1202_v21, 1  ;;  %v1193_v27 = vadd.f32 %v3846_v22, %v3606_v52  ;;  %v3847_v28 = vpop.f32.mrb[18].mxu0  ;;  %v4756_v11 = vpack.c.bf16 %v1401_v10, %v1400_v9  ;;  %v3600_v0 = vld [vmem:[%s6441_s6 + $0x1] ss:$0 sm:$0xff] }
 0x2bd   : > { %4735 = vmatprep.subr.bf16.mxu1 %v4734_v15  ;;  %v3848_v32 = vpop.f32.mrb[19].mxu0  ;;  %v4758_v15 = vpack.c.bf16 %v1419_v14, %v1418_v12 }
 0x2be   : > { %v1203_v33 = vmax.f32 %v1193_v27, 0.0  ;;  %v3849_v34 = vadd.f32 %v3848_v32, %v3847_v28  ;;  %v1246_v35 = vsel %vm1089_vm2, %v1240_v20, %v1241_v25  ;;  %v1423_v27 = vld [vmem:[#allocation8 + $0x2e8] sm:$0xff]  ;;  %v1424_v32 = vld [vmem:[#allocation8 + $0x2f0] sm:$0xff] }
 0x2c0   : > { %4737 = vmatpush3.bf16.msra.mxu1 %v4736_v26  ;;  %v1242_v36 = vrot.slane %v1203_v33, 1  ;;  %v1198_v38 = vadd.f32 %v3849_v34, %v3606_v52  ;;  %v1413_v52 = vld [vmem:[#allocation8 + $0x298] sm:$0xff]  ;;  %v1422_v26 = vld [vmem:[#allocation8 + $0x2e0] sm:$0xff] }
 0x2c1   : > { %4739 = vmatprep.subr.bf16.mxu1 %v4738_v29  ;;  %v4746_v53 = vpack.c.bf16 %v1413_v52, %v1412_v51  ;;  %v4766_v28 = vpack.c.bf16 %v1423_v27, %v1422_v26  ;;  %v1406_v29 = vld [vmem:[#allocation8 + $0x260] sm:$0xff]  ;;  %v1551_v51 = vld [vmem:[#allocation8 + $0x310] sm:$0xff]  ;;  %v1552_v52 = vld [vmem:[#allocation8 + $0x318] sm:$0xff] }
 0x2c2   : > { %v1204_v39 = vmax.f32 %v1198_v38, 0.0  ;;  %v1245_v40 = vsel %vm1089_vm2, %v1241_v25, %v1242_v36  ;;  %v4764_v25 = vpack.c.bf16 %v1405_v24, %v1404_v23  ;;  %v4768_v31 = vpack.c.bf16 %v1407_v30, %v1406_v29  ;;  %v1735_v38 = vld [vmem:[#allocation10 + $0x280] sm:$0xff] }
 0x2c3   : > { %4747 = vmatprep.subr.bf16.mxu0 %v4746_v53  ;;  %v1569_v53 = vld [vmem:[#allocation8 + $0x3a0] sm:$0xff]  ;;  %v4780_v55 = vpack.c.bf16 %v1552_v52, %v1551_v51 }
 0x2c4   : > { %4741 = vmatpush3.bf16.msra.mxu1 %v4740_v37  ;;  %v1243_v41 = vrot.slane %v1204_v39, 1  ;;  %4749 = vmatpush3.bf16.msra.mxu0 %v4748_v56  ;;  %v4782_v56 = vpack.c.bf16 %v1570_v54, %v1569_v53 }
 0x2c5   : > { %4751 = vmatprep.subr.bf16.mxu0 %v4750_v60  ;;  %v4784_v60 = vpack.c.bf16 %v1554_v59, %v1553_v57 }
 0x2c6   : > { %v1244_v42 = vsel %vm1089_vm2, %v1242_v36, %v1243_v41  ;;  %v1247_v43 = vsel %vm1089_vm2, %v1243_v41, %v1240_v20  ;;  %v1420_v20 = vld [vmem:[#allocation8 + $0x2d0] sm:$0xff]  ;;  %v1409_v36 = vld [vmem:[#allocation8 + $0x278] sm:$0xff]  ;;  %v1565_v41 = vld [vmem:[#allocation8 + $0x380] sm:$0xff] }
 0x2c7   : > { %1323 = vmatmul.mubr.f32.vlgmr.msra.gmra.mrb[12].mxu1 %v1246_v35  ;;  %v1408_v35 = vld [vmem:[#allocation8 + $0x270] sm:$0xff] }
 0x2c8   : > { %1327 = vmatprep.mubr.f32.mxu1 %v1202_v21  ;;  %4753 = vmatpush3.bf16.msra.mxu0 %v4752_v1  ;;  %v1421_v21 = vld [vmem:[#allocation8 + $0x2d8] sm:$0xff]  ;;  %v4772_v37 = vpack.c.bf16 %v1409_v36, %v1408_v35 }
 0x2c9   : > { %4755 = vmatprep.subr.bf16.mxu0 %v4754_v8  ;;  %v4762_v22 = vpack.c.bf16 %v1421_v21, %v1420_v20 }
 0x2cb   : > { %1328 = vmatmul.mubr.f32.gmra.mrb[14].mxu1 %v1245_v40 }
 0x2cc   : > { %1332 = vmatprep.mubr.f32.mxu1 %v1203_v33  ;;  %4757 = vmatpush3.bf16.msra.mxu0 %v4756_v11  ;;  %v1425_v33 = vld [vmem:[#allocation8 + $0x2f8] sm:$0xff] }
 0x2cd   : > { %4759 = vmatprep.subr.bf16.mxu0 %v4758_v15  ;;  %v4770_v34 = vpack.c.bf16 %v1425_v33, %v1424_v32 }
 0x2cf   : > { %1333 = vmatmul.mubr.f32.gmra.mrb[16].mxu1 %v1244_v42  ;;  %v1566_v42 = vld [vmem:[#allocation8 + $0x388] sm:$0xff] }
 0x2d0   : > { %1337 = vmatprep.mubr.f32.mxu1 %v1204_v39  ;;  %4761 = vmatpush3.bf16.msra.mxu0 %v4760_v19  ;;  %v1736_v39 = vld [vmem:[#allocation10 + $0x288] sm:$0xff]  ;;  %v4774_v44 = vpack.c.bf16 %v1566_v42, %v1565_v41 }
 0x2d1   : > { %4763 = vmatprep.subr.bf16.mxu0 %v4762_v22  ;;  %v4806_v40 = vpack.c.bf16 %v1736_v39, %v1735_v38 }
 0x2d2   : > { %4775 = vmatprep.subr.bf16.mxu1 %v4774_v44 }
 0x2d3   : > { %3610 = vmatmul.mubr.msk.f32.gmra.mrb[18].mxu1 %vm1097_vm3, %v1247_v43  ;;  %v1549_v43 = vld [vmem:[#allocation8 + $0x300] sm:$0xff] }
 0x2d4   : > { %4765 = vmatpush3.bf16.msra.mxu0 %v4764_v25  ;;  %v4776_v49 = vpack.c.bf16 %v1550_v46, %v1549_v43 }
 0x2d5   : > { %4767 = vmatprep.subr.bf16.mxu0 %v4766_v28 }
 0x2d6   : > { %4777 = vmatpush3.bf16.msra.mxu1 %v4776_v49 }
 0x2d7   : > { %4779 = vmatprep.subr.bf16.mxu1 %v4778_v50 }
 0x2d8   : > { %4769 = vmatpush3.bf16.msra.mxu0 %v4768_v31 }
 0x2d9   : > { %4771 = vmatprep.subr.bf16.mxu0 %v4770_v34 }
 0x2da   : > { %4781 = vmatpush3.bf16.msra.mxu1 %v4780_v55 }
 0x2db   : > { %4783 = vmatprep.subr.bf16.mxu1 %v4782_v56 }
 0x2dc   : > { %4773 = vmatpush3.bf16.msra.mxu0 %v4772_v37 }
 0x2dd   : > { %4807 = vmatprep.subr.bf16.mxu0 %v4806_v40  ;;  %v3609_v40 = vld [vmem:[%s6477_s26 + $0x1] ss:$0 sm:$0xff] }
 0x2de   : > { %4785 = vmatpush3.bf16.msra.mxu1 %v4784_v60  ;;  %v1719_v60 = vld [vmem:[#allocation10 + $0x200] sm:$0xff] }
 0x37a   : > { %v3794_v62 = vpop.f32.mrb[4].mxu1 }
 0x37b   : > { %v3795_v1 = vpop.f32.mrb[5].mxu1 }
 0x37c   : > { %v3796_v4 = vadd.f32 %v3795_v1, %v3794_v62  ;;  %v1720_v62 = vld [vmem:[#allocation10 + $0x208] sm:$0xff] }
 0x37e   : > { %v1002_v5 = vadd.f32 %v3796_v4, %v3600_v0  ;;  %v3797_v8 = vpop.f32.mrb[6].mxu1 }
 0x37f   : > { %v3798_v9 = vpop.f32.mrb[7].mxu1 }
 0x380   : > { %v1020_v10 = vmax.f32 %v1002_v5, 0.0  ;;  %v3799_v11 = vadd.f32 %v3798_v9, %v3797_v8 }
 0x382   : > { %v3602_v12 = vmul.f32 -1.442695, %v1020_v10  ;;  %v1007_v14 = vadd.f32 %v3799_v11, %v3600_v0  ;;  %v3800_v15 = vpop.f32.mrb[8].mxu1  ;;  %v1737_v10 = vld [vmem:[#allocation10 + $0x290] sm:$0xff]  ;;  %v1738_v11 = vld [vmem:[#allocation10 + $0x298] sm:$0xff] }
 0x383   : > { %v3801_v17 = vpop.f32.mrb[9].mxu1 }
 0x384   : > { %5252 = vpow2.f32 %v3602_v12  ;;  %v1021_v18 = vmax.f32 %v1007_v14, 0.0  ;;  %v3802_v19 = vadd.f32 %v3801_v17, %v3800_v15  ;;  %v4808_v14 = vpack.c.bf16 %v1720_v62, %v1719_v60 }
 0x386   : > { %v3603_v20 = vmul.f32 -1.442695, %v1021_v18  ;;  %v1012_v21 = vadd.f32 %v3802_v19, %v3600_v0  ;;  %v3803_v22 = vpop.f32.mrb[10].mxu1 }
 0x387   : > { %v3804_v23 = vpop.f32.mrb[11].mxu1 }
 0x388   : > { %v1022_v24 = vmax.f32 %v1012_v21, 0.0  ;;  %v3805_v25 = vadd.f32 %v3804_v23, %v3803_v22  ;;  %5254 = vpow2.f32 %v3603_v20  ;;  %v1721_v20 = vld [vmem:[#allocation10 + $0x210] sm:$0xff]  ;;  %v1722_v21 = vld [vmem:[#allocation10 + $0x218] sm:$0xff] }
 0x38a   : > { %v3604_v26 = vmul.f32 -1.442695, %v1022_v24  ;;  %v1017_v27 = vadd.f32 %v3805_v25, %v3600_v0  ;;  %v1739_v25 = vld [vmem:[#allocation10 + $0x2a0] sm:$0xff] }
 0x38c   : > { %v1023_v28 = vmax.f32 %v1017_v27, 0.0  ;;  %5256 = vpow2.f32 %v3604_v26  ;;  %v1740_v26 = vld [vmem:[#allocation10 + $0x2a8] sm:$0xff] }
 0x38e   : > { %v5253_v29 = vpop.eup %5252  ;;  %v3605_v30 = vmul.f32 -1.442695, %v1023_v28 }
 0x38f   : > { %v1036_v31 = vadd.f32 1.0, %v5253_v29  ;;  %v4812_v29 = vpack.c.bf16 %v1722_v21, %v1721_v20  ;;  %v1734_v20 = vld [vmem:[#allocation10 + $0x278] sm:$0xff] }
 0x390   : > { %5258 = vpow2.f32 %v3605_v30 }
 0x391   : > { %5260 = vrcp.f32 %v1036_v31  ;;  %v4814_v31 = vpack.c.bf16 %v1740_v26, %v1739_v25 }
 0x392   : > { %v5255_v32 = vpop.eup %5254 }
 0x393   : > { %v1037_v33 = vadd.f32 1.0, %v5255_v32  ;;  %v1723_v32 = vld [vmem:[#allocation10 + $0x220] sm:$0xff] }
 0x395   : > { %5262 = vrcp.f32 %v1037_v33  ;;  %v1724_v33 = vld [vmem:[#allocation10 + $0x228] sm:$0xff] }
 0x396   : > { %v5257_v34 = vpop.eup %5256 }
 0x397   : > { %v1038_v38 = vadd.f32 1.0, %v5257_v34 }
 0x39a   : > { %v5259_v35 = vpop.eup %5258  ;;  %v3882_v36 = vpop.f32.mrb[12].mxu1 }
 0x39b   : > { %v5261_v37 = vpop.eup %5260  ;;  %v1039_v39 = vadd.f32 1.0, %v5259_v35  ;;  %v3883_v41 = vpop.f32.mrb[13].mxu1  ;;  %v1741_v35 = vld [vmem:[#allocation10 + $0x2b0] sm:$0xff] }
 0x39c   : > { %v3884_v42 = vadd.f32 %v3883_v41, %v3882_v36  ;;  %v6088_v43 = vmul.f32 %v5261_v37, %v5985_v61  ;;  %v1742_v36 = vld [vmem:[#allocation10 + $0x2b8] sm:$0xff]  ;;  %v1725_v41 = vld [vmem:[#allocation10 + $0x230] sm:$0xff] }
 0x39d   : > { %5264 = vrcp.f32 %v1039_v39 }
 0x39e   : > { %v1325_v44 = vadd.f32 %v3884_v42, %v3609_v40  ;;  %v3885_v46 = vpop.f32.mrb[14].mxu1  ;;  %1523 = vmatprep.mubr.f32.mxu0 %v6088_v43  ;;  %5266 = vrcp.f32 %v1038_v38  ;;  %v1428_v18 = vrot.slane %v6088_v43, 6  ;;  %v4816_v38 = vpack.c.bf16 %v1724_v33, %v1723_v32  ;;  %v1726_v42 = vld [vmem:[#allocation10 + $0x238] sm:$0xff]  ;;  %v1571_v33 = vld [vmem:[#allocation8 + $0x3b0] sm:$0xff] }
 0x39f   : > { %v3886_v47 = vpop.f32.mrb[15].mxu1  ;;  %v5263_v54 = vpop.eup %5262 }
 0x3a0   : > { %v1343_v48 = vmax.f32 %v1325_v44, 0.0  ;;  %v3887_v49 = vadd.f32 %v3886_v47, %v3885_v46  ;;  %v6092_v4 = vmul.f32 %v5263_v54, %v5990_v2  ;;  %v4810_v2 = vpack.c.bf16 %v1738_v11, %v1737_v10  ;;  %v1743_v46 = vld [vmem:[#allocation10 + $0x2c0] sm:$0xff]  ;;  %v1744_v47 = vld [vmem:[#allocation10 + $0x2c8] sm:$0xff] }
 0x3a1   : > { %v1748_v10 = vld [vmem:[#allocation10 + $0x2e8] sm:$0xff] }
 0x3a2   : > { %v3611_v50 = vmul.f32 -1.442695, %v1343_v48  ;;  %v1330_v51 = vadd.f32 %v3887_v49, %v3609_v40  ;;  %v3888_v52 = vpop.f32.mrb[16].mxu1  ;;  %v4820_v49 = vpack.c.bf16 %v1726_v42, %v1725_v41  ;;  %v1557_v41 = vld [vmem:[#allocation8 + $0x340] sm:$0xff]  ;;  %v1558_v42 = vld [vmem:[#allocation8 + $0x348] sm:$0xff] }
 0x3a3   : > { %v3889_v53 = vpop.f32.mrb[17].mxu1 }
 0x3a4   : > { %5268 = vpow2.f32 %v3611_v50  ;;  %v1344_v55 = vmax.f32 %v1330_v51, 0.0  ;;  %v3890_v56 = vadd.f32 %v3889_v53, %v3888_v52  ;;  %v4822_v51 = vpack.c.bf16 %v1744_v47, %v1743_v46  ;;  %v1727_v52 = vld [vmem:[#allocation10 + $0x240] sm:$0xff]  ;;  %v1728_v53 = vld [vmem:[#allocation10 + $0x248] sm:$0xff]  ;;  %v1575_v46 = vld [vmem:[#allocation8 + $0x3d0] sm:$0xff] }
 0x3a5   : > { %v1576_v47 = vld [vmem:[#allocation8 + $0x3d8] sm:$0xff] }
 0x3a6   : > { %v3612_v57 = vmul.f32 -1.442695, %v1344_v55  ;;  %v1335_v61 = vadd.f32 %v3890_v56, %v3609_v40  ;;  %v3891_v59 = vpop.f32.mrb[18].mxu1  ;;  %v1745_v55 = vld [vmem:[#allocation10 + $0x2d0] sm:$0xff]  ;;  %v1746_v56 = vld [vmem:[#allocation10 + $0x2d8] sm:$0xff] }
 0x3a7   : > { %v5265_v0 = vpop.eup %5264  ;;  %v3892_v1 = vpop.f32.mrb[19].mxu1  ;;  %v4826_v62 = vpack.c.bf16 %v1746_v56, %v1745_v55  ;;  %v1561_v55 = vld [vmem:[#allocation8 + $0x360] sm:$0xff]  ;;  %v1562_v56 = vld [vmem:[#allocation8 + $0x368] sm:$0xff] }
 0x3a8   : > { %v6095_v5 = vmul.f32 %v5265_v0, %v5992_v3  ;;  %5270 = vpow2.f32 %v3612_v57  ;;  %v1345_v8 = vmax.f32 %v1335_v61, 0.0  ;;  %v3893_v9 = vadd.f32 %v3892_v1, %v3891_v59  ;;  %v5267_v12 = vpop.eup %5266  ;;  %v1729_v0 = vld [vmem:[#allocation10 + $0x250] sm:$0xff]  ;;  %v1730_v1 = vld [vmem:[#allocation10 + $0x258] sm:$0xff] }
 0x3a9   : > { %v1429_v3 = vrot.slane %v6092_v4, 6  ;;  %v6105_v24 = vmul.f32 %v5267_v12, %v6001_v16  ;;  %v4824_v61 = vpack.c.bf16 %v1728_v53, %v1727_v52  ;;  %v4828_v11 = vpack.c.bf16 %v1730_v1, %v1729_v0  ;;  %v1577_v52 = vld [vmem:[#allocation8 + $0x3e0] sm:$0xff]  ;;  %v1578_v53 = vld [vmem:[#allocation8 + $0x3e8] sm:$0xff]  ;;  %v1564_v0 = vld [vmem:[#allocation8 + $0x378] sm:$0xff] }
 0x3aa   : > { %v3613_v15 = vmul.f32 -1.442695, %v1345_v8  ;;  %v1340_v17 = vadd.f32 %v3893_v9, %v3609_v40  ;;  %v1431_v19 = vrot.slane %v6095_v5, 6  ;;  %v4818_v40 = vpack.c.bf16 %v1742_v36, %v1741_v35  ;;  %v1747_v9 = vld [vmem:[#allocation10 + $0x2e0] sm:$0xff]  ;;  %v1555_v35 = vld [vmem:[#allocation8 + $0x330] sm:$0xff]  ;;  %v1556_v36 = vld [vmem:[#allocation8 + $0x338] sm:$0xff] }
 0x3ab   : > { %v1435_v16 = vsel %vm1432_vm5, %v1428_v18, %v1429_v3  ;;  %v1430_v34 = vrot.slane %v6105_v24, 6  ;;  %v4830_v12 = vpack.c.bf16 %v1748_v10, %v1747_v9  ;;  %v1890_v9 = vld [vmem:[#allocation10 + $0x380] sm:$0xff]  ;;  %v1891_v10 = vld [vmem:[#allocation10 + $0x388] sm:$0xff] }
 0x3ac   : > { %5272 = vpow2.f32 %v3613_v15  ;;  %v1346_v22 = vmax.f32 %v1340_v17, 0.0  ;;  %v1436_v23 = vsel %vm1432_vm5, %v1431_v19, %v1428_v18  ;;  %v1732_v15 = vld [vmem:[#allocation10 + $0x268] sm:$0xff]  ;;  %v1749_v17 = vld [vmem:[#allocation10 + $0x2f0] sm:$0xff]  ;;  %v1750_v18 = vld [vmem:[#allocation10 + $0x2f8] sm:$0xff] }
 0x3ad   : > { %3617 = vmatmul.mubr.msk.f32.vlgmr.msra.gmra.mrb[20].mxu0 %vm1437_vm4, %v1436_v23  ;;  %v1434_v44 = vsel %vm1432_vm5, %v1429_v3, %v1430_v34  ;;  %v1433_v54 = vsel %vm1432_vm5, %v1430_v34, %v1431_v19  ;;  %v4834_v3 = vpack.c.bf16 %v1750_v18, %v1749_v17 }
 0x3ae   : > { %v5269_v27 = vpop.eup %5268  ;;  %v3614_v28 = vmul.f32 -1.442695, %v1346_v22  ;;  %4809 = vmatpush3.bf16.msra.mxu0 %v4808_v14  ;;  %1528 = vmatprep.mubr.f32.mxu0 %v6092_v4  ;;  %v1731_v14 = vld [vmem:[#allocation10 + $0x260] sm:$0xff] }
 0x3af   : > { %v1359_v30 = vadd.f32 1.0, %v5269_v27  ;;  %4811 = vmatprep.subr.bf16.mxu0 %v4810_v2  ;;  %v4832_v2 = vpack.c.bf16 %v1732_v15, %v1731_v14  ;;  %v3616_v14 = vld [vmem:[%s6441_s6 + $0x2] ss:$0 sm:$0xff] }
 0x3b0   : > { %5274 = vpow2.f32 %v3614_v28 }
 0x3b1   : > { %5276 = vrcp.f32 %v1359_v30  ;;  %1529 = vmatmul.mubr.f32.gmra.mrb[22].mxu0 %v1435_v16  ;;  %v1572_v16 = vld [vmem:[#allocation8 + $0x3b8] sm:$0xff] }
 0x3b2   : > { %v5271_v37 = vpop.eup %5270  ;;  %4813 = vmatpush3.bf16.msra.mxu0 %v4812_v29  ;;  %1533 = vmatprep.mubr.f32.mxu0 %v6105_v24  ;;  %v4786_v34 = vpack.c.bf16 %v1572_v16, %v1571_v33 }
 0x3b3   : > { %v1360_v39 = vadd.f32 1.0, %v5271_v37  ;;  %4815 = vmatprep.subr.bf16.mxu0 %v4814_v31  ;;  %v4788_v37 = vpack.c.bf16 %v1556_v36, %v1555_v35  ;;  %v1874_v35 = vld [vmem:[#allocation10 + $0x300] sm:$0xff]  ;;  %v1875_v36 = vld [vmem:[#allocation10 + $0x308] sm:$0xff] }
 0x3b4   : > { %4787 = vmatprep.subr.bf16.mxu1 %v4786_v34 }
 0x3b5   : > { %1534 = vmatmul.mubr.f32.gmra.mrb[24].mxu0 %v1434_v44  ;;  %5278 = vrcp.f32 %v1360_v39  ;;  %4789 = vmatpush3.bf16.msra.mxu1 %v4788_v37  ;;  %v1574_v39 = vld [vmem:[#allocation8 + $0x3c8] sm:$0xff]  ;;  %v4792_v44 = vpack.c.bf16 %v1558_v42, %v1557_v41  ;;  %v4840_v42 = vpack.c.bf16 %v1875_v36, %v1874_v35 }
 0x3b6   : > { %v5273_v48 = vpop.eup %5272  ;;  %4817 = vmatpush3.bf16.msra.mxu0 %v4816_v38  ;;  %1538 = vmatprep.mubr.f32.mxu0 %v6095_v5  ;;  %v1573_v38 = vld [vmem:[#allocation8 + $0x3c0] sm:$0xff]  ;;  %v1887_v35 = vld [vmem:[#allocation10 + $0x368] sm:$0xff] }
 0x3b7   : > { %v1361_v50 = vadd.f32 1.0, %v5273_v48  ;;  %4819 = vmatprep.subr.bf16.mxu0 %v4818_v40  ;;  %v4790_v40 = vpack.c.bf16 %v1574_v39, %v1573_v38  ;;  %v4794_v48 = vpack.c.bf16 %v1576_v47, %v1575_v46  ;;  %v1892_v38 = vld [vmem:[#allocation10 + $0x390] sm:$0xff]  ;;  %v1893_v39 = vld [vmem:[#allocation10 + $0x398] sm:$0xff] }
 0x3b8   : > { %v1876_v46 = vld [vmem:[#allocation10 + $0x310] sm:$0xff]  ;;  %v1877_v47 = vld [vmem:[#allocation10 + $0x318] sm:$0xff] }
 0x3b9   : > { %1539 = vmatmul.mubr.f32.gmra.mrb[26].mxu0 %v1433_v54  ;;  %5280 = vrcp.f32 %v1361_v50  ;;  %4791 = vmatprep.subr.bf16.mxu1 %v4790_v40  ;;  %v1560_v50 = vld [vmem:[#allocation8 + $0x358] sm:$0xff]  ;;  %v4798_v54 = vpack.c.bf16 %v1578_v53, %v1577_v52  ;;  %v4844_v52 = vpack.c.bf16 %v1877_v47, %v1876_v46 }
 0x3ba   : > { %v5275_v57 = vpop.eup %5274  ;;  %4821 = vmatpush3.bf16.msra.mxu0 %v4820_v49  ;;  %4793 = vmatpush3.bf16.msra.mxu1 %v4792_v44  ;;  %v1559_v49 = vld [vmem:[#allocation8 + $0x350] sm:$0xff]  ;;  %v4842_v44 = vpack.c.bf16 %v1893_v39, %v1892_v38  ;;  %v1905_v39 = vld [vmem:[#allocation10 + $0x3f8] sm:$0xff] }
 0x3bb   : > { %v5277_v59 = vpop.eup %5276  ;;  %v1362_v60 = vadd.f32 1.0, %v5275_v57  ;;  %4823 = vmatprep.subr.bf16.mxu0 %v4822_v51  ;;  %v4796_v51 = vpack.c.bf16 %v1560_v50, %v1559_v49  ;;  %4795 = vmatprep.subr.bf16.mxu1 %v4794_v48  ;;  %v4800_v57 = vpack.c.bf16 %v1562_v56, %v1561_v55  ;;  %v1894_v49 = vld [vmem:[#allocation10 + $0x3a0] sm:$0xff]  ;;  %v1895_v50 = vld [vmem:[#allocation10 + $0x3a8] sm:$0xff]  ;;  %v1896_v56 = vld [vmem:[#allocation10 + $0x3b0] sm:$0xff] }
 0x3bc   : > { %v6120_v8 = vmul.f32 %v5277_v59, %v6022_v45  ;;  %v1733_v45 = vld [vmem:[#allocation10 + $0x270] sm:$0xff]  ;;  %v1580_v59 = vld [vmem:[#allocation8 + $0x3f8] sm:$0xff]  ;;  %v4846_v53 = vpack.c.bf16 %v1895_v50, %v1894_v49  ;;  %v1879_v55 = vld [vmem:[#allocation10 + $0x328] sm:$0xff] }
 0x3bd   : > { %5282 = vrcp.f32 %v1362_v60  ;;  %v4836_v23 = vpack.c.bf16 %v1734_v20, %v1733_v45  ;;  %v1904_v38 = vld [vmem:[#allocation10 + $0x3f0] sm:$0xff]  ;;  %v1889_v50 = vld [vmem:[#allocation10 + $0x378] sm:$0xff] }
 0x3be   : > { %4825 = vmatpush3.bf16.msra.mxu0 %v4824_v61  ;;  %1848 = vmatprep.mubr.f32.mxu0 %v6120_v8  ;;  %v1753_v28 = vrot.slane %v6120_v8, 2  ;;  %v1579_v61 = vld [vmem:[#allocation8 + $0x3f0] sm:$0xff] }
 0x3bf   : > { %4827 = vmatprep.subr.bf16.mxu0 %v4826_v62  ;;  %v5279_v19 = vpop.eup %5278  ;;  %4797 = vmatpush3.bf16.msra.mxu1 %v4796_v51  ;;  %v4802_v60 = vpack.c.bf16 %v1580_v59, %v1579_v61  ;;  %v1563_v62 = vld [vmem:[#allocation8 + $0x370] sm:$0xff] }
 0x3c0   : > { %v6124_v21 = vmul.f32 %v5279_v19, %v6026_v58  ;;  %4799 = vmatprep.subr.bf16.mxu1 %v4798_v54  ;;  %v4804_v1 = vpack.c.bf16 %v1564_v0, %v1563_v62  ;;  %v1878_v54 = vld [vmem:[#allocation10 + $0x320] sm:$0xff]  ;;  %v1881_v62 = vld [vmem:[#allocation10 + $0x338] sm:$0xff]  ;;  %v1888_v49 = vld [vmem:[#allocation10 + $0x370] sm:$0xff] }
 0x3c1   : > { %v4848_v61 = vpack.c.bf16 %v1879_v55, %v1878_v54  ;;  %v1898_v0 = vld [vmem:[#allocation10 + $0x3c0] sm:$0xff] }
 0x3c2   : > { %4829 = vmatpush3.bf16.msra.mxu0 %v4828_v11  ;;  %v1754_v25 = vrot.slane %v6124_v21, 2  ;;  %v4838_v11 = vpack.c.bf16 %v1891_v10, %v1890_v9 }
 0x3c3   : > { %4831 = vmatprep.subr.bf16.mxu0 %v4830_v12  ;;  %v5281_v22 = vpop.eup %5280  ;;  %4801 = vmatpush3.bf16.msra.mxu1 %v4800_v57  ;;  %v1897_v57 = vld [vmem:[#allocation10 + $0x3b8] sm:$0xff] }
 0x3c4   : > { %v6128_v26 = vmul.f32 %v5281_v22, %v6030_v6  ;;  %v1760_v29 = vsel %vm1757_vm6, %v1753_v28, %v1754_v25  ;;  %4803 = vmatprep.subr.bf16.mxu1 %v4802_v60  ;;  %v4850_v59 = vpack.c.bf16 %v1897_v57, %v1896_v56  ;;  %v1880_v60 = vld [vmem:[#allocation10 + $0x330] sm:$0xff]  ;;  %v4868_v56 = vpack.c.bf16 %v1889_v50, %v1888_v49 }
 0x3c5   : > { %v4852_v10 = vpack.c.bf16 %v1881_v62, %v1880_v60  ;;  %v2092_v50 = vld [vmem:[#allocation8 + $0x4f0] sm:$0xff] }
 0x3c6   : > { %4833 = vmatpush3.bf16.msra.mxu0 %v4832_v2  ;;  %v1755_v58 = vrot.slane %v6128_v26, 2 }
 0x3c7   : > { %4835 = vmatprep.subr.bf16.mxu0 %v4834_v3  ;;  %v5283_v27 = vpop.eup %5282  ;;  %4805 = vmatpush3.bf16.msra.mxu1 %v4804_v1  ;;  %v1899_v1 = vld [vmem:[#allocation10 + $0x3c8] sm:$0xff] }
 0x3c8   : > { %v6136_v30 = vmul.f32 %v5283_v27, %v6034_v7  ;;  %v1759_v6 = vsel %vm1757_vm6, %v1754_v25, %v1755_v58  ;;  %4839 = vmatprep.subr.bf16.mxu1 %v4838_v11  ;;  %v3626_v11 = vld [vmem:[%s6477_s26 + $0x2] ss:$0 sm:$0xff] }
 0x3ca   : > { %4837 = vmatpush3.bf16.msra.mxu0 %v4836_v23  ;;  %v1756_v31 = vrot.slane %v6136_v30, 2 }
 0x3cc   : > { %v1758_v32 = vsel %vm1757_vm6, %v1755_v58, %v1756_v31  ;;  %v1761_v7 = vsel %vm1757_vm6, %v1756_v31, %v1753_v28 }
 0x3cd   : > { %1849 = vmatmul.mubr.f32.vlgmr.msra.gmra.mrb[28].mxu0 %v1760_v29 }
 0x3ce   : > { %1853 = vmatprep.mubr.f32.mxu0 %v6124_v21 }
 0x3d1   : > { %1854 = vmatmul.mubr.f32.gmra.mrb[30].mxu0 %v1759_v6 }
 0x3d2   : > { %1858 = vmatprep.mubr.f32.mxu0 %v6128_v26 }
 0x3d5   : > { %1859 = vmatmul.mubr.f32.gmra.mrb[32].mxu0 %v1758_v32 }
 0x3d6   : > { %1863 = vmatprep.mubr.f32.mxu0 %v6136_v30 }
 0x3d9   : > { %3627 = vmatmul.mubr.msk.f32.gmra.mrb[34].mxu0 %vm1765_vm7, %v1761_v7 }
 0x480   : > { %v3926_v12 = vpop.f32.mrb[20].mxu0 }
 0x481   : > { %v3927_v15 = vpop.f32.mrb[21].mxu0 }
 0x482   : > { %v3928_v17 = vadd.f32 %v3927_v15, %v3926_v12  ;;  %v1882_v15 = vld [vmem:[#allocation10 + $0x340] sm:$0xff] }
 0x484   : > { %v1526_v18 = vadd.f32 %v3928_v17, %v3616_v14  ;;  %v3929_v19 = vpop.f32.mrb[22].mxu0  ;;  %v1883_v17 = vld [vmem:[#allocation10 + $0x348] sm:$0xff] }
 0x485   : > { %v3930_v2 = vpop.f32.mrb[23].mxu0 }
 0x486   : > { %v1544_v3 = vmax.f32 %v1526_v18, 0.0  ;;  %v3931_v45 = vadd.f32 %v3930_v2, %v3929_v19  ;;  %v1900_v19 = vld [vmem:[#allocation10 + $0x3d0] sm:$0xff]  ;;  %v1901_v2 = vld [vmem:[#allocation10 + $0x3d8] sm:$0xff] }
 0x488   : > { %v1531_v20 = vadd.f32 %v3931_v45, %v3616_v14  ;;  %v3932_v22 = vpop.f32.mrb[24].mxu0  ;;  %1665 = vmatprep.mubr.f32.mxu1 %v1544_v3  ;;  %v1583_v28 = vrot.slane %v1544_v3, 6 }
 0x489   : > { %v3933_v23 = vpop.f32.mrb[25].mxu0 }
 0x48a   : > { %v1545_v25 = vmax.f32 %v1531_v20, 0.0  ;;  %v3934_v27 = vadd.f32 %v3933_v23, %v3932_v22  ;;  %v4856_v20 = vpack.c.bf16 %v1883_v17, %v1882_v15  ;;  %v4858_v23 = vpack.c.bf16 %v1901_v2, %v1900_v19  ;;  %v2081_v15 = vld [vmem:[#allocation8 + $0x498] sm:$0xff] }
 0x48b   : > { %v2065_v19 = vld [vmem:[#allocation8 + $0x418] sm:$0xff] }
 0x48c   : > { %v1584_v29 = vrot.slane %v1545_v25, 6  ;;  %v1536_v58 = vadd.f32 %v3934_v27, %v3616_v14  ;;  %v3935_v6 = vpop.f32.mrb[26].mxu0  ;;  %v1885_v27 = vld [vmem:[#allocation10 + $0x358] sm:$0xff] }
 0x48d   : > { %v3936_v31 = vpop.f32.mrb[27].mxu0 }
 0x48e   : > { %v1546_v32 = vmax.f32 %v1536_v58, 0.0  ;;  %v3937_v7 = vadd.f32 %v3936_v31, %v3935_v6  ;;  %v1589_v33 = vsel %vm1432_vm5, %v1583_v28, %v1584_v29  ;;  %v1902_v58 = vld [vmem:[#allocation10 + $0x3e0] sm:$0xff]  ;;  %v1903_v6 = vld [vmem:[#allocation10 + $0x3e8] sm:$0xff] }
 0x490   : > { %v1585_v16 = vrot.slane %v1546_v32, 6  ;;  %v1541_v34 = vadd.f32 %v3937_v7, %v3616_v14  ;;  %v4854_v14 = vpack.c.bf16 %v1899_v1, %v1898_v0  ;;  %v2078_v0 = vld [vmem:[#allocation8 + $0x480] sm:$0xff]  ;;  %v2079_v1 = vld [vmem:[#allocation8 + $0x488] sm:$0xff] }
 0x492   : > { %v1547_v37 = vmax.f32 %v1541_v34, 0.0  ;;  %v1588_v40 = vsel %vm1432_vm5, %v1584_v29, %v1585_v16  ;;  %v1886_v34 = vld [vmem:[#allocation10 + $0x360] sm:$0xff] }
 0x493   : > { %v4864_v46 = vpack.c.bf16 %v1887_v35, %v1886_v34  ;;  %v2071_v34 = vld [vmem:[#allocation8 + $0x448] sm:$0xff] }
 0x494   : > { %v1586_v41 = vrot.slane %v1547_v37, 6 }
 0x496   : > { %v1590_v48 = vsel %vm1432_vm5, %v1586_v41, %v1583_v28  ;;  %v1587_v51 = vsel %vm1432_vm5, %v1585_v16, %v1586_v41  ;;  %v4862_v16 = vpack.c.bf16 %v1903_v6, %v1902_v58  ;;  %v2068_v58 = vld [vmem:[#allocation8 + $0x430] sm:$0xff]  ;;  %v2069_v6 = vld [vmem:[#allocation8 + $0x438] sm:$0xff] }
 0x497   : > { %3620 = vmatmul.mubr.msk.f32.vlgmr.msra.gmra.mrb[20].mxu1 %vm1437_vm4, %v1590_v48  ;;  %v4866_v48 = vpack.c.bf16 %v1905_v39, %v1904_v38  ;;  %v2072_v39 = vld [vmem:[#allocation8 + $0x450] sm:$0xff] }
 0x498   : > { %4841 = vmatpush3.bf16.msra.mxu1 %v4840_v42  ;;  %1670 = vmatprep.mubr.f32.mxu1 %v1545_v25  ;;  %v1884_v25 = vld [vmem:[#allocation10 + $0x350] sm:$0xff] }
 0x499   : > { %4843 = vmatprep.subr.bf16.mxu1 %v4842_v44  ;;  %v4860_v7 = vpack.c.bf16 %v1885_v27, %v1884_v25  ;;  %v2084_v27 = vld [vmem:[#allocation8 + $0x4b0] sm:$0xff] }
 0x49b   : > { %1671 = vmatmul.mubr.f32.gmra.mrb[22].mxu1 %v1589_v33 }
 0x49c   : > { %4845 = vmatpush3.bf16.msra.mxu1 %v4844_v52  ;;  %1675 = vmatprep.mubr.f32.mxu1 %v1546_v32 }
 0x49d   : > { %4847 = vmatprep.subr.bf16.mxu1 %v4846_v53 }
 0x49f   : > { %1676 = vmatmul.mubr.f32.gmra.mrb[24].mxu1 %v1588_v40 }
 0x4a0   : > { %v4014_v9 = vpop.f32.mrb[28].mxu0  ;;  %4849 = vmatpush3.bf16.msra.mxu1 %v4848_v61  ;;  %1680 = vmatprep.mubr.f32.mxu1 %v1547_v37 }
 0x4a1   : > { %v4015_v12 = vpop.f32.mrb[29].mxu0  ;;  %4851 = vmatprep.subr.bf16.mxu1 %v4850_v59 }
 0x4a2   : > { %v4016_v18 = vadd.f32 %v4015_v12, %v4014_v9  ;;  %v4870_v9 = vpack.c.bf16 %v2079_v1, %v2078_v0  ;;  %v2218_v1 = vld [vmem:[#allocation8 + $0x508] sm:$0xff] }
 0x4a3   : > { %1681 = vmatmul.mubr.f32.gmra.mrb[26].mxu1 %v1587_v51 }
 0x4a4   : > { %v1851_v3 = vadd.f32 %v4016_v18, %v3626_v11  ;;  %v4017_v45 = vpop.f32.mrb[30].mxu0  ;;  %4853 = vmatpush3.bf16.msra.mxu1 %v4852_v10  ;;  %v2062_v10 = vld [vmem:[#allocation8 + $0x400] sm:$0xff]  ;;  %4871 = vmatprep.subr.bf16.mxu0 %v4870_v9  ;;  %v2064_v18 = vld [vmem:[#allocation8 + $0x410] sm:$0xff] }
 0x4a5   : > { %v4018_v22 = vpop.f32.mrb[31].mxu0  ;;  %4855 = vmatprep.subr.bf16.mxu1 %v4854_v14  ;;  %v2080_v14 = vld [vmem:[#allocation8 + $0x490] sm:$0xff]  ;;  %v4876_v2 = vpack.c.bf16 %v2065_v19, %v2064_v18  ;;  %v2238_v18 = vld [vmem:[#allocation8 + $0x5a8] sm:$0xff] }
 0x4a6   : > { %v1869_v28 = vmax.f32 %v1851_v3, 0.0  ;;  %v4019_v29 = vadd.f32 %v4018_v22, %v4017_v45  ;;  %v4874_v17 = vpack.c.bf16 %v2081_v15, %v2080_v14  ;;  %v2082_v3 = vld [vmem:[#allocation8 + $0x4a0] sm:$0xff]  ;;  %v2083_v45 = vld [vmem:[#allocation8 + $0x4a8] sm:$0xff]  ;;  %v2235_v9 = vld [vmem:[#allocation8 + $0x590] sm:$0xff] }
 0x4a7   : > { %v2066_v22 = vld [vmem:[#allocation8 + $0x420] sm:$0xff]  ;;  %v2219_v14 = vld [vmem:[#allocation8 + $0x510] sm:$0xff]  ;;  %v2220_v15 = vld [vmem:[#allocation8 + $0x518] sm:$0xff] }
 0x4a8   : > { %v1856_v31 = vadd.f32 %v4019_v29, %v3626_v11  ;;  %v4020_v32 = vpop.f32.mrb[32].mxu0  ;;  %4857 = vmatpush3.bf16.msra.mxu1 %v4856_v20  ;;  %1990 = vmatprep.mubr.f32.mxu1 %v1869_v28  ;;  %v1908_v40 = vrot.slane %v1869_v28, 2  ;;  %v4878_v20 = vpack.c.bf16 %v2083_v45, %v2082_v3  ;;  %v2085_v28 = vld [vmem:[#allocation8 + $0x4b8] sm:$0xff]  ;;  %v4908_v19 = vpack.c.bf16 %v2220_v15, %v2219_v14  ;;  %v2221_v3 = vld [vmem:[#allocation8 + $0x520] sm:$0xff]  ;;  %v2222_v45 = vld [vmem:[#allocation8 + $0x528] sm:$0xff] }
 0x4a9   : > { %v4021_v33 = vpop.f32.mrb[33].mxu0  ;;  %4859 = vmatprep.subr.bf16.mxu1 %v4858_v23  ;;  %v2067_v23 = vld [vmem:[#allocation8 + $0x428] sm:$0xff]  ;;  %v4882_v29 = vpack.c.bf16 %v2085_v28, %v2084_v27 }
 0x4aa   : > { %v1870_v36 = vmax.f32 %v1856_v31, 0.0  ;;  %v4022_v37 = vadd.f32 %v4021_v33, %v4020_v32  ;;  %v4880_v25 = vpack.c.bf16 %v2067_v23, %v2066_v22  ;;  %v4884_v31 = vpack.c.bf16 %v2069_v6, %v2068_v58  ;;  %v2086_v32 = vld [vmem:[#allocation8 + $0x4c0] sm:$0xff] }
 0x4ab   : > { %v3619_v23 = vld [vmem:[%s6441_s6 + $0x3] ss:$0 sm:$0xff] }
 0x4ac   : > { %v1909_v41 = vrot.slane %v1870_v36, 2  ;;  %v1861_v42 = vadd.f32 %v4022_v37, %v3626_v11  ;;  %v4023_v44 = vpop.f32.mrb[34].mxu0  ;;  %4861 = vmatpush3.bf16.msra.mxu1 %v4860_v7  ;;  %v2087_v7 = vld [vmem:[#allocation8 + $0x4c8] sm:$0xff]  ;;  %v2089_v37 = vld [vmem:[#allocation8 + $0x4d8] sm:$0xff] }
 0x4ad   : > { %v4024_v47 = vpop.f32.mrb[35].mxu0  ;;  %4863 = vmatprep.subr.bf16.mxu1 %v4862_v16  ;;  %v4886_v33 = vpack.c.bf16 %v2087_v7, %v2086_v32  ;;  %v2070_v16 = vld [vmem:[#allocation8 + $0x440] sm:$0xff] }
 0x4ae   : > { %v1871_v51 = vmax.f32 %v1861_v42, 0.0  ;;  %v4025_v52 = vadd.f32 %v4024_v47, %v4023_v44  ;;  %v1914_v53 = vsel %vm1757_vm6, %v1908_v40, %v1909_v41  ;;  %v4888_v35 = vpack.c.bf16 %v2071_v34, %v2070_v16  ;;  %v2090_v42 = vld [vmem:[#allocation8 + $0x4e0] sm:$0xff]  ;;  %v2091_v44 = vld [vmem:[#allocation8 + $0x4e8] sm:$0xff] }
 0x4af   : > { %v2074_v47 = vld [vmem:[#allocation8 + $0x460] sm:$0xff] }
 0x4b0   : > { %v1910_v54 = vrot.slane %v1871_v51, 2  ;;  %v1866_v55 = vadd.f32 %v4025_v52, %v3626_v11  ;;  %4865 = vmatpush3.bf16.msra.mxu1 %v4864_v46  ;;  %v2063_v11 = vld [vmem:[#allocation8 + $0x408] sm:$0xff]  ;;  %v4894_v46 = vpack.c.bf16 %v2091_v44, %v2090_v42 }
 0x4b1   : > { %4867 = vmatprep.subr.bf16.mxu1 %v4866_v48  ;;  %v4872_v12 = vpack.c.bf16 %v2063_v11, %v2062_v10  ;;  %v2075_v48 = vld [vmem:[#allocation8 + $0x468] sm:$0xff]  ;;  %v2236_v10 = vld [vmem:[#allocation8 + $0x598] sm:$0xff] }
 0x4b2   : > { %v1872_v57 = vmax.f32 %v1866_v55, 0.0  ;;  %v1913_v61 = vsel %vm1757_vm6, %v1909_v41, %v1910_v54  ;;  %v4896_v49 = vpack.c.bf16 %v2075_v48, %v2074_v47 }
 0x4b3   : > { %4873 = vmatpush3.bf16.msra.mxu0 %v4872_v12  ;;  %v4906_v12 = vpack.c.bf16 %v2236_v10, %v2235_v9 }
 0x4b4   : > { %v1911_v59 = vrot.slane %v1872_v57, 2  ;;  %4869 = vmatpush3.bf16.msra.mxu1 %v4868_v56  ;;  %4875 = vmatprep.subr.bf16.mxu0 %v4874_v17  ;;  %v2403_v56 = vld [vmem:[#allocation10 + $0x480] sm:$0xff] }
 0x4b5   : > { %v2237_v17 = vld [vmem:[#allocation8 + $0x5a0] sm:$0xff] }
 0x4b6   : > { %v1912_v60 = vsel %vm1757_vm6, %v1910_v54, %v1911_v59  ;;  %v1915_v62 = vsel %vm1757_vm6, %v1911_v59, %v1908_v40  ;;  %v2073_v40 = vld [vmem:[#allocation8 + $0x458] sm:$0xff]  ;;  %v2233_v59 = vld [vmem:[#allocation8 + $0x580] sm:$0xff] }
 0x4b7   : > { %1991 = vmatmul.mubr.f32.vlgmr.msra.gmra.mrb[28].mxu1 %v1914_v53  ;;  %4877 = vmatpush3.bf16.msra.mxu0 %v4876_v2  ;;  %v4892_v41 = vpack.c.bf16 %v2073_v40, %v2072_v39  ;;  %v2076_v53 = vld [vmem:[#allocation8 + $0x470] sm:$0xff]  ;;  %v2077_v54 = vld [vmem:[#allocation8 + $0x478] sm:$0xff]  ;;  %v4910_v2 = vpack.c.bf16 %v2238_v18, %v2237_v17 }
 0x4b8   : > { %1995 = vmatprep.mubr.f32.mxu1 %v1870_v36  ;;  %4879 = vmatprep.subr.bf16.mxu0 %v4878_v20  ;;  %v2088_v36 = vld [vmem:[#allocation8 + $0x4d0] sm:$0xff]  ;;  %v4900_v55 = vpack.c.bf16 %v2077_v54, %v2076_v53  ;;  %v4912_v20 = vpack.c.bf16 %v2222_v45, %v2221_v3 }
 0x4b9   : > { %v4890_v38 = vpack.c.bf16 %v2089_v37, %v2088_v36 }
 0x4bb   : > { %1996 = vmatmul.mubr.f32.gmra.mrb[30].mxu1 %v1913_v61  ;;  %4881 = vmatpush3.bf16.msra.mxu0 %v4880_v25 }
 0x4bc   : > { %2000 = vmatprep.mubr.f32.mxu1 %v1871_v51  ;;  %4883 = vmatprep.subr.bf16.mxu0 %v4882_v29  ;;  %v2093_v51 = vld [vmem:[#allocation8 + $0x4f8] sm:$0xff] }
 0x4bd   : > { %v4898_v52 = vpack.c.bf16 %v2093_v51, %v2092_v50 }
 0x4bf   : > { %2001 = vmatmul.mubr.f32.gmra.mrb[32].mxu1 %v1912_v60  ;;  %4885 = vmatpush3.bf16.msra.mxu0 %v4884_v31  ;;  %v2234_v60 = vld [vmem:[#allocation8 + $0x588] sm:$0xff] }
 0x4c0   : > { %2005 = vmatprep.mubr.f32.mxu1 %v1872_v57  ;;  %4887 = vmatprep.subr.bf16.mxu0 %v4886_v33  ;;  %v2404_v57 = vld [vmem:[#allocation10 + $0x488] sm:$0xff]  ;;  %v4902_v0 = vpack.c.bf16 %v2234_v60, %v2233_v59 }
 0x4c1   : > { %v4934_v61 = vpack.c.bf16 %v2404_v57, %v2403_v56 }
 0x4c2   : > { %4903 = vmatprep.subr.bf16.mxu1 %v4902_v0 }
 0x4c3   : > { %3630 = vmatmul.mubr.msk.f32.gmra.mrb[34].mxu1 %vm1765_vm7, %v1915_v62  ;;  %4889 = vmatpush3.bf16.msra.mxu0 %v4888_v35  ;;  %v2217_v62 = vld [vmem:[#allocation8 + $0x500] sm:$0xff] }
 0x4c4   : > { %4891 = vmatprep.subr.bf16.mxu0 %v4890_v38  ;;  %v4904_v11 = vpack.c.bf16 %v2218_v1, %v2217_v62 }
 0x4c6   : > { %4905 = vmatpush3.bf16.msra.mxu1 %v4904_v11 }
 0x4c7   : > { %4893 = vmatpush3.bf16.msra.mxu0 %v4892_v41  ;;  %4907 = vmatprep.subr.bf16.mxu1 %v4906_v12 }
 0x4c8   : > { %4895 = vmatprep.subr.bf16.mxu0 %v4894_v46 }
 0x4ca   : > { %4909 = vmatpush3.bf16.msra.mxu1 %v4908_v19 }
 0x4cb   : > { %4897 = vmatpush3.bf16.msra.mxu0 %v4896_v49  ;;  %4911 = vmatprep.subr.bf16.mxu1 %v4910_v2 }
 0x4cc   : > { %4899 = vmatprep.subr.bf16.mxu0 %v4898_v52 }
 0x4ce   : > { %4913 = vmatpush3.bf16.msra.mxu1 %v4912_v20 }
 0x4cf   : > { %4901 = vmatpush3.bf16.msra.mxu0 %v4900_v55 }
 0x4d0   : > { %4935 = vmatprep.subr.bf16.mxu0 %v4934_v61  ;;  %v3629_v61 = vld [vmem:[%s6477_s26 + $0x3] ss:$0 sm:$0xff] }
 0x56a   : > { %v3970_v22 = vpop.f32.mrb[20].mxu1 }
 0x56b   : > { %v3971_v25 = vpop.f32.mrb[21].mxu1 }
 0x56c   : > { %v3972_v27 = vadd.f32 %v3971_v25, %v3970_v22  ;;  %v2387_v22 = vld [vmem:[#allocation10 + $0x400] sm:$0xff] }
 0x56e   : > { %v1668_v28 = vadd.f32 %v3972_v27, %v3619_v23  ;;  %v3973_v29 = vpop.f32.mrb[22].mxu1 }
 0x56f   : > { %v3974_v58 = vpop.f32.mrb[23].mxu1 }
 0x570   : > { %v1686_v6 = vmax.f32 %v1668_v28, 0.0  ;;  %v3975_v31 = vadd.f32 %v3974_v58, %v3973_v29 }
 0x572   : > { %v3621_v32 = vmul.f32 -1.442695, %v1686_v6  ;;  %v1673_v7 = vadd.f32 %v3975_v31, %v3619_v23  ;;  %v3976_v33 = vpop.f32.mrb[24].mxu1  ;;  %v2405_v31 = vld [vmem:[#allocation10 + $0x490] sm:$0xff] }
 0x573   : > { %v3977_v16 = vpop.f32.mrb[25].mxu1 }
 0x574   : > { %5284 = vpow2.f32 %v3621_v32  ;;  %v1687_v34 = vmax.f32 %v1673_v7, 0.0  ;;  %v3978_v35 = vadd.f32 %v3977_v16, %v3976_v33  ;;  %v2406_v32 = vld [vmem:[#allocation10 + $0x498] sm:$0xff] }
 0x576   : > { %v3622_v36 = vmul.f32 -1.442695, %v1687_v34  ;;  %v1678_v37 = vadd.f32 %v3978_v35, %v3619_v23  ;;  %v3979_v38 = vpop.f32.mrb[26].mxu1 }
 0x577   : > { %v3980_v39 = vpop.f32.mrb[27].mxu1 }
 0x578   : > { %v1688_v40 = vmax.f32 %v1678_v37, 0.0  ;;  %v3981_v41 = vadd.f32 %v3980_v39, %v3979_v38  ;;  %5286 = vpow2.f32 %v3622_v36  ;;  %v4938_v37 = vpack.c.bf16 %v2406_v32, %v2405_v31  ;;  %v2389_v39 = vld [vmem:[#allocation10 + $0x410] sm:$0xff]  ;;  %v2398_v32 = vld [vmem:[#allocation10 + $0x458] sm:$0xff] }
 0x579   : > { %v2397_v31 = vld [vmem:[#allocation10 + $0x450] sm:$0xff] }
 0x57a   : > { %v3623_v42 = vmul.f32 -1.442695, %v1688_v40  ;;  %v1683_v44 = vadd.f32 %v3981_v41, %v3619_v23  ;;  %v2388_v23 = vld [vmem:[#allocation10 + $0x408] sm:$0xff]  ;;  %v2390_v40 = vld [vmem:[#allocation10 + $0x418] sm:$0xff] }
 0x57b   : > { %v4936_v33 = vpack.c.bf16 %v2388_v23, %v2387_v22  ;;  %v2414_v22 = vld [vmem:[#allocation10 + $0x4d8] sm:$0xff] }
 0x57c   : > { %v1689_v46 = vmax.f32 %v1683_v44, 0.0  ;;  %5288 = vpow2.f32 %v3623_v42 }
 0x57e   : > { %v5285_v47 = vpop.eup %5284  ;;  %v3624_v48 = vmul.f32 -1.442695, %v1689_v46  ;;  %v2407_v46 = vld [vmem:[#allocation10 + $0x4a0] sm:$0xff] }
 0x57f   : > { %v1702_v49 = vadd.f32 1.0, %v5285_v47  ;;  %v2408_v47 = vld [vmem:[#allocation10 + $0x4a8] sm:$0xff] }
 0x580   : > { %5290 = vpow2.f32 %v3624_v48 }
 0x581   : > { %5292 = vrcp.f32 %v1702_v49 }
 0x582   : > { %v5287_v50 = vpop.eup %5286 }
 0x583   : > { %v1703_v51 = vadd.f32 1.0, %v5287_v50  ;;  %v4940_v50 = vpack.c.bf16 %v2390_v40, %v2389_v39  ;;  %v2418_v39 = vld [vmem:[#allocation10 + $0x4f8] sm:$0xff] }
 0x585   : > { %5294 = vrcp.f32 %v1703_v51 }
 0x586   : > { %v5289_v52 = vpop.eup %5288 }
 0x587   : > { %v1704_v56 = vadd.f32 1.0, %v5289_v52  ;;  %v4942_v52 = vpack.c.bf16 %v2408_v47, %v2407_v46  ;;  %v2401_v46 = vld [vmem:[#allocation10 + $0x470] sm:$0xff]  ;;  %v2402_v47 = vld [vmem:[#allocation10 + $0x478] sm:$0xff] }
 0x58a   : > { %v5291_v53 = vpop.eup %5290  ;;  %v4058_v54 = vpop.f32.mrb[28].mxu1 }
 0x58b   : > { %v5293_v55 = vpop.eup %5292  ;;  %v1705_v57 = vadd.f32 1.0, %v5291_v53  ;;  %v4059_v59 = vpop.f32.mrb[29].mxu1  ;;  %v2391_v53 = vld [vmem:[#allocation10 + $0x420] sm:$0xff] }
 0x58c   : > { %v4060_v60 = vadd.f32 %v4059_v59, %v4058_v54  ;;  %v6184_v62 = vmul.f32 %v5293_v55, %v6088_v43  ;;  %v2392_v54 = vld [vmem:[#allocation10 + $0x428] sm:$0xff] }
 0x58d   : > { %5296 = vrcp.f32 %v1705_v57  ;;  %v2409_v57 = vld [vmem:[#allocation10 + $0x4b0] sm:$0xff] }
 0x58e   : > { %v1993_v0 = vadd.f32 %v4060_v60, %v3629_v61  ;;  %v4061_v1 = vpop.f32.mrb[30].mxu1  ;;  %2191 = vmatprep.mubr.f32.mxu0 %v6184_v62  ;;  %5298 = vrcp.f32 %v1704_v56  ;;  %v2096_v35 = vrot.slane %v6184_v62, 4  ;;  %v4944_v60 = vpack.c.bf16 %v2392_v54, %v2391_v53 }
 0x58f   : > { %v4062_v9 = vpop.f32.mrb[31].mxu1  ;;  %v5295_v18 = vpop.eup %5294 }
 0x590   : > { %v2011_v10 = vmax.f32 %v1993_v0, 0.0  ;;  %v4063_v11 = vadd.f32 %v4062_v9, %v4061_v1  ;;  %v6188_v28 = vmul.f32 %v5295_v18, %v6092_v4  ;;  %v2393_v9 = vld [vmem:[#allocation10 + $0x430] sm:$0xff] }
 0x592   : > { %v3631_v12 = vmul.f32 -1.442695, %v2011_v10  ;;  %v1998_v14 = vadd.f32 %v4063_v11, %v3629_v61  ;;  %v4064_v15 = vpop.f32.mrb[32].mxu1  ;;  %v2097_v38 = vrot.slane %v6188_v28, 4  ;;  %v2394_v10 = vld [vmem:[#allocation10 + $0x438] sm:$0xff] }
 0x593   : > { %v4065_v17 = vpop.f32.mrb[33].mxu1 }
 0x594   : > { %5300 = vpow2.f32 %v3631_v12  ;;  %v2012_v19 = vmax.f32 %v1998_v14, 0.0  ;;  %v4066_v2 = vadd.f32 %v4065_v17, %v4064_v15  ;;  %v2103_v55 = vsel %vm2100_vm9, %v2096_v35, %v2097_v38  ;;  %v2411_v12 = vld [vmem:[#allocation10 + $0x4c0] sm:$0xff]  ;;  %v2412_v14 = vld [vmem:[#allocation10 + $0x4c8] sm:$0xff] }
 0x595   : > { %v4948_v17 = vpack.c.bf16 %v2394_v10, %v2393_v9  ;;  %v2240_v9 = vld [vmem:[#allocation8 + $0x5b8] sm:$0xff] }
 0x596   : > { %v3632_v3 = vmul.f32 -1.442695, %v2012_v19  ;;  %v2003_v45 = vadd.f32 %v4066_v2, %v3629_v61  ;;  %v4067_v20 = vpop.f32.mrb[34].mxu1  ;;  %v4950_v19 = vpack.c.bf16 %v2412_v14, %v2411_v12  ;;  %v2395_v2 = vld [vmem:[#allocation10 + $0x440] sm:$0xff]  ;;  %v2224_v12 = vld [vmem:[#allocation8 + $0x538] sm:$0xff] }
 0x597   : > { %v5297_v25 = vpop.eup %5296  ;;  %v4068_v27 = vpop.f32.mrb[35].mxu1 }
 0x598   : > { %v6191_v29 = vmul.f32 %v5297_v25, %v6095_v5  ;;  %5302 = vpow2.f32 %v3632_v3  ;;  %v2013_v58 = vmax.f32 %v2003_v45, 0.0  ;;  %v4069_v6 = vadd.f32 %v4068_v27, %v4067_v20  ;;  %v5299_v7 = vpop.eup %5298  ;;  %v2396_v3 = vld [vmem:[#allocation10 + $0x448] sm:$0xff]  ;;  %v2413_v20 = vld [vmem:[#allocation10 + $0x4d0] sm:$0xff] }
 0x599   : > { %v6201_v44 = vmul.f32 %v5299_v7, %v6105_v24  ;;  %v4952_v25 = vpack.c.bf16 %v2396_v3, %v2395_v2  ;;  %v2226_v2 = vld [vmem:[#allocation8 + $0x548] sm:$0xff] }
 0x59a   : > { %v3633_v16 = vmul.f32 -1.442695, %v2013_v58  ;;  %v2008_v34 = vadd.f32 %v4069_v6, %v3629_v61  ;;  %v2099_v36 = vrot.slane %v6191_v29, 4  ;;  %v2410_v61 = vld [vmem:[#allocation10 + $0x4b8] sm:$0xff]  ;;  %v4954_v6 = vpack.c.bf16 %v2414_v22, %v2413_v20 }
 0x59b   : > { %v2098_v56 = vrot.slane %v6201_v44, 4  ;;  %v4946_v1 = vpack.c.bf16 %v2410_v61, %v2409_v57  ;;  %v2244_v20 = vld [vmem:[#allocation8 + $0x5d8] sm:$0xff] }
 0x59c   : > { %5304 = vpow2.f32 %v3633_v16  ;;  %v2014_v41 = vmax.f32 %v2008_v34, 0.0  ;;  %v2104_v42 = vsel %vm2100_vm9, %v2099_v36, %v2096_v35  ;;  %v2416_v16 = vld [vmem:[#allocation10 + $0x4e8] sm:$0xff]  ;;  %v4956_v34 = vpack.c.bf16 %v2398_v32, %v2397_v31  ;;  %v2229_v32 = vld [vmem:[#allocation8 + $0x560] sm:$0xff] }
 0x59d   : > { %3638 = vmatmul.mubr.msk.f32.vlgmr.msra.gmra.mrb[36].mxu0 %vm2105_vm8, %v2104_v42  ;;  %v2102_v11 = vsel %vm2100_vm9, %v2097_v38, %v2098_v56  ;;  %v2101_v45 = vsel %vm2100_vm9, %v2098_v56, %v2099_v36  ;;  %v2399_v36 = vld [vmem:[#allocation10 + $0x460] sm:$0xff]  ;;  %v2417_v38 = vld [vmem:[#allocation10 + $0x4f0] sm:$0xff] }
 0x59e   : > { %v5301_v48 = vpop.eup %5300  ;;  %v3634_v49 = vmul.f32 -1.442695, %v2014_v41  ;;  %4937 = vmatpush3.bf16.msra.mxu0 %v4936_v33  ;;  %2196 = vmatprep.mubr.f32.mxu0 %v6188_v28  ;;  %v2415_v33 = vld [vmem:[#allocation10 + $0x4e0] sm:$0xff]  ;;  %v4962_v42 = vpack.c.bf16 %v2418_v39, %v2417_v38  ;;  %v2232_v38 = vld [vmem:[#allocation8 + $0x578] sm:$0xff] }
 0x59f   : > { %v2027_v51 = vadd.f32 1.0, %v5301_v48  ;;  %4939 = vmatprep.subr.bf16.mxu0 %v4938_v37  ;;  %v4958_v35 = vpack.c.bf16 %v2416_v16, %v2415_v33  ;;  %v2400_v37 = vld [vmem:[#allocation10 + $0x468] sm:$0xff] }
 0x5a0   : > { %5306 = vpow2.f32 %v3634_v49  ;;  %v4960_v41 = vpack.c.bf16 %v2400_v37, %v2399_v36  ;;  %v2230_v33 = vld [vmem:[#allocation8 + $0x568] sm:$0xff]  ;;  %v2231_v37 = vld [vmem:[#allocation8 + $0x570] sm:$0xff] }
 0x5a1   : > { %5308 = vrcp.f32 %v2027_v51  ;;  %2197 = vmatmul.mubr.f32.gmra.mrb[38].mxu0 %v2103_v55  ;;  %v4928_v16 = vpack.c.bf16 %v2230_v33, %v2229_v32  ;;  %v4932_v39 = vpack.c.bf16 %v2232_v38, %v2231_v37  ;;  %v2544_v32 = vld [vmem:[#allocation10 + $0x518] sm:$0xff]  ;;  %v2545_v38 = vld [vmem:[#allocation10 + $0x520] sm:$0xff] }
 0x5a2   : > { %v5303_v59 = vpop.eup %5302  ;;  %4941 = vmatpush3.bf16.msra.mxu0 %v4940_v50  ;;  %2201 = vmatprep.mubr.f32.mxu0 %v6201_v44  ;;  %v4964_v50 = vpack.c.bf16 %v2402_v47, %v2401_v46  ;;  %v3637_v47 = vld [vmem:[%s6441_s6 + $0x4] ss:$0 sm:$0xff] }
 0x5a3   : > { %v2028_v0 = vadd.f32 1.0, %v5303_v59  ;;  %4943 = vmatprep.subr.bf16.mxu0 %v4942_v52 }
 0x5a5   : > { %2202 = vmatmul.mubr.f32.gmra.mrb[40].mxu0 %v2102_v11  ;;  %5310 = vrcp.f32 %v2028_v0  ;;  %v2223_v11 = vld [vmem:[#allocation8 + $0x530] sm:$0xff] }
 0x5a6   : > { %v5305_v15 = vpop.eup %5304  ;;  %4945 = vmatpush3.bf16.msra.mxu0 %v4944_v60  ;;  %2206 = vmatprep.mubr.f32.mxu0 %v6191_v29  ;;  %v4916_v14 = vpack.c.bf16 %v2224_v12, %v2223_v11 }
 0x5a7   : > { %v2029_v18 = vadd.f32 1.0, %v5305_v15  ;;  %4947 = vmatprep.subr.bf16.mxu0 %v4946_v1  ;;  %v2239_v1 = vld [vmem:[#allocation8 + $0x5b0] sm:$0xff]  ;;  %v2241_v15 = vld [vmem:[#allocation8 + $0x5c0] sm:$0xff] }
 0x5a8   : > { %v4914_v10 = vpack.c.bf16 %v2240_v9, %v2239_v1 }
 0x5a9   : > { %2207 = vmatmul.mubr.f32.gmra.mrb[42].mxu0 %v2101_v45  ;;  %5312 = vrcp.f32 %v2029_v18  ;;  %v2243_v45 = vld [vmem:[#allocation8 + $0x5d0] sm:$0xff] }
 0x5aa   : > { %v5307_v23 = vpop.eup %5306  ;;  %4949 = vmatpush3.bf16.msra.mxu0 %v4948_v17  ;;  %4915 = vmatprep.subr.bf16.mxu1 %v4914_v10  ;;  %v2242_v17 = vld [vmem:[#allocation8 + $0x5c8] sm:$0xff]  ;;  %v4922_v22 = vpack.c.bf16 %v2244_v20, %v2243_v45 }
 0x5ab   : > { %v5309_v27 = vpop.eup %5308  ;;  %v2030_v58 = vadd.f32 1.0, %v5307_v23  ;;  %4951 = vmatprep.subr.bf16.mxu0 %v4950_v19  ;;  %4917 = vmatpush3.bf16.msra.mxu1 %v4916_v14  ;;  %v4918_v18 = vpack.c.bf16 %v2242_v17, %v2241_v15  ;;  %v2225_v19 = vld [vmem:[#allocation8 + $0x540] sm:$0xff]  ;;  %v2227_v23 = vld [vmem:[#allocation8 + $0x550] sm:$0xff]  ;;  %v2542_v45 = vld [vmem:[#allocation10 + $0x508] sm:$0xff] }
 0x5ac   : > { %v6216_v7 = vmul.f32 %v5309_v27, %v6120_v8  ;;  %v4920_v3 = vpack.c.bf16 %v2226_v2, %v2225_v19 }
 0x5ad   : > { %5314 = vrcp.f32 %v2030_v58  ;;  %4919 = vmatprep.subr.bf16.mxu1 %v4918_v18  ;;  %v2245_v58 = vld [vmem:[#allocation8 + $0x5e0] sm:$0xff] }
 0x5ae   : > { %4953 = vmatpush3.bf16.msra.mxu0 %v4952_v25  ;;  %2515 = vmatprep.mubr.f32.mxu0 %v6216_v7  ;;  %v2421_v54 = vrot.slane %v6216_v7, 4  ;;  %v2228_v25 = vld [vmem:[#allocation8 + $0x558] sm:$0xff] }
 0x5af   : > { %4955 = vmatprep.subr.bf16.mxu0 %v4954_v6  ;;  %v5311_v40 = vpop.eup %5310  ;;  %4921 = vmatpush3.bf16.msra.mxu1 %v4920_v3  ;;  %v4924_v27 = vpack.c.bf16 %v2228_v25, %v2227_v23  ;;  %v2246_v6 = vld [vmem:[#allocation8 + $0x5e8] sm:$0xff]  ;;  %v2541_v3 = vld [vmem:[#allocation10 + $0x500] sm:$0xff]  ;;  %v2560_v23 = vld [vmem:[#allocation10 + $0x598] sm:$0xff] }
 0x5b0   : > { %v6220_v48 = vmul.f32 %v5311_v40, %v6124_v21  ;;  %4923 = vmatprep.subr.bf16.mxu1 %v4922_v22  ;;  %v4926_v31 = vpack.c.bf16 %v2246_v6, %v2245_v58  ;;  %v2557_v40 = vld [vmem:[#allocation10 + $0x580] sm:$0xff]  ;;  %v2559_v22 = vld [vmem:[#allocation10 + $0x590] sm:$0xff]  ;;  %v4968_v58 = vpack.c.bf16 %v2542_v45, %v2541_v3  ;;  %v2570_v45 = vld [vmem:[#allocation10 + $0x5e8] sm:$0xff] }
 0x5b1   : > { %v4970_v6 = vpack.c.bf16 %v2560_v23, %v2559_v22  ;;  %v2569_v3 = vld [vmem:[#allocation10 + $0x5e0] sm:$0xff] }
 0x5b2   : > { %4957 = vmatpush3.bf16.msra.mxu0 %v4956_v34  ;;  %v2422_v51 = vrot.slane %v6220_v48, 4  ;;  %v2247_v34 = vld [vmem:[#allocation8 + $0x5f0] sm:$0xff] }
 0x5b3   : > { %4959 = vmatprep.subr.bf16.mxu0 %v4958_v35  ;;  %v5313_v49 = vpop.eup %5312  ;;  %4925 = vmatpush3.bf16.msra.mxu1 %v4924_v27  ;;  %v2248_v35 = vld [vmem:[#allocation8 + $0x5f8] sm:$0xff] }
 0x5b4   : > { %v6224_v52 = vmul.f32 %v5313_v49, %v6128_v26  ;;  %v2427_v55 = vsel %vm2100_vm9, %v2421_v54, %v2422_v51  ;;  %4927 = vmatprep.subr.bf16.mxu1 %v4926_v31  ;;  %v4930_v36 = vpack.c.bf16 %v2248_v35, %v2247_v34  ;;  %v2543_v31 = vld [vmem:[#allocation10 + $0x510] sm:$0xff]  ;;  %v2562_v34 = vld [vmem:[#allocation10 + $0x5a8] sm:$0xff] }
 0x5b6   : > { %4961 = vmatpush3.bf16.msra.mxu0 %v4960_v41  ;;  %v2423_v56 = vrot.slane %v6224_v52, 4  ;;  %v2558_v41 = vld [vmem:[#allocation10 + $0x588] sm:$0xff] }
 0x5b7   : > { %4963 = vmatprep.subr.bf16.mxu0 %v4962_v42  ;;  %v5315_v53 = vpop.eup %5314  ;;  %4929 = vmatpush3.bf16.msra.mxu1 %v4928_v16  ;;  %v4966_v42 = vpack.c.bf16 %v2558_v41, %v2557_v40  ;;  %v2561_v16 = vld [vmem:[#allocation10 + $0x5a0] sm:$0xff]  ;;  %v2563_v40 = vld [vmem:[#allocation10 + $0x5b0] sm:$0xff]  ;;  %v2564_v41 = vld [vmem:[#allocation10 + $0x5b8] sm:$0xff] }
 0x5b8   : > { %v6231_v57 = vmul.f32 %v5315_v53, %v6136_v30  ;;  %v2426_v61 = vsel %vm2100_vm9, %v2422_v51, %v2423_v56  ;;  %4931 = vmatprep.subr.bf16.mxu1 %v4930_v36  ;;  %v4972_v36 = vpack.c.bf16 %v2544_v32, %v2543_v31  ;;  %v4974_v37 = vpack.c.bf16 %v2562_v34, %v2561_v16  ;;  %v2572_v16 = vld [vmem:[#allocation10 + $0x5f8] sm:$0xff] }
 0x5ba   : > { %4965 = vmatpush3.bf16.msra.mxu0 %v4964_v50  ;;  %v2424_v59 = vrot.slane %v6231_v57, 4 }
 0x5bb   : > { %4933 = vmatpush3.bf16.msra.mxu1 %v4932_v39  ;;  %v2546_v39 = vld [vmem:[#allocation10 + $0x528] sm:$0xff] }
 0x5bc   : > { %v2425_v60 = vsel %vm2100_vm9, %v2423_v56, %v2424_v59  ;;  %v2428_v0 = vsel %vm2100_vm9, %v2424_v59, %v2421_v54  ;;  %4967 = vmatprep.subr.bf16.mxu1 %v4966_v42  ;;  %v4976_v42 = vpack.c.bf16 %v2546_v39, %v2545_v38 }
 0x5bd   : > { %2516 = vmatmul.mubr.f32.vlgmr.msra.gmra.mrb[44].mxu0 %v2427_v55 }
 0x5be   : > { %2520 = vmatprep.mubr.f32.mxu0 %v6220_v48 }
 0x5c1   : > { %2521 = vmatmul.mubr.f32.gmra.mrb[46].mxu0 %v2426_v61 }
 0x5c2   : > { %2525 = vmatprep.mubr.f32.mxu0 %v6224_v52 }
 0x5c5   : > { %2526 = vmatmul.mubr.f32.gmra.mrb[48].mxu0 %v2425_v60 }
 0x5c6   : > { %2530 = vmatprep.mubr.f32.mxu0 %v6231_v57 }
 0x5c9   : > { %3648 = vmatmul.mubr.msk.f32.gmra.mrb[50].mxu0 %vm2432_vm10, %v2428_v0 }
 0x670   : > { %v4102_v46 = vpop.f32.mrb[36].mxu0 }
 0x671   : > { %v4103_v49 = vpop.f32.mrb[37].mxu0 }
 0x672   : > { %v4104_v50 = vadd.f32 %v4103_v49, %v4102_v46  ;;  %v4978_v46 = vpack.c.bf16 %v2564_v41, %v2563_v40  ;;  %v2548_v49 = vld [vmem:[#allocation10 + $0x538] sm:$0xff]  ;;  %v2555_v41 = vld [vmem:[#allocation10 + $0x570] sm:$0xff] }
 0x674   : > { %v2194_v51 = vadd.f32 %v4104_v50, %v3637_v47  ;;  %v4105_v53 = vpop.f32.mrb[38].mxu0  ;;  %v2565_v50 = vld [vmem:[#allocation10 + $0x5c0] sm:$0xff] }
 0x675   : > { %v4106_v54 = vpop.f32.mrb[39].mxu0 }
 0x676   : > { %v2212_v55 = vmax.f32 %v2194_v51, 0.0  ;;  %v4107_v56 = vadd.f32 %v4106_v54, %v4105_v53  ;;  %v2566_v51 = vld [vmem:[#allocation10 + $0x5c8] sm:$0xff] }
 0x678   : > { %v2199_v61 = vadd.f32 %v4107_v56, %v3637_v47  ;;  %v4108_v59 = vpop.f32.mrb[40].mxu0  ;;  %2333 = vmatprep.mubr.f32.mxu1 %v2212_v55  ;;  %v2251_v9 = vrot.slane %v2212_v55, 4  ;;  %v3647_v55 = vld [vmem:[%s6477_s26 + $0x4] ss:$0 sm:$0xff] }
 0x679   : > { %v4109_v60 = vpop.f32.mrb[41].mxu0 }
 0x67a   : > { %v2213_v0 = vmax.f32 %v2199_v61, 0.0  ;;  %v4110_v1 = vadd.f32 %v4109_v60, %v4108_v59  ;;  %v4982_v61 = vpack.c.bf16 %v2566_v51, %v2565_v50  ;;  %v2549_v59 = vld [vmem:[#allocation10 + $0x540] sm:$0xff]  ;;  %v2550_v60 = vld [vmem:[#allocation10 + $0x548] sm:$0xff] }
 0x67c   : > { %v2252_v10 = vrot.slane %v2213_v0, 4  ;;  %v2204_v11 = vadd.f32 %v4110_v1, %v3637_v47  ;;  %v4111_v12 = vpop.f32.mrb[42].mxu0  ;;  %v2567_v1 = vld [vmem:[#allocation10 + $0x5d0] sm:$0xff] }
 0x67d   : > { %v4112_v14 = vpop.f32.mrb[43].mxu0 }
 0x67e   : > { %v2214_v15 = vmax.f32 %v2204_v11, 0.0  ;;  %v4113_v17 = vadd.f32 %v4112_v14, %v4111_v12  ;;  %v2257_v18 = vsel %vm2100_vm9, %v2251_v9, %v2252_v10  ;;  %v4984_v12 = vpack.c.bf16 %v2550_v60, %v2549_v59 }
 0x680   : > { %v2253_v19 = vrot.slane %v2214_v15, 4  ;;  %v2209_v2 = vadd.f32 %v4113_v17, %v3637_v47  ;;  %v2547_v47 = vld [vmem:[#allocation10 + $0x530] sm:$0xff] }
 0x681   : > { %v4980_v54 = vpack.c.bf16 %v2548_v49, %v2547_v47  ;;  %v2551_v17 = vld [vmem:[#allocation10 + $0x550] sm:$0xff] }
 0x682   : > { %v2215_v20 = vmax.f32 %v2209_v2, 0.0  ;;  %v2256_v25 = vsel %vm2100_vm9, %v2252_v10, %v2253_v19 }
 0x684   : > { %v2254_v27 = vrot.slane %v2215_v20, 4 }
 0x686   : > { %v2258_v33 = vsel %vm2100_vm9, %v2254_v27, %v2251_v9  ;;  %v2255_v35 = vsel %vm2100_vm9, %v2253_v19, %v2254_v27  ;;  %v2568_v9 = vld [vmem:[#allocation10 + $0x5d8] sm:$0xff]  ;;  %v4990_v27 = vpack.c.bf16 %v2570_v45, %v2569_v3  ;;  %v2733_v3 = vld [vmem:[#allocation8 + $0x620] sm:$0xff]  ;;  %v2734_v45 = vld [vmem:[#allocation8 + $0x628] sm:$0xff] }
 0x687   : > { %3641 = vmatmul.mubr.msk.f32.vlgmr.msra.gmra.mrb[36].mxu1 %vm2105_vm8, %v2258_v33  ;;  %v2571_v33 = vld [vmem:[#allocation10 + $0x5f0] sm:$0xff] }
 0x688   : > { %4969 = vmatpush3.bf16.msra.mxu1 %v4968_v58  ;;  %2338 = vmatprep.mubr.f32.mxu1 %v2213_v0  ;;  %v2553_v58 = vld [vmem:[#allocation10 + $0x560] sm:$0xff]  ;;  %v4994_v40 = vpack.c.bf16 %v2572_v16, %v2571_v33 }
 0x689   : > { %4971 = vmatprep.subr.bf16.mxu1 %v4970_v6  ;;  %v2554_v6 = vld [vmem:[#allocation10 + $0x568] sm:$0xff]  ;;  %v2737_v16 = vld [vmem:[#allocation8 + $0x640] sm:$0xff] }
 0x68a   : > { %v4992_v38 = vpack.c.bf16 %v2554_v6, %v2553_v58  ;;  %v2736_v58 = vld [vmem:[#allocation8 + $0x638] sm:$0xff] }
 0x68b   : > { %2339 = vmatmul.mubr.f32.gmra.mrb[38].mxu1 %v2257_v18  ;;  %v2552_v18 = vld [vmem:[#allocation10 + $0x558] sm:$0xff] }
 0x68c   : > { %4973 = vmatpush3.bf16.msra.mxu1 %v4972_v36  ;;  %2343 = vmatprep.mubr.f32.mxu1 %v2214_v15  ;;  %v4986_v15 = vpack.c.bf16 %v2568_v9, %v2567_v1  ;;  %v4988_v23 = vpack.c.bf16 %v2552_v18, %v2551_v17  ;;  %v2729_v9 = vld [vmem:[#allocation8 + $0x600] sm:$0xff]  ;;  %v2732_v17 = vld [vmem:[#allocation8 + $0x618] sm:$0xff] }
 0x68d   : > { %4975 = vmatprep.subr.bf16.mxu1 %v4974_v37 }
 0x68f   : > { %2344 = vmatmul.mubr.f32.gmra.mrb[40].mxu1 %v2256_v25 }
 0x690   : > { %v4190_v53 = vpop.f32.mrb[44].mxu0  ;;  %4977 = vmatpush3.bf16.msra.mxu1 %v4976_v42  ;;  %2348 = vmatprep.mubr.f32.mxu1 %v2215_v20  ;;  %v2556_v42 = vld [vmem:[#allocation10 + $0x578] sm:$0xff] }
 0x691   : > { %v4191_v56 = vpop.f32.mrb[45].mxu0  ;;  %4979 = vmatprep.subr.bf16.mxu1 %v4978_v46 }
 0x692   : > { %v4192_v0 = vadd.f32 %v4191_v56, %v4190_v53  ;;  %v4996_v53 = vpack.c.bf16 %v2556_v42, %v2555_v41  ;;  %v2757_v42 = vld [vmem:[#allocation8 + $0x6e0] sm:$0xff] }
 0x693   : > { %2349 = vmatmul.mubr.f32.gmra.mrb[42].mxu1 %v2255_v35 }
 0x694   : > { %v2518_v10 = vadd.f32 %v4192_v0, %v3647_v55  ;;  %v4193_v11 = vpop.f32.mrb[46].mxu0  ;;  %4981 = vmatpush3.bf16.msra.mxu1 %v4980_v54  ;;  %v2746_v0 = vld [vmem:[#allocation8 + $0x688] sm:$0xff] }
 0x695   : > { %v4194_v14 = vpop.f32.mrb[47].mxu0  ;;  %4983 = vmatprep.subr.bf16.mxu1 %v4982_v61 }
 0x696   : > { %v2536_v19 = vmax.f32 %v2518_v10, 0.0  ;;  %v4195_v2 = vadd.f32 %v4194_v14, %v4193_v11  ;;  %v2730_v10 = vld [vmem:[#allocation8 + $0x608] sm:$0xff] }
 0x697   : > { %v5000_v11 = vpack.c.bf16 %v2730_v10, %v2729_v9  ;;  %v2891_v9 = vld [vmem:[#allocation8 + $0x780] sm:$0xff]  ;;  %v2892_v10 = vld [vmem:[#allocation8 + $0x788] sm:$0xff] }
 0x698   : > { %v2523_v20 = vadd.f32 %v4195_v2, %v3647_v55  ;;  %v4196_v22 = vpop.f32.mrb[48].mxu0  ;;  %4985 = vmatpush3.bf16.msra.mxu1 %v4984_v12  ;;  %2657 = vmatprep.mubr.f32.mxu1 %v2536_v19  ;;  %v2575_v34 = vrot.slane %v2536_v19, 4  ;;  %v2747_v12 = vld [vmem:[#allocation8 + $0x690] sm:$0xff]  ;;  %v2749_v19 = vld [vmem:[#allocation8 + $0x6a0] sm:$0xff]  ;;  %v2750_v2 = vld [vmem:[#allocation8 + $0x6a8] sm:$0xff] }
 0x699   : > { %v4197_v25 = vpop.f32.mrb[49].mxu0  ;;  %4987 = vmatprep.subr.bf16.mxu1 %v4986_v15  ;;  %v5002_v14 = vpack.c.bf16 %v2748_v63, %v2747_v12  ;;  %v2731_v15 = vld [vmem:[#allocation8 + $0x610] sm:$0xff]  ;;  %v5006_v13 = vpack.c.bf16 %v2750_v2, %v2749_v19  ;;  %v5030_v12 = vpack.c.bf16 %v2892_v10, %v2891_v9  ;;  %v2876_v63 = vld [vmem:[#allocation8 + $0x708] sm:$0xff]  ;;  %v2878_v2 = vld [vmem:[#allocation8 + $0x718] sm:$0xff] }
 0x69a   : > { %v2537_v31 = vmax.f32 %v2523_v20, 0.0  ;;  %v4198_v32 = vadd.f32 %v4197_v25, %v4196_v22  ;;  %v5004_v18 = vpack.c.bf16 %v2732_v17, %v2731_v15  ;;  %v5008_v20 = vpack.c.bf16 %v2734_v45, %v2733_v3  ;;  %v2751_v22 = vld [vmem:[#allocation8 + $0x6b0] sm:$0xff]  ;;  %v2894_v15 = vld [vmem:[#allocation8 + $0x798] sm:$0xff]  ;;  %v2896_v3 = vld [vmem:[#allocation8 + $0x7a8] sm:$0xff] }
 0x69b   : > { %v2877_v19 = vld [vmem:[#allocation8 + $0x710] sm:$0xff] }
 0x69c   : > { %v2576_v35 = vrot.slane %v2537_v31, 4  ;;  %v2528_v36 = vadd.f32 %v4198_v32, %v3647_v55  ;;  %v4199_v37 = vpop.f32.mrb[50].mxu0  ;;  %4989 = vmatpush3.bf16.msra.mxu1 %v4988_v23  ;;  %v2752_v23 = vld [vmem:[#allocation8 + $0x6b8] sm:$0xff]  ;;  %v2754_v32 = vld [vmem:[#allocation8 + $0x6c8] sm:$0xff]  ;;  %v5036_v45 = vpack.c.bf16 %v2878_v2, %v2877_v19 }
 0x69d   : > { %v4200_v39 = vpop.f32.mrb[51].mxu0  ;;  %4991 = vmatprep.subr.bf16.mxu1 %v4990_v27  ;;  %v5010_v25 = vpack.c.bf16 %v2752_v23, %v2751_v22  ;;  %v2735_v27 = vld [vmem:[#allocation8 + $0x630] sm:$0xff]  ;;  %v2879_v22 = vld [vmem:[#allocation8 + $0x720] sm:$0xff]  ;;  %v2880_v23 = vld [vmem:[#allocation8 + $0x728] sm:$0xff] }
 0x69e   : > { %v2538_v46 = vmax.f32 %v2528_v36, 0.0  ;;  %v4201_v47 = vadd.f32 %v4200_v39, %v4199_v37  ;;  %v2581_v49 = vsel %vm2100_vm9, %v2575_v34, %v2576_v35  ;;  %v5012_v6 = vpack.c.bf16 %v2736_v58, %v2735_v27  ;;  %v2755_v36 = vld [vmem:[#allocation8 + $0x6d0] sm:$0xff]  ;;  %v2756_v37 = vld [vmem:[#allocation8 + $0x6d8] sm:$0xff] }
 0x69f   : > { %v2739_v39 = vld [vmem:[#allocation8 + $0x650] sm:$0xff]  ;;  %v2898_v27 = vld [vmem:[#allocation8 + $0x7b8] sm:$0xff]  ;;  %v5040_v58 = vpack.c.bf16 %v2880_v23, %v2879_v22 }
 0x6a0   : > { %v2577_v50 = vrot.slane %v2538_v46, 4  ;;  %v2533_v51 = vadd.f32 %v4201_v47, %v3647_v55  ;;  %4993 = vmatpush3.bf16.msra.mxu1 %v4992_v38  ;;  %v2745_v55 = vld [vmem:[#allocation8 + $0x680] sm:$0xff]  ;;  %v5018_v38 = vpack.c.bf16 %v2756_v37, %v2755_v36  ;;  %v2884_v37 = vld [vmem:[#allocation8 + $0x748] sm:$0xff] }
 0x6a1   : > { %4995 = vmatprep.subr.bf16.mxu1 %v4994_v40  ;;  %v4998_v1 = vpack.c.bf16 %v2746_v0, %v2745_v55  ;;  %v2740_v40 = vld [vmem:[#allocation8 + $0x658] sm:$0xff]  ;;  %v3053_v55 = vld [vmem:[#allocation10 + $0x680] sm:$0xff]  ;;  %v3054_v0 = vld [vmem:[#allocation10 + $0x688] sm:$0xff] }
 0x6a2   : > { %v2539_v54 = vmax.f32 %v2533_v51, 0.0  ;;  %v2580_v56 = vsel %vm2100_vm9, %v2576_v35, %v2577_v50  ;;  %v5020_v41 = vpack.c.bf16 %v2740_v40, %v2739_v39  ;;  %v2883_v36 = vld [vmem:[#allocation8 + $0x740] sm:$0xff]  ;;  %v2902_v39 = vld [vmem:[#allocation8 + $0x7d8] sm:$0xff] }
 0x6a3   : > { %4999 = vmatprep.subr.bf16.mxu0 %v4998_v1  ;;  %v5062_v1 = vpack.c.bf16 %v3054_v0, %v3053_v55  ;;  %v5048_v40 = vpack.c.bf16 %v2884_v37, %v2883_v36  ;;  %v6278_v36 = vld [vmem:[%s6477_s26 + $0x5] ss:$0 sm:$0xff] }
 0x6a4   : > { %v2578_v61 = vrot.slane %v2539_v54, 4  ;;  %4997 = vmatpush3.bf16.msra.mxu1 %v4996_v53  ;;  %5001 = vmatpush3.bf16.msra.mxu0 %v5000_v11  ;;  %v2759_v53 = vld [vmem:[#allocation8 + $0x6f0] sm:$0xff]  ;;  %v2875_v11 = vld [vmem:[#allocation8 + $0x700] sm:$0xff] }
 0x6a5   : > { %5003 = vmatprep.subr.bf16.mxu0 %v5002_v14  ;;  %v2893_v14 = vld [vmem:[#allocation8 + $0x790] sm:$0xff]  ;;  %v5032_v17 = vpack.c.bf16 %v2876_v63, %v2875_v11  ;;  %5031 = vmatprep.subr.bf16.mxu1 %v5030_v12 }
 0x6a6   : > { %v2579_v59 = vsel %vm2100_vm9, %v2577_v50, %v2578_v61  ;;  %v2582_v60 = vsel %vm2100_vm9, %v2578_v61, %v2575_v34  ;;  %v2738_v34 = vld [vmem:[#allocation8 + $0x648] sm:$0xff]  ;;  %v2743_v61 = vld [vmem:[#allocation8 + $0x670] sm:$0xff] }
 0x6a7   : > { %2658 = vmatmul.mubr.f32.vlgmr.msra.gmra.mrb[44].mxu1 %v2581_v49  ;;  %v5016_v35 = vpack.c.bf16 %v2738_v34, %v2737_v16  ;;  %v2741_v49 = vld [vmem:[#allocation8 + $0x660] sm:$0xff]  ;;  %v2742_v50 = vld [vmem:[#allocation8 + $0x668] sm:$0xff] }
 0x6a8   : > { %2662 = vmatprep.mubr.f32.mxu1 %v2537_v31  ;;  %5005 = vmatpush3.bf16.msra.mxu0 %v5004_v18  ;;  %v2753_v31 = vld [vmem:[#allocation8 + $0x6c0] sm:$0xff]  ;;  %v5024_v51 = vpack.c.bf16 %v2742_v50, %v2741_v49  ;;  %v5034_v18 = vpack.c.bf16 %v2894_v15, %v2893_v14  ;;  %v2900_v16 = vld [vmem:[#allocation8 + $0x7c8] sm:$0xff] }
 0x6a9   : > { %5007 = vmatprep.subr.bf16.mxu0 %v5006_v13  ;;  %v5014_v33 = vpack.c.bf16 %v2754_v32, %v2753_v31  ;;  %v2895_v13 = vld [vmem:[#allocation8 + $0x7a0] sm:$0xff]  ;;  %5033 = vmatpush3.bf16.msra.mxu1 %v5032_v17  ;;  %v2881_v31 = vld [vmem:[#allocation8 + $0x730] sm:$0xff]  ;;  %v2882_v32 = vld [vmem:[#allocation8 + $0x738] sm:$0xff] }
 0x6aa   : > { %5035 = vmatprep.subr.bf16.mxu1 %v5034_v18  ;;  %v5044_v34 = vpack.c.bf16 %v2882_v32, %v2881_v31  ;;  %v3640_v50 = vld [vmem:[%s6441_s6 + $0x5] ss:$0 sm:$0xff] }
 0x6ab   : > { %2663 = vmatmul.mubr.f32.gmra.mrb[46].mxu1 %v2580_v56 }
 0x6ac   : > { %2667 = vmatprep.mubr.f32.mxu1 %v2538_v46  ;;  %5009 = vmatpush3.bf16.msra.mxu0 %v5008_v20  ;;  %v2758_v46 = vld [vmem:[#allocation8 + $0x6e8] sm:$0xff]  ;;  %v5038_v20 = vpack.c.bf16 %v2896_v3, %v2895_v13 }
 0x6ad   : > { %5011 = vmatprep.subr.bf16.mxu0 %v5010_v25  ;;  %v5022_v47 = vpack.c.bf16 %v2758_v46, %v2757_v42  ;;  %v2897_v25 = vld [vmem:[#allocation8 + $0x7b0] sm:$0xff]  ;;  %5037 = vmatpush3.bf16.msra.mxu1 %v5036_v45  ;;  %v2886_v46 = vld [vmem:[#allocation8 + $0x758] sm:$0xff] }
 0x6ae   : > { %5039 = vmatprep.subr.bf16.mxu1 %v5038_v20  ;;  %v2885_v42 = vld [vmem:[#allocation8 + $0x750] sm:$0xff] }
 0x6af   : > { %2668 = vmatmul.mubr.f32.gmra.mrb[48].mxu1 %v2579_v59  ;;  %v2744_v59 = vld [vmem:[#allocation8 + $0x678] sm:$0xff] }
 0x6b0   : > { %2672 = vmatprep.mubr.f32.mxu1 %v2539_v54  ;;  %5013 = vmatpush3.bf16.msra.mxu0 %v5012_v6  ;;  %v2760_v54 = vld [vmem:[#allocation8 + $0x6f8] sm:$0xff]  ;;  %v5042_v6 = vpack.c.bf16 %v2898_v27, %v2897_v25 }
 0x6b1   : > { %5015 = vmatprep.subr.bf16.mxu0 %v5014_v33  ;;  %v5026_v56 = vpack.c.bf16 %v2760_v54, %v2759_v53  ;;  %v2899_v33 = vld [vmem:[#allocation8 + $0x7c0] sm:$0xff]  ;;  %5041 = vmatpush3.bf16.msra.mxu1 %v5040_v58 }
 0x6b2   : > { %5043 = vmatprep.subr.bf16.mxu1 %v5042_v6  ;;  %v3037_v58 = vld [vmem:[#allocation10 + $0x600] sm:$0xff]  ;;  %v3038_v6 = vld [vmem:[#allocation10 + $0x608] sm:$0xff] }
 0x6b3   : > { %3651 = vmatmul.mubr.msk.f32.gmra.mrb[50].mxu1 %vm2432_vm10, %v2582_v60  ;;  %v5028_v60 = vpack.c.bf16 %v2744_v59, %v2743_v61 }
 0x6b4   : > { %5017 = vmatpush3.bf16.msra.mxu0 %v5016_v35  ;;  %v5046_v35 = vpack.c.bf16 %v2900_v16, %v2899_v33  ;;  %v3055_v33 = vld [vmem:[#allocation10 + $0x690] sm:$0xff]  ;;  %v3056_v16 = vld [vmem:[#allocation10 + $0x698] sm:$0xff] }
 0x6b5   : > { %5019 = vmatprep.subr.bf16.mxu0 %v5018_v38  ;;  %v2901_v38 = vld [vmem:[#allocation8 + $0x7d0] sm:$0xff]  ;;  %5045 = vmatpush3.bf16.msra.mxu1 %v5044_v34 }
 0x6b6   : > { %5047 = vmatprep.subr.bf16.mxu1 %v5046_v35 }
 0x6b8   : > { %5021 = vmatpush3.bf16.msra.mxu0 %v5020_v41  ;;  %v5050_v41 = vpack.c.bf16 %v2902_v39, %v2901_v38 }
 0x6b9   : > { %5023 = vmatprep.subr.bf16.mxu0 %v5022_v47  ;;  %5049 = vmatpush3.bf16.msra.mxu1 %v5048_v40  ;;  %v5052_v47 = vpack.c.bf16 %v2886_v46, %v2885_v42  ;;  %v5064_v40 = vpack.c.bf16 %v3038_v6, %v3037_v58  ;;  %v3039_v42 = vld [vmem:[#allocation10 + $0x610] sm:$0xff]  ;;  %v3040_v46 = vld [vmem:[#allocation10 + $0x618] sm:$0xff]  ;;  %v3062_v58 = vld [vmem:[#allocation10 + $0x6c8] sm:$0xff] }
 0x6ba   : > { %5051 = vmatprep.subr.bf16.mxu1 %v5050_v41  ;;  %v5066_v41 = vpack.c.bf16 %v3056_v16, %v3055_v33 }
 0x6bc   : > { %5025 = vmatpush3.bf16.msra.mxu0 %v5024_v51 }
 0x6bd   : > { %5027 = vmatprep.subr.bf16.mxu0 %v5026_v56  ;;  %5053 = vmatpush3.bf16.msra.mxu1 %v5052_v47 }
 0x6c0   : > { %5029 = vmatpush3.bf16.msra.mxu0 %v5028_v60 }
 0x6c1   : > { %5063 = vmatprep.subr.bf16.mxu0 %v5062_v1 }
 0x75a   : > { %v4146_v49 = vpop.f32.mrb[36].mxu1 }
 0x75b   : > { %v4147_v51 = vpop.f32.mrb[37].mxu1 }
 0x75c   : > { %v4148_v53 = vadd.f32 %v4147_v51, %v4146_v49  ;;  %v3058_v51 = vld [vmem:[#allocation10 + $0x6a8] sm:$0xff] }
 0x75e   : > { %v2336_v54 = vadd.f32 %v4148_v53, %v3640_v50  ;;  %v4149_v56 = vpop.f32.mrb[38].mxu1 }
 0x75f   : > { %v4150_v61 = vpop.f32.mrb[39].mxu1 }
 0x760   : > { %v2354_v59 = vmax.f32 %v2336_v54, 0.0  ;;  %v4151_v60 = vadd.f32 %v4150_v61, %v4149_v56  ;;  %v5638_v56 = vmov 0.0  }
 0x762   : > { %v3642_v55 = vmul.f32 -1.442695, %v2354_v59  ;;  %v2341_v0 = vadd.f32 %v4151_v60, %v3640_v50  ;;  %v4152_v1 = vpop.f32.mrb[40].mxu1 }
 0x763   : > { %v4153_v9 = vpop.f32.mrb[41].mxu1 }
 0x764   : > { %5316 = vpow2.f32 %v3642_v55  ;;  %v2355_v10 = vmax.f32 %v2341_v0, 0.0  ;;  %v4154_v11 = vadd.f32 %v4153_v9, %v4152_v1  ;;  %v5068_v55 = vpack.c.bf16 %v3040_v46, %v3039_v42  ;;  %v3041_v0 = vld [vmem:[#allocation10 + $0x620] sm:$0xff]  ;;  %v3042_v1 = vld [vmem:[#allocation10 + $0x628] sm:$0xff]  ;;  %v3063_v42 = vld [vmem:[#allocation10 + $0x6d0] sm:$0xff] }
 0x765   : > { %v3064_v46 = vld [vmem:[#allocation10 + $0x6d8] sm:$0xff] }
 0x766   : > { %v3643_v12 = vmul.f32 -1.442695, %v2355_v10  ;;  %v2346_v63 = vadd.f32 %v4154_v11, %v3640_v50  ;;  %v4155_v14 = vpop.f32.mrb[42].mxu1 }
 0x767   : > { %v4156_v15 = vpop.f32.mrb[43].mxu1 }
 0x768   : > { %5318 = vpow2.f32 %v3643_v12  ;;  %v2356_v17 = vmax.f32 %v2346_v63, 0.0  ;;  %v4157_v18 = vadd.f32 %v4156_v15, %v4155_v14  ;;  %v3059_v63 = vld [vmem:[#allocation10 + $0x6b0] sm:$0xff]  ;;  %v3060_v14 = vld [vmem:[#allocation10 + $0x6b8] sm:$0xff] }
 0x76a   : > { %v3644_v19 = vmul.f32 -1.442695, %v2356_v17  ;;  %v2351_v2 = vadd.f32 %v4157_v18, %v3640_v50  ;;  %v3057_v50 = vld [vmem:[#allocation10 + $0x6a0] sm:$0xff]  ;;  %v5072_v18 = vpack.c.bf16 %v3042_v1, %v3041_v0 }
 0x76b   : > { %v5070_v9 = vpack.c.bf16 %v3058_v51, %v3057_v50  ;;  %v5082_v50 = vpack.c.bf16 %v3064_v46, %v3063_v42  ;;  %v3047_v51 = vld [vmem:[#allocation10 + $0x650] sm:$0xff]  ;;  %v2906_v46 = vld [vmem:[#allocation8 + $0x7f8] sm:$0xff] }
 0x76c   : > { %5320 = vpow2.f32 %v3644_v19  ;;  %v2357_v13 = vmax.f32 %v2351_v2, 0.0  ;;  %v2905_v42 = vld [vmem:[#allocation8 + $0x7f0] sm:$0xff] }
 0x76e   : > { %v5317_v3 = vpop.eup %5316  ;;  %v3645_v45 = vmul.f32 -1.442695, %v2357_v13 }
 0x76f   : > { %v2370_v20 = vadd.f32 1.0, %v5317_v3  ;;  %v3043_v3 = vld [vmem:[#allocation10 + $0x630] sm:$0xff] }
 0x770   : > { %5322 = vpow2.f32 %v3645_v45  ;;  %v3044_v45 = vld [vmem:[#allocation10 + $0x638] sm:$0xff] }
 0x771   : > { %5324 = vrcp.f32 %v2370_v20  ;;  %v5074_v20 = vpack.c.bf16 %v3060_v14, %v3059_v63  ;;  %v3068_v63 = vld [vmem:[#allocation10 + $0x6f8] sm:$0xff] }
 0x772   : > { %v5319_v22 = vpop.eup %5318 }
 0x773   : > { %v2371_v23 = vadd.f32 1.0, %v5319_v22 }
 0x775   : > { %5326 = vrcp.f32 %v2371_v23 }
 0x776   : > { %v5321_v25 = vpop.eup %5320 }
 0x777   : > { %v2372_v27 = vadd.f32 1.0, %v5321_v25 }
 0x779   : > { %5328 = vrcp.f32 %v2372_v27  ;;  %v3061_v27 = vld [vmem:[#allocation10 + $0x6c0] sm:$0xff] }
 0x77a   : > { %v5323_v31 = vpop.eup %5322  ;;  %v4234_v32 = vpop.f32.mrb[44].mxu1 }
 0x77b   : > { %v5325_v34 = vpop.eup %5324  ;;  %v2373_v35 = vadd.f32 1.0, %v5323_v31  ;;  %v4235_v37 = vpop.f32.mrb[45].mxu1 }
 0x77c   : > { %v4236_v38 = vadd.f32 %v4235_v37, %v4234_v32  ;;  %v6281_v39 = vmul.f32 %v5325_v34, %v6184_v62  ;;  %v5076_v32 = vpack.c.bf16 %v3044_v45, %v3043_v3  ;;  %v3045_v37 = vld [vmem:[#allocation10 + $0x640] sm:$0xff] }
 0x77d   : > { %5330 = vrcp.f32 %v2373_v35  ;;  %v5078_v35 = vpack.c.bf16 %v3062_v58, %v3061_v27 }
 0x77e   : > { %v2660_v47 = vadd.f32 %v4236_v38, %v6278_v36  ;;  %v4237_v49 = vpop.f32.mrb[46].mxu1  ;;  %2849 = vmatprep.mubr.f32.mxu0 %v6281_v39  ;;  %v3046_v38 = vld [vmem:[#allocation10 + $0x648] sm:$0xff] }
 0x77f   : > { %v5327_v53 = vpop.eup %5326  ;;  %v4238_v54 = vpop.f32.mrb[47].mxu1  ;;  %2850 = vmatmul.mubr.f32.vlgmr.msra.gmra.mrb[52].mxu0 %v5638_v56 }
 0x780   : > { %v2678_v61 = vmax.f32 %v2660_v47, 0.0  ;;  %v4239_v59 = vadd.f32 %v4238_v54, %v4237_v49  ;;  %v6287_v60 = vmul.f32 %v5327_v53, %v6188_v28  ;;  %5065 = vmatpush3.bf16.msra.mxu0 %v5064_v40  ;;  %v5080_v49 = vpack.c.bf16 %v3046_v38, %v3045_v37  ;;  %v3048_v53 = vld [vmem:[#allocation10 + $0x658] sm:$0xff]  ;;  %v2887_v38 = vld [vmem:[#allocation8 + $0x760] sm:$0xff] }
 0x781   : > { %5067 = vmatprep.subr.bf16.mxu0 %v5066_v41 }
 0x782   : > { %v3652_v10 = vmul.f32 -1.442695, %v2678_v61  ;;  %v2665_v11 = vadd.f32 %v4239_v59, %v6278_v36  ;;  %v4240_v12 = vpop.f32.mrb[48].mxu1  ;;  %2854 = vmatprep.mubr.f32.mxu0 %v6287_v60  ;;  %v3065_v59 = vld [vmem:[#allocation10 + $0x6e0] sm:$0xff] }
 0x783   : > { %v5329_v15 = vpop.eup %5328  ;;  %v4241_v17 = vpop.f32.mrb[49].mxu1  ;;  %2855 = vmatmul.mubr.f32.gmra.mrb[54].mxu0 %v6281_v39 }
 0x784   : > { %5332 = vpow2.f32 %v3652_v10  ;;  %v2679_v19 = vmax.f32 %v2665_v11, 0.0  ;;  %v4242_v2 = vadd.f32 %v4241_v17, %v4240_v12  ;;  %v6293_v13 = vmul.f32 %v5329_v15, %v6201_v44  ;;  %5069 = vmatpush3.bf16.msra.mxu0 %v5068_v55  ;;  %v3066_v55 = vld [vmem:[#allocation10 + $0x6e8] sm:$0xff]  ;;  %v3067_v12 = vld [vmem:[#allocation10 + $0x6f0] sm:$0xff] }
 0x785   : > { %5071 = vmatprep.subr.bf16.mxu0 %v5070_v9  ;;  %v5086_v1 = vpack.c.bf16 %v3066_v55, %v3065_v59  ;;  %v3049_v9 = vld [vmem:[#allocation10 + $0x660] sm:$0xff]  ;;  %v3050_v10 = vld [vmem:[#allocation10 + $0x668] sm:$0xff]  ;;  %v5090_v17 = vpack.c.bf16 %v3068_v63, %v3067_v12  ;;  %v3201_v12 = vld [vmem:[#allocation10 + $0x790] sm:$0xff] }
 0x786   : > { %v3653_v22 = vmul.f32 -1.442695, %v2679_v19  ;;  %v2670_v23 = vadd.f32 %v4242_v2, %v6278_v36  ;;  %v4243_v25 = vpop.f32.mrb[50].mxu1  ;;  %2859 = vmatprep.mubr.f32.mxu0 %v6293_v13  ;;  %v5088_v15 = vpack.c.bf16 %v3050_v10, %v3049_v9  ;;  %v3052_v19 = vld [vmem:[#allocation10 + $0x678] sm:$0xff]  ;;  %v3658_v55 = vld [vmem:[%s6441_s6 + $0x6] ss:$0 sm:$0xff] }
 0x787   : > { %v5331_v6 = vpop.eup %5330  ;;  %v4244_v31 = vpop.f32.mrb[51].mxu1  ;;  %2860 = vmatmul.mubr.f32.gmra.mrb[56].mxu0 %v6287_v60  ;;  %v3184_v9 = vld [vmem:[#allocation10 + $0x708] sm:$0xff]  ;;  %v3202_v63 = vld [vmem:[#allocation10 + $0x798] sm:$0xff] }
 0x788   : > { %5334 = vpow2.f32 %v3653_v22  ;;  %v2680_v33 = vmax.f32 %v2670_v23, 0.0  ;;  %v4245_v16 = vadd.f32 %v4244_v31, %v4243_v25  ;;  %v6299_v34 = vmul.f32 %v5331_v6, %v6191_v29  ;;  %5073 = vmatpush3.bf16.msra.mxu0 %v5072_v18  ;;  %v3051_v18 = vld [vmem:[#allocation10 + $0x670] sm:$0xff] }
 0x789   : > { %5075 = vmatprep.subr.bf16.mxu0 %v5074_v20  ;;  %v5092_v45 = vpack.c.bf16 %v3052_v19, %v3051_v18  ;;  %v5098_v19 = vpack.c.bf16 %v3202_v63, %v3201_v12  ;;  %v3192_v12 = vld [vmem:[#allocation10 + $0x748] sm:$0xff]  ;;  %v3209_v63 = vld [vmem:[#allocation10 + $0x7d0] sm:$0xff] }
 0x78a   : > { %v3654_v40 = vmul.f32 -1.442695, %v2680_v33  ;;  %v2675_v41 = vadd.f32 %v4245_v16, %v6278_v36  ;;  %2864 = vmatprep.mubr.f32.mxu0 %v6299_v34  ;;  %v5084_v36 = vpack.c.bf16 %v3048_v53, %v3047_v51  ;;  %v2903_v16 = vld [vmem:[#allocation8 + $0x7e0] sm:$0xff] }
 0x78b   : > { %2865 = vmatmul.mubr.f32.gmra.mrb[58].mxu0 %v6293_v13  ;;  %v3199_v53 = vld [vmem:[#allocation10 + $0x780] sm:$0xff] }
 0x78c   : > { %5336 = vpow2.f32 %v3654_v40  ;;  %v2681_v47 = vmax.f32 %v2675_v41, 0.0  ;;  %5077 = vmatpush3.bf16.msra.mxu0 %v5076_v32  ;;  %v2888_v40 = vld [vmem:[#allocation8 + $0x768] sm:$0xff] }
 0x78d   : > { %5079 = vmatprep.subr.bf16.mxu0 %v5078_v35  ;;  %v2904_v35 = vld [vmem:[#allocation8 + $0x7e8] sm:$0xff]  ;;  %v5056_v41 = vpack.c.bf16 %v2888_v40, %v2887_v38 }
 0x78e   : > { %v5333_v54 = vpop.eup %5332  ;;  %v3655_v61 = vmul.f32 -1.442695, %v2681_v47  ;;  %v5054_v37 = vpack.c.bf16 %v2904_v35, %v2903_v16  ;;  %v5058_v47 = vpack.c.bf16 %v2906_v46, %v2905_v42  ;;  %v3188_v38 = vld [vmem:[#allocation10 + $0x728] sm:$0xff]  ;;  %v3205_v42 = vld [vmem:[#allocation10 + $0x7b0] sm:$0xff]  ;;  %v3206_v46 = vld [vmem:[#allocation10 + $0x7b8] sm:$0xff] }
 0x78f   : > { %v2694_v0 = vadd.f32 1.0, %v5333_v54  ;;  %v3200_v54 = vld [vmem:[#allocation10 + $0x788] sm:$0xff] }
 0x790   : > { %5338 = vpow2.f32 %v3655_v61  ;;  %5081 = vmatpush3.bf16.msra.mxu0 %v5080_v49  ;;  %5055 = vmatprep.subr.bf16.mxu1 %v5054_v37  ;;  %v2889_v49 = vld [vmem:[#allocation8 + $0x770] sm:$0xff]  ;;  %v5094_v61 = vpack.c.bf16 %v3200_v54, %v3199_v53  ;;  %v3187_v37 = vld [vmem:[#allocation10 + $0x720] sm:$0xff]  ;;  %v5106_v53 = vpack.c.bf16 %v3206_v46, %v3205_v42 }
 0x791   : > { %5340 = vrcp.f32 %v2694_v0  ;;  %5083 = vmatprep.subr.bf16.mxu0 %v5082_v50  ;;  %5057 = vmatpush3.bf16.msra.mxu1 %v5056_v41  ;;  %v2890_v50 = vld [vmem:[#allocation8 + $0x778] sm:$0xff]  ;;  %v3189_v54 = vld [vmem:[#allocation10 + $0x730] sm:$0xff] }
 0x792   : > { %v5335_v11 = vpop.eup %5334  ;;  %v5060_v51 = vpack.c.bf16 %v2890_v50, %v2889_v49  ;;  %5059 = vmatprep.subr.bf16.mxu1 %v5058_v47 }
 0x793   : > { %v2695_v14 = vadd.f32 1.0, %v5335_v11 }
 0x794   : > { %5085 = vmatpush3.bf16.msra.mxu0 %v5084_v36 }
 0x795   : > { %5342 = vrcp.f32 %v2695_v14  ;;  %5087 = vmatprep.subr.bf16.mxu0 %v5086_v1  ;;  %5061 = vmatpush3.bf16.msra.mxu1 %v5060_v51  ;;  %v3183_v1 = vld [vmem:[#allocation10 + $0x700] sm:$0xff]  ;;  %v5104_v51 = vpack.c.bf16 %v3188_v38, %v3187_v37 }
 0x796   : > { %v5337_v2 = vpop.eup %5336  ;;  %5095 = vmatprep.subr.bf16.mxu1 %v5094_v61  ;;  %v5096_v18 = vpack.c.bf16 %v3184_v9, %v3183_v1  ;;  %v3190_v61 = vld [vmem:[#allocation10 + $0x738] sm:$0xff] }
 0x797   : > { %v2696_v3 = vadd.f32 1.0, %v5337_v2  ;;  %v3185_v2 = vld [vmem:[#allocation10 + $0x710] sm:$0xff]  ;;  %v5108_v9 = vpack.c.bf16 %v3190_v61, %v3189_v54 }
 0x798   : > { %5089 = vmatpush3.bf16.msra.mxu0 %v5088_v15 }
 0x799   : > { %5344 = vrcp.f32 %v2696_v3  ;;  %5091 = vmatprep.subr.bf16.mxu0 %v5090_v17  ;;  %v3186_v3 = vld [vmem:[#allocation10 + $0x718] sm:$0xff] }
 0x79a   : > { %v5339_v20 = vpop.eup %5338  ;;  %v5100_v16 = vpack.c.bf16 %v3186_v3, %v3185_v2  ;;  %v3212_v2 = vld [vmem:[#allocation10 + $0x7e8] sm:$0xff] }
 0x79b   : > { %v5341_v22 = vpop.eup %5340  ;;  %v2697_v23 = vadd.f32 1.0, %v5339_v20 }
 0x79c   : > { %v6305_v25 = vmul.f32 %v5341_v22, %v6216_v7  ;;  %5093 = vmatpush3.bf16.msra.mxu0 %v5092_v45  ;;  %v3203_v22 = vld [vmem:[#allocation10 + $0x7a0] sm:$0xff] }
 0x79d   : > { %5346 = vrcp.f32 %v2697_v23  ;;  %v3204_v23 = vld [vmem:[#allocation10 + $0x7a8] sm:$0xff] }
 0x79e   : > { %3157 = vmatprep.mubr.f32.mxu0 %v6305_v25  ;;  %v5102_v35 = vpack.c.bf16 %v3204_v23, %v3203_v22  ;;  %v3196_v22 = vld [vmem:[#allocation10 + $0x768] sm:$0xff]  ;;  %v3213_v23 = vld [vmem:[#allocation10 + $0x7f0] sm:$0xff] }
 0x79f   : > { %v5343_v27 = vpop.eup %5342 }
 0x7a0   : > { %v6309_v58 = vmul.f32 %v5343_v27, %v6220_v48 }
 0x7a2   : > { %3158 = vmatmul.mubr.f32.vlgmr.msra.gmra.mrb[60].mxu0 %v6309_v58 }
 0x7a3   : > { %v5345_v6 = vpop.eup %5344  ;;  %3162 = vmatprep.mubr.f32.mxu0 %v6309_v58 }
 0x7a4   : > { %v6314_v31 = vmul.f32 %v5345_v6, %v6224_v52 }
 0x7a6   : > { %3163 = vmatmul.mubr.f32.gmra.mrb[62].mxu0 %v6314_v31 }
 0x7a7   : > { %v5347_v32 = vpop.eup %5346  ;;  %3167 = vmatprep.mubr.f32.mxu0 %v6314_v31 }
 0x7a8   : > { %v6319_v33 = vmul.f32 %v5347_v32, %v6231_v57 }
 0x7aa   : > { %3168 = vmatmul.mubr.f32.gmra.mrb[64].mxu0 %v6319_v33 }
 0x7ab   : > { %3172 = vmatprep.mubr.f32.mxu0 %v6319_v33 }
 0x7ae   : > { %3173 = vmatmul.mubr.f32.gmra.mrb[66].mxu0 %v5638_v56 }
 0x7af   : > { %4547 = vmatprep.mubr.msk.f32.mxu0 %vm5640_vm11, %v5638_v56 }
 0x852   : > { %v4278_v59 = vpop.f32.mrb[52].mxu0 }
 0x853   : > { %v4279_v0 = vpop.f32.mrb[53].mxu0 }
 0x854   : > { %v4280_v36 = vadd.f32 %v4279_v0, %v4278_v59  ;;  %v3207_v0 = vld [vmem:[#allocation10 + $0x7c0] sm:$0xff] }
 0x856   : > { %v2852_v10 = vadd.f32 %v4280_v36, %v3658_v55  ;;  %v4281_v11 = vpop.f32.mrb[54].mxu0  ;;  %v3208_v36 = vld [vmem:[#allocation10 + $0x7c8] sm:$0xff] }
 0x857   : > { %v4282_v14 = vpop.f32.mrb[55].mxu0 }
 0x858   : > { %v2870_v15 = vmax.f32 %v2852_v10, 0.0  ;;  %v4283_v17 = vadd.f32 %v4282_v14, %v4281_v11  ;;  %v5110_v10 = vpack.c.bf16 %v3208_v36, %v3207_v0  ;;  %v3191_v11 = vld [vmem:[#allocation10 + $0x740] sm:$0xff]  ;;  %v3210_v14 = vld [vmem:[#allocation10 + $0x7d8] sm:$0xff] }
 0x85a   : > { %v2857_v45 = vadd.f32 %v4283_v17, %v3658_v55  ;;  %v4284_v20 = vpop.f32.mrb[56].mxu0  ;;  %2983 = vmatprep.mubr.f32.mxu1 %v2870_v15  ;;  %v5114_v17 = vpack.c.bf16 %v3210_v14, %v3209_v63  ;;  %v3362_v14 = vld [vmem:[#allocation11] sm:$0xff] }
 0x85b   : > { %v4285_v27 = vpop.f32.mrb[57].mxu0  ;;  %2984 = vmatmul.mubr.f32.vlgmr.msra.gmra.mrb[52].mxu1 %v5638_v56 }
 0x85c   : > { %v2871_v6 = vmax.f32 %v2857_v45, 0.0  ;;  %v4286_v32 = vadd.f32 %v4285_v27, %v4284_v20  ;;  %5097 = vmatpush3.bf16.msra.mxu1 %v5096_v18  ;;  %v3194_v18 = vld [vmem:[#allocation10 + $0x758] sm:$0xff]  ;;  %v3195_v20 = vld [vmem:[#allocation10 + $0x760] sm:$0xff] }
 0x85d   : > { %5099 = vmatprep.subr.bf16.mxu1 %v5098_v19  ;;  %v3211_v19 = vld [vmem:[#allocation10 + $0x7e0] sm:$0xff]  ;;  %v3214_v27 = vld [vmem:[#allocation10 + $0x7f8] sm:$0xff] }
 0x85e   : > { %v2862_v40 = vadd.f32 %v4286_v32, %v3658_v55  ;;  %v4287_v41 = vpop.f32.mrb[58].mxu0  ;;  %2988 = vmatprep.mubr.f32.mxu1 %v2871_v6  ;;  %v5118_v45 = vpack.c.bf16 %v3212_v2, %v3211_v19  ;;  %v5122_v32 = vpack.c.bf16 %v3214_v27, %v3213_v23  ;;  %v3365_v19 = vld [vmem:[#allocation11 + $0x18] sm:$0xff] }
 0x85f   : > { %v4288_v47 = vpop.f32.mrb[59].mxu0  ;;  %2989 = vmatmul.mubr.f32.gmra.mrb[54].mxu1 %v2870_v15  ;;  %v5112_v15 = vpack.c.bf16 %v3192_v12, %v3191_v11  ;;  %v3369_v23 = vld [vmem:[#allocation11 + $0x38] sm:$0xff] }
 0x860   : > { %v2872_v49 = vmax.f32 %v2862_v40, 0.0  ;;  %v4289_v50 = vadd.f32 %v4288_v47, %v4287_v41  ;;  %5101 = vmatpush3.bf16.msra.mxu1 %v5100_v16  ;;  %v3197_v16 = vld [vmem:[#allocation10 + $0x770] sm:$0xff]  ;;  %v3666_v40 = vld [vmem:[%s6477_s26 + $0x6] ss:$0 sm:$0xff] }
 0x861   : > { %5103 = vmatprep.subr.bf16.mxu1 %v5102_v35  ;;  %v3198_v35 = vld [vmem:[#allocation10 + $0x778] sm:$0xff] }
 0x862   : > { %v2867_v59 = vadd.f32 %v4289_v50, %v3658_v55  ;;  %2993 = vmatprep.mubr.f32.mxu1 %v2872_v49  ;;  %v3193_v55 = vld [vmem:[#allocation10 + $0x750] sm:$0xff]  ;;  %v5124_v37 = vpack.c.bf16 %v3198_v35, %v3197_v16 }
 0x863   : > { %2994 = vmatmul.mubr.f32.gmra.mrb[56].mxu1 %v2871_v6  ;;  %v5116_v3 = vpack.c.bf16 %v3194_v18, %v3193_v55  ;;  %v5120_v6 = vpack.c.bf16 %v3196_v22, %v3195_v20  ;;  %v5639_v55 = vmov 0.0|0.0   ;;  %v3364_v18 = vld [vmem:[#allocation11 + $0x10] sm:$0xff] }
 0x864   : > { %v2873_v1 = vmax.f32 %v2867_v59, 0.0  ;;  %5105 = vmatpush3.bf16.msra.mxu1 %v5104_v51  ;;  %5126 = vmatprep.subr.bf16.mxu0 %v5639_v55  ;;  %v5130_v2 = vpack.c.bf16 %v3365_v19, %v3364_v18  ;;  %v3368_v22 = vld [vmem:[#allocation11 + $0x30] sm:$0xff]  ;;  %v3668_v19 = vld [vmem:[%s6477_s26 + $0x7] ss:$0 sm:$0xff] }
 0x865   : > { %5107 = vmatprep.subr.bf16.mxu1 %v5106_v53  ;;  %v5136_v27 = vpack.c.bf16 %v3369_v23, %v3368_v22  ;;  %v3372_v35 = vld [vmem:[#allocation11 + $0x50] sm:$0xff] }
 0x866   : > { %2998 = vmatprep.mubr.f32.mxu1 %v2873_v1 }
 0x867   : > { %2999 = vmatmul.mubr.f32.gmra.mrb[58].mxu1 %v2872_v49 }
 0x868   : > { %5109 = vmatpush3.bf16.msra.mxu1 %v5108_v9 }
 0x869   : > { %5111 = vmatprep.subr.bf16.mxu1 %v5110_v10 }
 0x86c   : > { %5113 = vmatpush3.bf16.msra.mxu1 %v5112_v15  ;;  %v3363_v15 = vld [vmem:[#allocation11 + $0x8] sm:$0xff] }
 0x86d   : > { %5115 = vmatprep.subr.bf16.mxu1 %v5114_v17  ;;  %v5127_v17 = vpack.c.bf16 %v3363_v15, %v3362_v14 }
 0x86f   : > { %5128 = vmatpush3.bf16.msra.mxu0 %v5127_v17 }
 0x870   : > { %5117 = vmatpush3.bf16.msra.mxu1 %v5116_v3  ;;  %5129 = vmatprep.subr.bf16.mxu0 %v5639_v55  ;;  %v3366_v3 = vld [vmem:[#allocation11 + $0x20] sm:$0xff] }
 0x871   : > { %5119 = vmatprep.subr.bf16.mxu1 %v5118_v45  ;;  %v3367_v45 = vld [vmem:[#allocation11 + $0x28] sm:$0xff] }
 0x872   : > { %v5133_v20 = vpack.c.bf16 %v3367_v45, %v3366_v3 }
 0x873   : > { %5131 = vmatpush3.bf16.msra.mxu0 %v5130_v2 }
 0x874   : > { %5121 = vmatpush3.bf16.msra.mxu1 %v5120_v6  ;;  %5132 = vmatprep.subr.bf16.mxu0 %v5639_v55  ;;  %v3370_v6 = vld [vmem:[#allocation11 + $0x40] sm:$0xff] }
 0x875   : > { %v4366_v38 = vpop.f32.mrb[60].mxu0  ;;  %5123 = vmatprep.subr.bf16.mxu1 %v5122_v32  ;;  %v3371_v32 = vld [vmem:[#allocation11 + $0x48] sm:$0xff] }
 0x876   : > { %v4367_v41 = vpop.f32.mrb[61].mxu0  ;;  %v5139_v16 = vpack.c.bf16 %v3371_v32, %v3370_v6 }
 0x877   : > { %v4368_v42 = vadd.f32 %v4367_v41, %v4366_v38  ;;  %5134 = vmatpush3.bf16.msra.mxu0 %v5133_v20  ;;  %v3375_v41 = vld [vmem:[#allocation11 + $0x68] sm:$0xff] }
 0x878   : > { %5125 = vmatpush3.bf16.msra.mxu1 %v5124_v37  ;;  %5135 = vmatprep.subr.bf16.mxu0 %v5639_v55  ;;  %v3373_v37 = vld [vmem:[#allocation11 + $0x58] sm:$0xff] }
 0x879   : > { %v3160_v46 = vadd.f32 %v4368_v42, %v3666_v40  ;;  %v4369_v47 = vpop.f32.mrb[62].mxu0  ;;  %v5142_v38 = vpack.c.bf16 %v3373_v37, %v3372_v35 }
 0x87a   : > { %v4370_v49 = vpop.f32.mrb[63].mxu0 }
 0x87b   : > { %v3178_v50 = vmax.f32 %v3160_v46, 0.0  ;;  %v4371_v51 = vadd.f32 %v4370_v49, %v4369_v47  ;;  %5137 = vmatpush3.bf16.msra.mxu0 %v5136_v27  ;;  %v3376_v46 = vld [vmem:[#allocation11 + $0x70] sm:$0xff]  ;;  %v3377_v47 = vld [vmem:[#allocation11 + $0x78] sm:$0xff] }
 0x87c   : > { %5138 = vmatprep.subr.bf16.mxu0 %v5639_v55  ;;  %v5148_v49 = vpack.c.bf16 %v3377_v47, %v3376_v46 }
 0x87d   : > { %v3165_v53 = vadd.f32 %v4371_v51, %v3666_v40  ;;  %v4372_v54 = vpop.f32.mrb[64].mxu0  ;;  %3291 = vmatprep.mubr.f32.mxu1 %v3178_v50 }
 0x87e   : > { %v4373_v61 = vpop.f32.mrb[65].mxu0 }
 0x87f   : > { %v3179_v59 = vmax.f32 %v3165_v53, 0.0  ;;  %v4374_v0 = vadd.f32 %v4373_v61, %v4372_v54  ;;  %5140 = vmatpush3.bf16.msra.mxu0 %v5139_v16 }
 0x880   : > { %5141 = vmatprep.subr.bf16.mxu0 %v5639_v55 }
 0x881   : > { %v3170_v36 = vadd.f32 %v4374_v0, %v3666_v40  ;;  %v4375_v1 = vpop.f32.mrb[66].mxu0  ;;  %3292 = vmatmul.mubr.f32.vlgmr.msra.gmra.mrb[60].mxu1 %v3179_v59 }
 0x882   : > { %v4376_v9 = vpop.f32.mrb[67].mxu0  ;;  %3296 = vmatprep.mubr.f32.mxu1 %v3179_v59 }
 0x883   : > { %v3180_v10 = vmax.f32 %v3170_v36, 0.0  ;;  %v4377_v11 = vadd.f32 %v4376_v9, %v4375_v1  ;;  %5143 = vmatpush3.bf16.msra.mxu0 %v5142_v38 }
 0x884   : > { %5144 = vmatprep.subr.bf16.mxu0 %v5639_v55 }
 0x885   : > { %v3175_v12 = vadd.f32 %v4377_v11, %v3666_v40  ;;  %3297 = vmatmul.mubr.f32.gmra.mrb[62].mxu1 %v3180_v10  ;;  %v3374_v40 = vld [vmem:[#allocation11 + $0x60] sm:$0xff] }
 0x886   : > { %3301 = vmatprep.mubr.f32.mxu1 %v3180_v10  ;;  %v5145_v42 = vpack.c.bf16 %v3375_v41, %v3374_v40  ;;  %v3660_v11 = vld [vmem:[%s6441_s6 + $0x7] ss:$0 sm:$0xff] }
 0x887   : > { %v3181_v63 = vmax.f32 %v3175_v12, 0.0 }
 0x888   : > { %5146 = vmatpush3.bf16.msra.mxu0 %v5145_v42 }
 0x889   : > { %3302 = vmatmul.mubr.f32.gmra.mrb[64].mxu1 %v3181_v63  ;;  %5147 = vmatprep.subr.bf16.mxu0 %v5639_v55 }
 0x88a   : > { %3306 = vmatprep.mubr.f32.mxu1 %v3181_v63 }
 0x88c   : > { %5149 = vmatpush3.bf16.msra.mxu0 %v5148_v49 }
 0x88d   : > { %3307 = vmatmul.mubr.f32.gmra.mrb[66].mxu1 %v5638_v56 }
 0x92e   : > { %v4322_v50 = vpop.f32.mrb[52].mxu1 }
 0x92f   : > { %v4323_v51 = vpop.f32.mrb[53].mxu1 }
 0x930   : > { %v4324_v56 = vadd.f32 %v4323_v51, %v4322_v50 }
 0x932   : > { %v4325_v53 = vpop.f32.mrb[54].mxu1  ;;  %v2986_v12 = vadd.f32 %v4324_v56, %v3660_v11 }
 0x933   : > { %v4326_v54 = vpop.f32.mrb[55].mxu1 }
 0x934   : > { %v4327_v61 = vadd.f32 %v4326_v54, %v4325_v53  ;;  %v3004_v14 = vmax.f32 %v2986_v12, 0.0 }
 0x936   : > { %v4328_v59 = vpop.f32.mrb[56].mxu1  ;;  %v2991_v63 = vadd.f32 %v4327_v61, %v3660_v11  ;;  %v3661_v17 = vmul.f32 -1.442695, %v3004_v14 }
 0x937   : > { %v4329_v0 = vpop.f32.mrb[57].mxu1 }
 0x938   : > { %v4330_v36 = vadd.f32 %v4329_v0, %v4328_v59  ;;  %v3005_v15 = vmax.f32 %v2991_v63, 0.0  ;;  %5348 = vpow2.f32 %v3661_v17  ;;  %v2044_v63 = vadd.f32 %v6220_v48, %v6188_v28 }
 0x939   : > { %v1377_v28 = vadd.f32 %v6128_v26, %v6105_v24  ;;  %v2046_v48 = vadd.f32 %v6231_v57, %v6191_v29 }
 0x93a   : > { %v4331_v1 = vpop.f32.mrb[58].mxu1  ;;  %v2996_v55 = vadd.f32 %v4330_v36, %v3660_v11  ;;  %v3662_v45 = vmul.f32 -1.442695, %v3005_v15  ;;  %v1375_v15 = vadd.f32 %v6120_v8, %v6088_v43 }
 0x93b   : > { %v4332_v9 = vpop.f32.mrb[59].mxu1 }
 0x93c   : > { %v4333_v10 = vadd.f32 %v4332_v9, %v4331_v1  ;;  %v3006_v20 = vmax.f32 %v2996_v55, 0.0  ;;  %5350 = vpow2.f32 %v3662_v45 }
 0x93e   : > { %v3001_v22 = vadd.f32 %v4333_v10, %v3660_v11  ;;  %v3663_v35 = vmul.f32 -1.442695, %v3006_v20  ;;  %v1376_v11 = vadd.f32 %v6124_v21, %v6092_v4  ;;  %v2711_v4 = vadd.f32 %v6309_v58, %v6287_v60 }
 0x93f   : > { %v2713_v20 = vadd.f32 %v6319_v33, %v6299_v34 }
 0x940   : > { %v3007_v37 = vmax.f32 %v3001_v22, 0.0  ;;  %v1379_v21 = vadd.f32 %v1376_v11, %v1375_v15 }
 0x942   : > { %v3664_v49 = vmul.f32 -1.442695, %v3007_v37  ;;  %v5349_v54 = vpop.eup %5348  ;;  %v1380_v22 = vadd.f32 %v1379_v21, %v1377_v28 }
 0x943   : > { %v3020_v9 = vadd.f32 1.0, %v5349_v54 }
 0x946   : > { %v5351_v1 = vpop.eup %5350 }
 0x947   : > { %v3021_v17 = vadd.f32 1.0, %v5351_v1 }
 0x954   : > { %v4410_v18 = vpop.f32.mrb[60].mxu1 }
 0x955   : > { %v4411_v2 = vpop.f32.mrb[61].mxu1 }
 0x956   : > { %v4412_v3 = vadd.f32 %v4411_v2, %v4410_v18  ;;  %v2045_v2 = vadd.f32 %v6224_v52, %v6201_v44  ;;  %v2712_v44 = vadd.f32 %v6314_v31, %v6293_v13 }
 0x958   : > { %v3294_v23 = vadd.f32 %v4412_v3, %v3668_v19  ;;  %v4413_v27 = vpop.f32.mrb[62].mxu1 }
 0x959   : > { %v4414_v6 = vpop.f32.mrb[63].mxu1 }
 0x95a   : > { %v3312_v32 = vmax.f32 %v3294_v23, 0.0  ;;  %v4415_v16 = vadd.f32 %v4414_v6, %v4413_v27 }
 0x95c   : > { %v3669_v38 = vmul.f32 -1.442695, %v3312_v32  ;;  %v3299_v40 = vadd.f32 %v4415_v16, %v3668_v19  ;;  %v4416_v41 = vpop.f32.mrb[64].mxu1 }
 0x95d   : > { %v4417_v42 = vpop.f32.mrb[65].mxu1 }
 0x95e   : > { %5352 = vpow2.f32 %v3669_v38  ;;  %v3313_v46 = vmax.f32 %v3299_v40, 0.0  ;;  %v4418_v47 = vadd.f32 %v4417_v42, %v4416_v41 }
 0x95f   : > { %5354 = vpow2.f32 %v3663_v35 }
 0x960   : > { %v3670_v50 = vmul.f32 -1.442695, %v3313_v46  ;;  %v3304_v51 = vadd.f32 %v4418_v47, %v3668_v19  ;;  %v4419_v56 = vpop.f32.mrb[66].mxu1 }
 0x961   : > { %v4420_v53 = vpop.f32.mrb[67].mxu1 }
 0x962   : > { %5356 = vpow2.f32 %v3670_v50  ;;  %v3314_v61 = vmax.f32 %v3304_v51, 0.0  ;;  %v4421_v59 = vadd.f32 %v4420_v53, %v4419_v56 }
 0x963   : > { %5358 = vpow2.f32 %v3664_v49 }
 0x964   : > { %v3671_v0 = vmul.f32 -1.442695, %v3314_v61  ;;  %v3309_v36 = vadd.f32 %v4421_v59, %v3668_v19  ;;  %v2043_v19 = vadd.f32 %v6216_v7, %v6184_v62  ;;  %v2710_v62 = vadd.f32 %v6305_v25, %v6281_v39 }
 0x965   : > { %v1378_v7 = vadd.f32 %v6136_v30, %v6095_v5 }
 0x966   : > { %5360 = vpow2.f32 %v3671_v0  ;;  %v3315_v10 = vmax.f32 %v3309_v36, 0.0  ;;  %v2047_v8 = vadd.f32 %v2044_v63, %v2043_v19  ;;  %v2714_v26 = vadd.f32 %v2711_v4, %v2710_v62 }
 0x967   : > { %5362 = vrcp.f32 %v3020_v9  ;;  %v1381_v27 = vadd.f32 %v1380_v22, %v1378_v7 }
 0x968   : > { %v5353_v12 = vpop.eup %5352  ;;  %v3672_v14 = vmul.f32 -1.442695, %v3315_v10  ;;  %v2048_v24 = vadd.f32 %v2047_v8, %v2045_v2  ;;  %v2715_v23 = vadd.f32 %v2714_v26, %v2712_v44 }
 0x969   : > { %v3328_v55 = vadd.f32 1.0, %v5353_v12  ;;  %v5355_v18 = vpop.eup %5354  ;;  %v1382_v38 = vrot.slane %v1381_v27, 4 }
 0x96a   : > { %5364 = vpow2.f32 %v3672_v14  ;;  %v3022_v52 = vadd.f32 1.0, %v5355_v18  ;;  %v2049_v57 = vadd.f32 %v2048_v24, %v2046_v48  ;;  %v2716_v16 = vadd.f32 %v2715_v23, %v2713_v20 }
 0x96b   : > { %5366 = vrcp.f32 %v3328_v55  ;;  %v1383_v56 = vadd.f32 %v1382_v38, %v1381_v27 }
 0x96c   : > { %v5357_v43 = vpop.eup %5356  ;;  %5368 = vrcp.f32 %v3021_v17  ;;  %v2050_v35 = vrot.slane %v2049_v57, 4  ;;  %v2717_v41 = vrot.slane %v2716_v16, 4 }
 0x96d   : > { %v3329_v3 = vadd.f32 1.0, %v5357_v43  ;;  %v5359_v45 = vpop.eup %5358  ;;  %v1384_v9 = vrot.slane %v1383_v56, 2 }
 0x96e   : > { %v3023_v6 = vadd.f32 1.0, %v5359_v45  ;;  %v2051_v50 = vadd.f32 %v2050_v35, %v2049_v57  ;;  %v2718_v53 = vadd.f32 %v2717_v41, %v2716_v16  ;;  %v3656_v45 = vld [vmem:[%s6478_s12 + $0x2] sm:$0x1]  ;;  %v3673_v57 = vld [vmem:[%s6478_s12 + $0x3] sm:$0x1] }
 0x96f   : > { %5370 = vrcp.f32 %v3329_v3  ;;  %v1385_v17 = vadd.f32 %v1384_v9, %v1383_v56  ;;  %v1390_v3 = vld [vmem:[%s6478_s12] sm:$0x1] }
 0x970   : > { %v5361_v29 = vpop.eup %5360  ;;  %5372 = vrcp.f32 %v3022_v52  ;;  %v2052_v36 = vrot.slane %v2051_v50, 2  ;;  %v2719_v10 = vrot.slane %v2718_v53, 2 }
 0x971   : > { %v3330_v32 = vadd.f32 1.0, %v5361_v29  ;;  %v5363_v5 = vpop.eup %5362  ;;  %v1386_v21 = vrot.slane %v1385_v17, 1 }
 0x972   : > { %v3032_v42 = vmul.f32 %v5363_v5, %v6281_v39  ;;  %v2053_v14 = vadd.f32 %v2052_v36, %v2051_v50  ;;  %v2720_v18 = vadd.f32 %v2719_v10, %v2718_v53  ;;  %v3378_v5 = vld [vmem:[%s6479_s14] sm:$0x1]  ;;  %s5556_s14 = scalar_lea.vmem %s5555_s20, 32 }
 0x973   : > { %5374 = vrcp.f32 %v3330_v32  ;;  %v1387_v8 = vadd.f32 %v1386_v21, %v1385_v17  ;;  %p5558_p0 = scmp.lt.s32.totalorder %s5556_s14, %s5550_s15 }
 0x974   : > { %v5365_v30 = vpop.eup %5364  ;;  %5376 = vrcp.f32 %v3023_v6  ;;  %v2054_v2 = vrot.slane %v2053_v14, 1  ;;  %v2721_v28 = vrot.slane %v2720_v18, 1 }
 0x975   : > { %v5367_v37 = vpop.eup %5366  ;;  %v3331_v40 = vadd.f32 1.0, %v5365_v30  ;;  %v1389_v7 = vmul.f32 0.03125, %v1387_v8  ;;  %p5559_p2 = por %p5558_p0, %p5557_p13 }
 0x976   : > { %v3340_v46 = vmul.f32 %v5367_v37, %v6305_v25  ;;  %v5369_v47 = vpop.eup %5368 }
 0x977   : > { %5378 = vrcp.f32 %v3331_v40  ;;  %v3033_v54 = vmul.f32 %v5369_v47, %v6287_v60  ;;  %v1391_v20 = vmul.f32 %v1390_v3, %v1389_v7  ;;  %p5560_p8 = pnand %p5559_p2, %p5553_p1 }
 0x978   : > { %v3344_v49 = vadd.f32 %v3340_v46, %v3032_v42 }
 0x979   : > { %v5371_v51 = vpop.eup %5370 }
 0x97a   : > { %v3341_v61 = vmul.f32 %v5371_v51, %v6309_v58  ;;  %v5373_v59 = vpop.eup %5372 }
 0x97b   : > { %v3034_v39 = vmul.f32 %v5373_v59, %v6293_v13  ;;  %v2055_v13 = vadd.f32 %v2054_v2, %v2053_v14 }
 0x97c   : > { %v3345_v0 = vadd.f32 %v3341_v61, %v3033_v54 }
 0x97d   : > { %v5375_v1 = vpop.eup %5374  ;;  %v2056_v62 = vmul.f32 0.03125, %v2055_v13 }
 0x97e   : > { %v3348_v25 = vadd.f32 %v3345_v0, %v3344_v49  ;;  %v3342_v11 = vmul.f32 %v5375_v1, %v6314_v31  ;;  %v5377_v12 = vpop.eup %5376  ;;  %v2722_v31 = vadd.f32 %v2721_v28, %v2720_v18 }
 0x97f   : > { %v3035_v60 = vmul.f32 %v5377_v12, %v6299_v34  ;;  %v3635_v34 = vld [vmem:[%s6478_s12 + $0x1] sm:$0x1] }
 0x980   : > { %v3346_v63 = vadd.f32 %v3342_v11, %v3034_v39  ;;  %v2723_v52 = vmul.f32 0.03125, %v2722_v31  ;;  %v2059_v24 = vmul.f32 %v3635_v34, %v2056_v62 }
 0x981   : > { %v5379_v15 = vpop.eup %5378 }
 0x982   : > { %v3349_v55 = vadd.f32 %v3348_v25, %v3346_v63  ;;  %v3343_v58 = vmul.f32 %v5379_v15, %v6319_v33  ;;  %v2726_v22 = vmul.f32 %v3656_v45, %v2723_v52  ;;  %v2060_v23 = vadd.f32 %v2059_v24, %v1391_v20 }
 0x984   : > { %v3347_v19 = vadd.f32 %v3343_v58, %v3035_v60  ;;  %v2727_v6 = vadd.f32 %v2726_v22, %v2060_v23 }
 0x986   : > { %v3350_v4 = vadd.f32 %v3349_v55, %v3347_v19 }
 0x988   : > { %v3351_v43 = vrot.slane %v3350_v4, 4 }
 0x98a   : > { %v3352_v48 = vadd.f32 %v3351_v43, %v3350_v4 }
 0x98c   : > { %v3353_v44 = vrot.slane %v3352_v48, 2 }
 0x98e   : > { %v3354_v33 = vadd.f32 %v3353_v44, %v3352_v48 }
 0x990   : > { %v3355_v26 = vrot.slane %v3354_v33, 1 }
 0x992   : > { %v3356_v29 = vadd.f32 %v3355_v26, %v3354_v33 }
 0x994   : > { %v3357_v27 = vmul.f32 0.03125, %v3356_v29 }
 0x996   : > { %v3360_v32 = vmul.f32 %v3673_v57, %v3357_v27 }
 0x998   : > { %v3361_v16 = vadd.f32 %v3360_v32, %v2727_v6 }
 0x99a   : > { %4548 = vmatmul.mubr.f32.vlgmr.msra.gmra.mrb[68].mxu0 %v3361_v16 }
 0xa6d   : > { %v3445_v30 = vpop.f32.mrb[68].mxu0 }
 0xa6e   : > { %v3446_v35 = vadd.f32 %v3445_v30, %v3378_v5  ;;  %v4549_v37 = vpop.f32.mrb[69].mxu0 }
 0xa70   : > { %3449 = vst [vmem:[%s503_s18] sm:$0x1] %v3446_v35 }
 0xa71   : > { %5563 = shalt.err (!%p5560_p8)
}
 0xa72   : > { %s5564_s30 = scalar_lea.hbm %s6391_s16, 16  ;;  %s5568_s1 = scalar_lea.hbm %s6480_s8, 32 }
 0xa73   : > { %p5565_p6 = scmp.ne.s32.totalorder %s6391_s16, %s5564_s30  ;;  %p5569_p3 = scmp.lt.u32.totalorder %s6391_s16, %s6480_s8 }
 0xa74   : > { %p5570_p5 = scmp.lt.u32.totalorder %s5568_s1, %s5564_s30  ;;  %p5572_p7 = scmp.lt.u32.totalorder %s5564_s30, %s6391_s16 }
 0xa75   : > { %p5566_p10 = pnand %p5565_p6, %p6481_p4 }
 0xa76   : > { %p5571_p9 = por %p5570_p5, %p5569_p3 }
 0xa77   : > { %p5567_p11 = pneg %p5566_p10 }
 0xa78   : > { %p5573_p12 = por %p5572_p7, %p5571_p9 }
 0xa7a   : > { %p5574_p1 = pnand %p5573_p12, %p5567_p11 }
 0xa7c   : > { %5577 = shalt.err (!%p5574_p1)
}
 0xa7d   : > { %5172 = dma.vmem_to_hbm [thread:$0]  (%p6481_p4), %s6393_s11, 16, %s6391_s16, %s3451_s17  }
 0xa7e PF: > { %s3475_s15 = sand.u32 1, %s5616_s21   ;;  %p6482_p13 = scmp.ne.s32.totalorder %s6467_s29, 0 }
 0xa7f   : > { %p6483_p0 = scmp.ge.s32.totalorder %s5628_s24, 2  ;;  %s3476_s20 = scalar_lea.sflag [#allocation4], %s3475_s15 }
 0xa81   : > { %p5195_p2 = pnand %p6483_p0, %p6482_p13 }
 0xa83   : > { %5611 = dma.done.wait (!%p5195_p2), %s3476_s20, 16  }
 0xa84   : > { %5613 = vsyncadd (!%p5195_p2), %s3476_s20, 4294967280  ;;  %p28_p8 = scmp.ge.s32.totalorder %s5880_s25, 4   ;;  %s6484_s21 = smov %s5620_s22 }
 0xa85   : > { %s6485_s22 = smov %s5624_s23  ;;  %s6486_s23 = smov %s5892_s9 }
 0xa86   : > { %s6487_s24 = smov %s5880_s25  ;;  %30 = sbr.rel (!%p28_p8) target bundleno = 14 (0xe), region = 164 }
 0xa8d   :  { %3480 = vsyncpa [#allocation3], 1 }
 0xa8e   :  { %3482 = vsyncpa [#allocation3 + $0x1], 1 }
 0xa8f   :  { %3483 = vsyncpa [#allocation6], 1 }
 0xa90   :  { %3484 = vsyncpa [#allocation9], 1 }
 0xa91   :  { %3485 = vsyncpa [#allocation12], 1 }
 0xa92   :  { %3486 = vsyncpa [#allocation4], 1 }
 0xa93   :  { %3488 = vsyncpa [#allocation4 + $0x1], 1 }

</bundles_post_ra>
